<compile_context>
chip_gen: v5e
topology: v5e:2x2
jax: 0.10.0
libtpu: 0.0.40
codegen_flags: <defaults>
</compile_context>

<pallas_src>
import math

import jax
import jax.numpy as jnp
from jax import lax
from jax.experimental import pallas as pl
from jax.experimental.pallas import tpu as pltpu

# ---------------- config (small, consistent with the module) ----------------
B, C, DIM, HEADS, MLP_MULT = 2, 32, 8, 4, 4
H = W = DIM
N = H * W                      # tokens per image = 64
L = B * N                      # fused batch*token lane axis = 128 (lane dense)
HID = C * MLP_MULT             # MLP hidden width = 128
HEAD_DIM = C // HEADS          # 8
EPS = 1e-5                     # BatchNorm eps (PyTorch default)
NEG_INF = -1e30                # cross-batch attention mask (exp underflows to 0)

# Default = single bf16 MXU pass per matmul (fast; ~1e-2 rel. deviation from
# fp32).  Flip to lax.Precision.HIGHEST on the attention matmuls if fp32
# parity with PyTorch matters.
DOT_PREC = lax.Precision.DEFAULT


# ============================ fused Pallas kernel ============================
def vit_kernel(x_ref, w_ref, l_ref, b_ref, o_ref):
    """Whole ViT block, channel-major, batch folded into lanes.

    x_ref : (C, L)         input, column l = b*N + h*W + w
    w_ref : (4C+2*HID, C)  packed weights: [wqkv(3C); wo(C); w1(HID); w2^T(HID)]
                           (BN1+q-scale folded into wqkv, BN2 into w1, alpha into w2)
    l_ref : (2C+8, L)      packed lane data: [pe+conv_bias tiled (C);
                           8 per-tap boundary masks; dw taps (C, lanes 0..8)]
    b_ref : (3C+HID+2C, 1) packed biases: [bqkv(3C); b_out(C); b1(HID); b2(C)]
    o_ref : (C, L)         output (lane-dense, unmasked stores)
    """
    f32 = jnp.float32
    x = x_ref[...]                                           # (C, L)

    pe = l_ref[0:C, :]                                       # pe + dwconv bias (tiled over B)
    tmask = l_ref[C:C + 8, :]                                # (8, L) off-centre tap masks
    dw = l_ref[C + 8:2 * C + 8, :]                           # (C, L) taps in lanes 0..8

    # ---- DepthwiseEncoding + GlobalPositionalEncoding ------------------------
    # x + dwconv3x3(x) (+bias) + pe ; conv = 8 masked lane rotations + centre tap
    acc = x + pe + x * dw[:, 4:5]                            # centre tap (di=0,dj=0)
    t = 0
    for di in (-1, 0, 1):
        for dj in (-1, 0, 1):
            if di == 0 and dj == 0:
                continue
            tap = (di + 1) * 3 + (dj + 1)                    # matches (C,3,3) reshape
            s = di * W + dj                                  # flat shift of this tap
            sh = pltpu.roll(x, shift=(-s) % L, axis=1)       # sh[:, l] = x[:, (l+s) % L]
            acc = acc + sh * tmask[t:t + 1, :] * dw[:, tap:tap + 1]
            t += 1
    x_pe = acc                                               # (C, L)

    # ---- MultiheadAttention (norm1 + 1/sqrt(dh) pre-folded into wqkv/bqkv) ---
    qkv = jnp.dot(w_ref[0:3 * C, :], x_pe,
                  precision=DOT_PREC, preferred_element_type=f32) + b_ref[0:3 * C, :]
    q, k, v = qkv[0:C], qkv[C:2 * C], qkv[2 * C:3 * C]       # (C, L) each

    # additive mask killing cross-batch attention (rows/cols in different images)
    rb = lax.broadcasted_iota(jnp.int32, (L, L), 0) >= N
    cb = lax.broadcasted_iota(jnp.int32, (L, L), 1) >= N
    amask = jnp.where(rb == cb, 0.0, NEG_INF).astype(f32)    # (L, L)

    # per-head scores: contract the channel dim directly (no explicit transpose)
    scs = []
    for hh in range(HEADS):
        r = hh * HEAD_DIM
        sc = lax.dot_general(q[r:r + HEAD_DIM], k[r:r + HEAD_DIM],
                             (((0,), (0,)), ((), ())),
                             precision=DOT_PREC, preferred_element_type=f32)  # (L, L)
        scs.append(sc + amask)
    sc_all = jnp.concatenate(scs, axis=0)                    # (HEADS*L, L)

    # one wide softmax pass over keys for all heads/batches
    sc_all = sc_all - jnp.max(sc_all, axis=-1, keepdims=True)
    p_all = jnp.exp(sc_all)
    p_all = p_all * pl.reciprocal(jnp.sum(p_all, axis=-1, keepdims=True),
                                  approx=True)               # (HEADS*L, L)

    # PV per head; masked (cross-batch) probabilities are exactly 0 -> exact result
    heads = []
    for hh in range(HEADS):
        r = hh * HEAD_DIM
        oh = lax.dot_general(v[r:r + HEAD_DIM], p_all[hh * L:(hh + 1) * L],
                             (((1,), (1,)), ((), ())),
                             precision=DOT_PREC, preferred_element_type=f32)  # (HEAD_DIM, L)
        heads.append(oh)
    ao = jnp.concatenate(heads, axis=0)                      # (C, L), sublane concat

    y = jnp.dot(w_ref[3 * C:4 * C, :], ao,
                precision=DOT_PREC, preferred_element_type=f32) + b_ref[3 * C:4 * C, :]
    x_attn = x_pe + y                                        # residual (+drop1=identity)

    # ---- ResidualBlock MLP (norm2 folded into w1/b1, alpha into w2/b2) -------
    h1 = jnp.dot(w_ref[4 * C:4 * C + HID, :], x_attn,
                 precision=DOT_PREC, preferred_element_type=f32) + b_ref[4 * C:4 * C + HID, :]
    g = 0.5 * h1 * (1.0 + lax.erf(h1 * (1.0 / math.sqrt(2.0))))   # exact GELU
    m = lax.dot_general(w_ref[4 * C + HID:4 * C + 2 * HID, :], g,
                        (((0,), (0,)), ((), ())),                 # w2 stored transposed
                        precision=DOT_PREC,
                        preferred_element_type=f32) + b_ref[4 * C + HID:4 * C + HID + C, :]
    o_ref[...] = x_attn + m                                  # drop2 = identity (eval)


# ============================ pallas_call wrapper ============================
def vit_forward(x, p):
    """x: (B, C, H, W) float32 -> (B, C, H, W); eval-mode ViT forward."""
    f32 = jnp.float32

    # fold eval-mode BatchNorm running stats into per-channel affines
    s1 = p["bn1_gamma"] * lax.rsqrt(p["bn1_var"] + EPS)
    sh1 = p["bn1_beta"] - p["bn1_mean"] * s1
    s2 = p["bn2_gamma"] * lax.rsqrt(p["bn2_var"] + EPS)
    sh2 = p["bn2_beta"] - p["bn2_mean"] * s2

    # fold norm1 + 1/sqrt(head_dim) into the attention in-projection
    scale = 1.0 / math.sqrt(HEAD_DIM)
    qscale = jnp.concatenate([jnp.full((C,), scale, f32), jnp.ones((2 * C,), f32)])
    wqkv = p["in_proj_w"] * s1[None, :] * qscale[:, None]               # (3C, C)
    bqkv = (p["in_proj_w"] @ sh1 + p["in_proj_b"]) * qscale             # (3C,)

    # fold norm2 into mlp conv1, alpha into mlp conv2
    w1 = p["mlp_w1"] * s2[None, :]                                      # (HID, C)
    b1 = p["mlp_w1"] @ sh2 + p["mlp_b1"]                                # (HID,)
    w2t = (p["alpha"][0] * p["mlp_w2"]).T                               # (HID, C)
    b2 = p["alpha"][0] * p["mlp_b2"]                                    # (C,)

    # packed operand slabs (3 slabs + x -> 4 input DMAs instead of ~13)
    wslab = jnp.concatenate([wqkv, p["out_proj_w"], w1, w2t], axis=0)   # (4C+2HID, C)
    bslab = jnp.concatenate([bqkv, p["out_proj_b"], b1, b2])[:, None]   # (3C+HID+2C... = 288, 1)

    # lane slab: pe(+conv bias) tiled over batch, 8 per-tap boundary masks, dw taps
    pe_plus = (p["pe"][0] + p["dw_b"][:, None, None]).reshape(C, N)
    pe_tiled = jnp.tile(pe_plus, (1, B))                                # (C, L)
    l_idx = jnp.arange(L, dtype=jnp.int32)
    hh_ = (l_idx % N) // W
    ww_ = l_idx % W
    masks = []
    for di in (-1, 0, 1):
        for dj in (-1, 0, 1):
            if di == 0 and dj == 0:
                continue
            ok = ((hh_ + di >= 0) & (hh_ + di < H) &
                  (ww_ + dj >= 0) & (ww_ + dj < W))                     # image-interior taps
            masks.append(ok.astype(f32))
    tmask = jnp.stack(masks, axis=0)                                    # (8, L)
    dw = jnp.pad(p["dw_w"].reshape(C, 9), ((0, 0), (0, L - 9)))         # (C, L)
    lslab = jnp.concatenate([pe_tiled, tmask, dw], axis=0)              # (2C+8, L)

    # (B, C, H, W) -> channel-major with batch folded into the lane axis
    x_cl = x.reshape(B, C, N).transpose(1, 0, 2).reshape(C, L)

    # Single grid-free fused call (one TC).  On v7x, for larger B, reintroduce a
    # batch-pair grid with dimension_semantics=("parallel",) to use both TCs.
    out = pl.pallas_call(
        vit_kernel,
        out_shape=jax.ShapeDtypeStruct((C, L), jnp.float32),
        in_specs=[pl.BlockSpec(memory_space=pltpu.MemorySpace.VMEM)] * 4,
        out_specs=pl.BlockSpec(memory_space=pltpu.MemorySpace.VMEM),
    )(x_cl, wslab, lslab, bslab)

    return out.reshape(C, B, N).transpose(1, 0, 2).reshape(B, C, H, W)


# ============================ parameters ====================================
def init_params(key):
    ks = jax.random.split(key, 20)
    p = {}
    # DepthwiseEncoding: Conv2d(C, C, 3, padding=1, groups=C) -> weight (C,1,3,3)
    p["dw_w"] = jax.random.normal(ks[0], (C, 3, 3), jnp.float32) * 0.2
    p["dw_b"] = jax.random.normal(ks[1], (C,), jnp.float32) * 0.1
    # GlobalPositionalEncoding: (1, C, dim, dim)
    p["pe"] = jax.random.normal(ks[2], (1, C, DIM, DIM), jnp.float32)
    # BatchNorm2d #1 (eval-mode running stats)
    p["bn1_gamma"] = 1.0 + 0.1 * jax.random.normal(ks[3], (C,), jnp.float32)
    p["bn1_beta"] = 0.1 * jax.random.normal(ks[4], (C,), jnp.float32)
    p["bn1_mean"] = 0.1 * jax.random.normal(ks[5], (C,), jnp.float32)
    p["bn1_var"] = 1.0 + 0.1 * jnp.abs(jax.random.normal(ks[6], (C,), jnp.float32))
    # MultiheadAttention(embed_dim=C, heads)
    p["in_proj_w"] = jax.random.normal(ks[7], (3 * C, C), jnp.float32) / math.sqrt(C)
    p["in_proj_b"] = 0.1 * jax.random.normal(ks[8], (3 * C,), jnp.float32)
    p["out_proj_w"] = jax.random.normal(ks[9], (C, C), jnp.float32) / math.sqrt(C)
    p["out_proj_b"] = 0.1 * jax.random.normal(ks[10], (C,), jnp.float32)
    # BatchNorm2d #2
    p["bn2_gamma"] = 1.0 + 0.1 * jax.random.normal(ks[11], (C,), jnp.float32)
    p["bn2_beta"] = 0.1 * jax.random.normal(ks[12], (C,), jnp.float32)
    p["bn2_mean"] = 0.1 * jax.random.normal(ks[13], (C,), jnp.float32)
    p["bn2_var"] = 1.0 + 0.1 * jnp.abs(jax.random.normal(ks[14], (C,), jnp.float32))
    # MLP: Conv2d(C, 4C, 1) -> GELU -> Conv2d(4C, C, 1)
    p["mlp_w1"] = jax.random.normal(ks[15], (HID, C), jnp.float32) / math.sqrt(C)
    p["mlp_b1"] = 0.1 * jax.random.normal(ks[16], (HID,), jnp.float32)
    p["mlp_w2"] = jax.random.normal(ks[17], (C, HID), jnp.float32) / math.sqrt(HID)
    p["mlp_b2"] = 0.1 * jax.random.normal(ks[18], (C,), jnp.float32)
    # ResidualBlock alpha
    p["alpha"] = jnp.array([0.01], jnp.float32)
    return p


if __name__ == "__main__":
    key = jax.random.PRNGKey(0)
    kx, kp = jax.random.split(key)
    x = jax.random.normal(kx, (B, C, H, W), jnp.float32)
    params = init_params(kp)

    out = jax.jit(vit_forward)(x, params)
    jax.block_until_ready(out)

    assert out.shape == (B, C, H, W), out.shape
    assert jnp.all(jnp.isfinite(out))
    print("KERNEL_OK")
</pallas_src>

<mosaic_0001>
module attributes {stable_mosaic.version = 11 : i64} {
  func.func @vit_kernel(%arg0: memref<32x128xf32, #tpu.memory_space<vmem>>, %arg1: memref<384x32xf32, #tpu.memory_space<vmem>>, %arg2: memref<72x128xf32, #tpu.memory_space<vmem>>, %arg3: memref<288x1xf32, #tpu.memory_space<vmem>>, %arg4: memref<32x128xf32, #tpu.memory_space<vmem>>) attributes {dimension_semantics = [], scalar_prefetch = 0 : i64, scratch_operands = 0 : i64, tpu.core_type = #tpu.core_type<tc>} {
    %c0 = arith.constant 0 : index
    %c0_0 = arith.constant 0 : index
    %0 = vector.load %arg0[%c0, %c0_0] : memref<32x128xf32, #tpu.memory_space<vmem>>, vector<32x128xf32>
    %c0_1 = arith.constant 0 : index
    %c0_2 = arith.constant 0 : index
    %1 = vector.load %arg2[%c0_1, %c0_2] : memref<72x128xf32, #tpu.memory_space<vmem>>, vector<32x128xf32>
    %c32 = arith.constant 32 : index
    %c0_3 = arith.constant 0 : index
    %2 = vector.load %arg2[%c32, %c0_3] : memref<72x128xf32, #tpu.memory_space<vmem>>, vector<8x128xf32>
    %c40 = arith.constant 40 : index
    %c0_4 = arith.constant 0 : index
    %3 = vector.load %arg2[%c40, %c0_4] : memref<72x128xf32, #tpu.memory_space<vmem>>, vector<32x128xf32>
    %4 = arith.addf %0, %1 : vector<32x128xf32>
    %5 = vector.extract_strided_slice %3 {offsets = [0, 4], sizes = [32, 1], strides = [1, 1]} : vector<32x128xf32> to vector<32x1xf32>
    %6 = vector.broadcast %5 : vector<32x1xf32> to vector<32x128xf32>
    %7 = arith.mulf %0, %6 : vector<32x128xf32>
    %8 = arith.addf %4, %7 : vector<32x128xf32>
    %c9_i32 = arith.constant 9 : i32
    %9 = tpu.dynamic_rotate %0 by %c9_i32 dim 1 : vector<32x128xf32>, i32 -> vector<32x128xf32>
    %10 = vector.extract_strided_slice %2 {offsets = [0, 0], sizes = [1, 128], strides = [1, 1]} : vector<8x128xf32> to vector<1x128xf32>
    %11 = vector.broadcast %10 : vector<1x128xf32> to vector<32x128xf32>
    %12 = arith.mulf %9, %11 : vector<32x128xf32>
    %13 = vector.extract_strided_slice %3 {offsets = [0, 0], sizes = [32, 1], strides = [1, 1]} : vector<32x128xf32> to vector<32x1xf32>
    %14 = vector.broadcast %13 : vector<32x1xf32> to vector<32x128xf32>
    %15 = arith.mulf %12, %14 : vector<32x128xf32>
    %16 = arith.addf %8, %15 : vector<32x128xf32>
    %c8_i32 = arith.constant 8 : i32
    %17 = tpu.dynamic_rotate %0 by %c8_i32 dim 1 : vector<32x128xf32>, i32 -> vector<32x128xf32>
    %18 = vector.extract_strided_slice %2 {offsets = [1, 0], sizes = [1, 128], strides = [1, 1]} : vector<8x128xf32> to vector<1x128xf32>
    %19 = vector.broadcast %18 : vector<1x128xf32> to vector<32x128xf32>
    %20 = arith.mulf %17, %19 : vector<32x128xf32>
    %21 = vector.extract_strided_slice %3 {offsets = [0, 1], sizes = [32, 1], strides = [1, 1]} : vector<32x128xf32> to vector<32x1xf32>
    %22 = vector.broadcast %21 : vector<32x1xf32> to vector<32x128xf32>
    %23 = arith.mulf %20, %22 : vector<32x128xf32>
    %24 = arith.addf %16, %23 : vector<32x128xf32>
    %c7_i32 = arith.constant 7 : i32
    %25 = tpu.dynamic_rotate %0 by %c7_i32 dim 1 : vector<32x128xf32>, i32 -> vector<32x128xf32>
    %26 = vector.extract_strided_slice %2 {offsets = [2, 0], sizes = [1, 128], strides = [1, 1]} : vector<8x128xf32> to vector<1x128xf32>
    %27 = vector.broadcast %26 : vector<1x128xf32> to vector<32x128xf32>
    %28 = arith.mulf %25, %27 : vector<32x128xf32>
    %29 = vector.extract_strided_slice %3 {offsets = [0, 2], sizes = [32, 1], strides = [1, 1]} : vector<32x128xf32> to vector<32x1xf32>
    %30 = vector.broadcast %29 : vector<32x1xf32> to vector<32x128xf32>
    %31 = arith.mulf %28, %30 : vector<32x128xf32>
    %32 = arith.addf %24, %31 : vector<32x128xf32>
    %c1_i32 = arith.constant 1 : i32
    %33 = tpu.dynamic_rotate %0 by %c1_i32 dim 1 : vector<32x128xf32>, i32 -> vector<32x128xf32>
    %34 = vector.extract_strided_slice %2 {offsets = [3, 0], sizes = [1, 128], strides = [1, 1]} : vector<8x128xf32> to vector<1x128xf32>
    %35 = vector.broadcast %34 : vector<1x128xf32> to vector<32x128xf32>
    %36 = arith.mulf %33, %35 : vector<32x128xf32>
    %37 = vector.extract_strided_slice %3 {offsets = [0, 3], sizes = [32, 1], strides = [1, 1]} : vector<32x128xf32> to vector<32x1xf32>
    %38 = vector.broadcast %37 : vector<32x1xf32> to vector<32x128xf32>
    %39 = arith.mulf %36, %38 : vector<32x128xf32>
    %40 = arith.addf %32, %39 : vector<32x128xf32>
    %c127_i32 = arith.constant 127 : i32
    %41 = tpu.dynamic_rotate %0 by %c127_i32 dim 1 : vector<32x128xf32>, i32 -> vector<32x128xf32>
    %42 = vector.extract_strided_slice %2 {offsets = [4, 0], sizes = [1, 128], strides = [1, 1]} : vector<8x128xf32> to vector<1x128xf32>
    %43 = vector.broadcast %42 : vector<1x128xf32> to vector<32x128xf32>
    %44 = arith.mulf %41, %43 : vector<32x128xf32>
    %45 = vector.extract_strided_slice %3 {offsets = [0, 5], sizes = [32, 1], strides = [1, 1]} : vector<32x128xf32> to vector<32x1xf32>
    %46 = vector.broadcast %45 : vector<32x1xf32> to vector<32x128xf32>
    %47 = arith.mulf %44, %46 : vector<32x128xf32>
    %48 = arith.addf %40, %47 : vector<32x128xf32>
    %c121_i32 = arith.constant 121 : i32
    %49 = tpu.dynamic_rotate %0 by %c121_i32 dim 1 : vector<32x128xf32>, i32 -> vector<32x128xf32>
    %50 = vector.extract_strided_slice %2 {offsets = [5, 0], sizes = [1, 128], strides = [1, 1]} : vector<8x128xf32> to vector<1x128xf32>
    %51 = vector.broadcast %50 : vector<1x128xf32> to vector<32x128xf32>
    %52 = arith.mulf %49, %51 : vector<32x128xf32>
    %53 = vector.extract_strided_slice %3 {offsets = [0, 6], sizes = [32, 1], strides = [1, 1]} : vector<32x128xf32> to vector<32x1xf32>
    %54 = vector.broadcast %53 : vector<32x1xf32> to vector<32x128xf32>
    %55 = arith.mulf %52, %54 : vector<32x128xf32>
    %56 = arith.addf %48, %55 : vector<32x128xf32>
    %c120_i32 = arith.constant 120 : i32
    %57 = tpu.dynamic_rotate %0 by %c120_i32 dim 1 : vector<32x128xf32>, i32 -> vector<32x128xf32>
    %58 = vector.extract_strided_slice %2 {offsets = [6, 0], sizes = [1, 128], strides = [1, 1]} : vector<8x128xf32> to vector<1x128xf32>
    %59 = vector.broadcast %58 : vector<1x128xf32> to vector<32x128xf32>
    %60 = arith.mulf %57, %59 : vector<32x128xf32>
    %61 = vector.extract_strided_slice %3 {offsets = [0, 7], sizes = [32, 1], strides = [1, 1]} : vector<32x128xf32> to vector<32x1xf32>
    %62 = vector.broadcast %61 : vector<32x1xf32> to vector<32x128xf32>
    %63 = arith.mulf %60, %62 : vector<32x128xf32>
    %64 = arith.addf %56, %63 : vector<32x128xf32>
    %c119_i32 = arith.constant 119 : i32
    %65 = tpu.dynamic_rotate %0 by %c119_i32 dim 1 : vector<32x128xf32>, i32 -> vector<32x128xf32>
    %66 = vector.extract_strided_slice %2 {offsets = [7, 0], sizes = [1, 128], strides = [1, 1]} : vector<8x128xf32> to vector<1x128xf32>
    %67 = vector.broadcast %66 : vector<1x128xf32> to vector<32x128xf32>
    %68 = arith.mulf %65, %67 : vector<32x128xf32>
    %69 = vector.extract_strided_slice %3 {offsets = [0, 8], sizes = [32, 1], strides = [1, 1]} : vector<32x128xf32> to vector<32x1xf32>
    %70 = vector.broadcast %69 : vector<32x1xf32> to vector<32x128xf32>
    %71 = arith.mulf %68, %70 : vector<32x128xf32>
    %72 = arith.addf %64, %71 : vector<32x128xf32>
    %c0_5 = arith.constant 0 : index
    %c0_6 = arith.constant 0 : index
    %73 = vector.load %arg1[%c0_5, %c0_6] : memref<384x32xf32, #tpu.memory_space<vmem>>, vector<96x32xf32>
    %cst = arith.constant dense<0.000000e+00> : vector<96x128xf32>
    %74 = tpu.matmul %73, %72, %cst {dimension_numbers = #tpu.dot_dimension_numbers<[1], [0], [0], [1], [0, 0, 1, 1], [], []>} : vector<96x32xf32>, vector<32x128xf32>, vector<96x128xf32> -> vector<96x128xf32>
    %c0_7 = arith.constant 0 : index
    %c0_8 = arith.constant 0 : index
    %75 = vector.load %arg3[%c0_7, %c0_8] : memref<288x1xf32, #tpu.memory_space<vmem>>, vector<96x1xf32>
    %76 = vector.broadcast %75 : vector<96x1xf32> to vector<96x128xf32>
    %77 = arith.addf %74, %76 : vector<96x128xf32>
    %78 = vector.extract_strided_slice %77 {offsets = [0, 0], sizes = [32, 128], strides = [1, 1]} : vector<96x128xf32> to vector<32x128xf32>
    %79 = vector.extract_strided_slice %77 {offsets = [32, 0], sizes = [32, 128], strides = [1, 1]} : vector<96x128xf32> to vector<32x128xf32>
    %80 = vector.extract_strided_slice %77 {offsets = [64, 0], sizes = [32, 128], strides = [1, 1]} : vector<96x128xf32> to vector<32x128xf32>
    %81 = tpu.iota {dimensions = array<i32: 0>} : vector<128x128xi32>
    %c64_i32 = arith.constant 64 : i32
    %82 = vector.broadcast %c64_i32 : i32 to vector<128x128xi32>
    %83 = arith.cmpi sge, %81, %82 : vector<128x128xi32>
    %84 = tpu.iota {dimensions = array<i32: 1>} : vector<128x128xi32>
    %c64_i32_9 = arith.constant 64 : i32
    %85 = vector.broadcast %c64_i32_9 : i32 to vector<128x128xi32>
    %86 = arith.cmpi sge, %84, %85 : vector<128x128xi32>
    %87 = arith.xori %83, %86 : vector<128x128xi1>
    %cst_10 = arith.constant dense<true> : vector<128x128xi1>
    %88 = arith.xori %87, %cst_10 : vector<128x128xi1>
    %cst_11 = arith.constant 0.000000e+00 : f32
    %cst_12 = arith.constant -1.000000e+30 : f32
    %89 = vector.broadcast %cst_11 : f32 to vector<128x128xf32>
    %90 = vector.broadcast %cst_12 : f32 to vector<128x128xf32>
    %91 = arith.select %88, %89, %90 : vector<128x128xi1>, vector<128x128xf32>
    %92 = vector.extract_strided_slice %78 {offsets = [0, 0], sizes = [8, 128], strides = [1, 1]} : vector<32x128xf32> to vector<8x128xf32>
    %93 = vector.extract_strided_slice %79 {offsets = [0, 0], sizes = [8, 128], strides = [1, 1]} : vector<32x128xf32> to vector<8x128xf32>
    %cst_13 = arith.constant dense<0.000000e+00> : vector<128x128xf32>
    %94 = tpu.matmul %92, %93, %cst_13 {dimension_numbers = #tpu.dot_dimension_numbers<[0], [0], [1], [1], [0, 1, 1, 1], [], []>} : vector<8x128xf32>, vector<8x128xf32>, vector<128x128xf32> -> vector<128x128xf32>
    %95 = arith.addf %94, %91 : vector<128x128xf32>
    %96 = vector.extract_strided_slice %78 {offsets = [8, 0], sizes = [8, 128], strides = [1, 1]} : vector<32x128xf32> to vector<8x128xf32>
    %97 = vector.extract_strided_slice %79 {offsets = [8, 0], sizes = [8, 128], strides = [1, 1]} : vector<32x128xf32> to vector<8x128xf32>
    %cst_14 = arith.constant dense<0.000000e+00> : vector<128x128xf32>
    %98 = tpu.matmul %96, %97, %cst_14 {dimension_numbers = #tpu.dot_dimension_numbers<[0], [0], [1], [1], [0, 1, 1, 1], [], []>} : vector<8x128xf32>, vector<8x128xf32>, vector<128x128xf32> -> vector<128x128xf32>
    %99 = arith.addf %98, %91 : vector<128x128xf32>
    %100 = vector.extract_strided_slice %78 {offsets = [16, 0], sizes = [8, 128], strides = [1, 1]} : vector<32x128xf32> to vector<8x128xf32>
    %101 = vector.extract_strided_slice %79 {offsets = [16, 0], sizes = [8, 128], strides = [1, 1]} : vector<32x128xf32> to vector<8x128xf32>
    %cst_15 = arith.constant dense<0.000000e+00> : vector<128x128xf32>
    %102 = tpu.matmul %100, %101, %cst_15 {dimension_numbers = #tpu.dot_dimension_numbers<[0], [0], [1], [1], [0, 1, 1, 1], [], []>} : vector<8x128xf32>, vector<8x128xf32>, vector<128x128xf32> -> vector<128x128xf32>
    %103 = arith.addf %102, %91 : vector<128x128xf32>
    %104 = vector.extract_strided_slice %78 {offsets = [24, 0], sizes = [8, 128], strides = [1, 1]} : vector<32x128xf32> to vector<8x128xf32>
    %105 = vector.extract_strided_slice %79 {offsets = [24, 0], sizes = [8, 128], strides = [1, 1]} : vector<32x128xf32> to vector<8x128xf32>
    %cst_16 = arith.constant dense<0.000000e+00> : vector<128x128xf32>
    %106 = tpu.matmul %104, %105, %cst_16 {dimension_numbers = #tpu.dot_dimension_numbers<[0], [0], [1], [1], [0, 1, 1, 1], [], []>} : vector<8x128xf32>, vector<8x128xf32>, vector<128x128xf32> -> vector<128x128xf32>
    %107 = arith.addf %106, %91 : vector<128x128xf32>
    %108 = tpu.concatenate %95, %99, %103, %107 in 0 : vector<128x128xf32>, vector<128x128xf32>, vector<128x128xf32>, vector<128x128xf32> -> vector<512x128xf32>
    %cst_17 = arith.constant dense<0xFF800000> : vector<512xf32>
    %109 = vector.multi_reduction <maximumf>, %108, %cst_17 [1] : vector<512x128xf32> to vector<512xf32>
    %110 = vector.shape_cast %109 : vector<512xf32> to vector<512x1xf32>
    %111 = vector.broadcast %110 : vector<512x1xf32> to vector<512x128xf32>
    %112 = arith.subf %108, %111 : vector<512x128xf32>
    %113 = math.exp %112 : vector<512x128xf32>
    %cst_18 = arith.constant dense<0.000000e+00> : vector<512xf32>
    %114 = vector.multi_reduction <add>, %113, %cst_18 [1] : vector<512x128xf32> to vector<512xf32>
    %115 = vector.shape_cast %114 : vector<512xf32> to vector<512x1xf32>
    %116 = tpu.reciprocal %115 {approx = true} : vector<512x1xf32> -> vector<512x1xf32>
    %117 = vector.broadcast %116 : vector<512x1xf32> to vector<512x128xf32>
    %118 = arith.mulf %113, %117 : vector<512x128xf32>
    %119 = vector.extract_strided_slice %80 {offsets = [0, 0], sizes = [8, 128], strides = [1, 1]} : vector<32x128xf32> to vector<8x128xf32>
    %120 = vector.extract_strided_slice %118 {offsets = [0, 0], sizes = [128, 128], strides = [1, 1]} : vector<512x128xf32> to vector<128x128xf32>
    %cst_19 = arith.constant dense<0.000000e+00> : vector<8x128xf32>
    %121 = tpu.matmul %119, %120, %cst_19 {dimension_numbers = #tpu.dot_dimension_numbers<[1], [1], [0], [0], [0, 0, 1, 0], [], []>} : vector<8x128xf32>, vector<128x128xf32>, vector<8x128xf32> -> vector<8x128xf32>
    %122 = vector.extract_strided_slice %80 {offsets = [8, 0], sizes = [8, 128], strides = [1, 1]} : vector<32x128xf32> to vector<8x128xf32>
    %123 = vector.extract_strided_slice %118 {offsets = [128, 0], sizes = [128, 128], strides = [1, 1]} : vector<512x128xf32> to vector<128x128xf32>
    %cst_20 = arith.constant dense<0.000000e+00> : vector<8x128xf32>
    %124 = tpu.matmul %122, %123, %cst_20 {dimension_numbers = #tpu.dot_dimension_numbers<[1], [1], [0], [0], [0, 0, 1, 0], [], []>} : vector<8x128xf32>, vector<128x128xf32>, vector<8x128xf32> -> vector<8x128xf32>
    %125 = vector.extract_strided_slice %80 {offsets = [16, 0], sizes = [8, 128], strides = [1, 1]} : vector<32x128xf32> to vector<8x128xf32>
    %126 = vector.extract_strided_slice %118 {offsets = [256, 0], sizes = [128, 128], strides = [1, 1]} : vector<512x128xf32> to vector<128x128xf32>
    %cst_21 = arith.constant dense<0.000000e+00> : vector<8x128xf32>
    %127 = tpu.matmul %125, %126, %cst_21 {dimension_numbers = #tpu.dot_dimension_numbers<[1], [1], [0], [0], [0, 0, 1, 0], [], []>} : vector<8x128xf32>, vector<128x128xf32>, vector<8x128xf32> -> vector<8x128xf32>
    %128 = vector.extract_strided_slice %80 {offsets = [24, 0], sizes = [8, 128], strides = [1, 1]} : vector<32x128xf32> to vector<8x128xf32>
    %129 = vector.extract_strided_slice %118 {offsets = [384, 0], sizes = [128, 128], strides = [1, 1]} : vector<512x128xf32> to vector<128x128xf32>
    %cst_22 = arith.constant dense<0.000000e+00> : vector<8x128xf32>
    %130 = tpu.matmul %128, %129, %cst_22 {dimension_numbers = #tpu.dot_dimension_numbers<[1], [1], [0], [0], [0, 0, 1, 0], [], []>} : vector<8x128xf32>, vector<128x128xf32>, vector<8x128xf32> -> vector<8x128xf32>
    %131 = tpu.concatenate %121, %124, %127, %130 in 0 : vector<8x128xf32>, vector<8x128xf32>, vector<8x128xf32>, vector<8x128xf32> -> vector<32x128xf32>
    %c96 = arith.constant 96 : index
    %c0_23 = arith.constant 0 : index
    %132 = vector.load %arg1[%c96, %c0_23] : memref<384x32xf32, #tpu.memory_space<vmem>>, vector<32x32xf32>
    %cst_24 = arith.constant dense<0.000000e+00> : vector<32x128xf32>
    %133 = tpu.matmul %132, %131, %cst_24 {dimension_numbers = #tpu.dot_dimension_numbers<[1], [0], [0], [1], [0, 0, 1, 1], [], []>} : vector<32x32xf32>, vector<32x128xf32>, vector<32x128xf32> -> vector<32x128xf32>
    %c96_25 = arith.constant 96 : index
    %c0_26 = arith.constant 0 : index
    %134 = vector.load %arg3[%c96_25, %c0_26] : memref<288x1xf32, #tpu.memory_space<vmem>>, vector<32x1xf32>
    %135 = vector.broadcast %134 : vector<32x1xf32> to vector<32x128xf32>
    %136 = arith.addf %133, %135 : vector<32x128xf32>
    %137 = arith.addf %72, %136 : vector<32x128xf32>
    %c128 = arith.constant 128 : index
    %c0_27 = arith.constant 0 : index
    %138 = vector.load %arg1[%c128, %c0_27] : memref<384x32xf32, #tpu.memory_space<vmem>>, vector<128x32xf32>
    %cst_28 = arith.constant dense<0.000000e+00> : vector<128x128xf32>
    %139 = tpu.matmul %138, %137, %cst_28 {dimension_numbers = #tpu.dot_dimension_numbers<[1], [0], [0], [1], [0, 0, 1, 1], [], []>} : vector<128x32xf32>, vector<32x128xf32>, vector<128x128xf32> -> vector<128x128xf32>
    %c128_29 = arith.constant 128 : index
    %c0_30 = arith.constant 0 : index
    %140 = vector.load %arg3[%c128_29, %c0_30] : memref<288x1xf32, #tpu.memory_space<vmem>>, vector<128x1xf32>
    %141 = vector.broadcast %140 : vector<128x1xf32> to vector<128x128xf32>
    %142 = arith.addf %139, %141 : vector<128x128xf32>
    %cst_31 = arith.constant 5.000000e-01 : f32
    %143 = vector.broadcast %cst_31 : f32 to vector<128x128xf32>
    %144 = arith.mulf %143, %142 : vector<128x128xf32>
    %cst_32 = arith.constant 0.707106769 : f32
    %145 = vector.broadcast %cst_32 : f32 to vector<128x128xf32>
    %146 = arith.mulf %142, %145 : vector<128x128xf32>
    %147 = math.erf %146 : vector<128x128xf32>
    %cst_33 = arith.constant 1.000000e+00 : f32
    %148 = vector.broadcast %cst_33 : f32 to vector<128x128xf32>
    %149 = arith.addf %148, %147 : vector<128x128xf32>
    %150 = arith.mulf %144, %149 : vector<128x128xf32>
    %c256 = arith.constant 256 : index
    %c0_34 = arith.constant 0 : index
    %151 = vector.load %arg1[%c256, %c0_34] : memref<384x32xf32, #tpu.memory_space<vmem>>, vector<128x32xf32>
    %cst_35 = arith.constant dense<0.000000e+00> : vector<32x128xf32>
    %152 = tpu.matmul %151, %150, %cst_35 {dimension_numbers = #tpu.dot_dimension_numbers<[0], [0], [1], [1], [0, 1, 1, 1], [], []>} : vector<128x32xf32>, vector<128x128xf32>, vector<32x128xf32> -> vector<32x128xf32>
    %c256_36 = arith.constant 256 : index
    %c0_37 = arith.constant 0 : index
    %153 = vector.load %arg3[%c256_36, %c0_37] : memref<288x1xf32, #tpu.memory_space<vmem>>, vector<32x1xf32>
    %154 = vector.broadcast %153 : vector<32x1xf32> to vector<32x128xf32>
    %155 = arith.addf %152, %154 : vector<32x128xf32>
    %156 = arith.addf %137, %155 : vector<32x128xf32>
    %c0_38 = arith.constant 0 : index
    %c0_39 = arith.constant 0 : index
    %157 = vector.load %arg4[%c0_38, %c0_39] : memref<32x128xf32, #tpu.memory_space<vmem>>, vector<32x128xf32>
    tpu.vector_store %arg4[%c0_38, %c0_39], %156 {strides = array<i32>} : memref<32x128xf32, #tpu.memory_space<vmem>>, vector<32x128xf32>,
    return
  }
}

</mosaic_0001>

<bundles_post_ra>
// kernel: vit_forward.1
= control target key start
LH: loop header
LB: loop body
LE: loop exit
PB: predicated region body
PF: predicated region fallthrough
CT: control target
= control target key end

     0   :  { %v6073_v0 = vmov 0   ;;  %v3444_v1 = vmov 4   ;;  %s3445_s23 = smov 8   ;;  %s3446_s24 = smov 9   ;;  %v3447_v6 = vmov 1   ;;  %v3449_v11 = vmov 2   ;;  %s6068_s2 = inlined_call_operand.vmem [shape: f32[72,128], index: 2, kind: input, shape index: {}]   ;;  %s6069_s0 = inlined_call_operand.vmem [shape: f32[32,128], index: 0, kind: input, shape index: {}]   ;;  %s6070_s3 = inlined_call_operand.vmem [shape: f32[288,1], index: 3, kind: input, shape index: {}]   ;;  %s6071_s1 = inlined_call_operand.vmem [shape: f32[384,32], index: 1, kind: input, shape index: {}]   ;;  %s6072_s4 = inlined_call_operand.vmem [shape: f32[32,128], index: 4, kind: output, shape index: {}]  }
   0x1   :  { %3131 = vset.pattern.permute.xlu2 %v6073_v0  ;;  %3130 = vset.pattern.permute.xlu1 %v3444_v1  ;;  %v3492_v2 = vld [vmem:[%s6068_s2 + $0x40] sm:$0xff]  ;;  %v3497_v3 = vld [vmem:[%s6068_s2 + $0x38] sm:$0xff]  ;;  %v3510_v5 = vld [vmem:[%s6069_s0 + $0x10] sm:$0xff]  ;;  %s3448_s29 = smov 7   ;;  %v3451_v12 = vmov 3   ;;  %s3452_s8 = smov 127  }
   0x2   :  { %3129 = vset.pattern.permute.xlu0 %v3444_v1  ;;  %88 = vperm.xlu2 %3131, %v3492_v2   ;;  %v3505_v4 = vld [vmem:[%s6069_s0 + $0x18] sm:$0xff]  ;;  %v3519_v7 = vld [vmem:[%s6068_s2 + $0x30] sm:$0xff]  ;;  %v3524_v8 = vld [vmem:[%s6069_s0 + $0x8] sm:$0xff]  ;;  %v3453_v13 = vmov 5   ;;  %v3454_v15 = vmov 6   ;;  %s3455_s9 = smov 121  }
   0x3   :  { %51 = vperm.xlu0 %3129, %v3492_v2   ;;  %46 = vperm.xlu1 %3130, %v3497_v3   ;;  %v3537_v9 = vld [vmem:[%s6068_s2 + $0x28] sm:$0xff]  ;;  %v3542_v10 = vld [vmem:[%s6069_s0] sm:$0xff]  ;;  %s3450_s0 = smov 1   ;;  %v3456_v18 = vmov 7   ;;  %s3457_s10 = smov 120   ;;  %v3458_v23 = vmov 8  }
   0x4   :  { %s3459_s11 = smov 119   ;;  %v25_v63 = vld [vmem:[%s6068_s2 + $0x20] sm:$0xff]  ;;  %vm442_vm0 = vcmask 261120   ;;  %vm648_vm1 = vcmask 64512   ;;  %vm3460_vm3 = vmmov 1  }
   0xa   :  { %105 = vrot.lane.b32.xlu2 %v3505_v4, %s3445_s23 }
   0xb   :  { %68 = vrot.lane.b32.xlu0 %v3505_v4, %s3446_s24  ;;  %66 = vrot.lane.b32.xlu1 %v3510_v5, %s3446_s24 }
   0xc   :  { %3132 = vset.pattern.permute.xlu1 %v3447_v6 }
  0x12   :  { %84 = vperm.xlu2 %3131, %v3497_v3  }
  0x13   :  { %41 = vperm.xlu0 %3129, %v3519_v7   ;;  %64 = vrot.lane.b32.xlu1 %v3524_v8, %s3446_s24 }
  0x1a   :  { %142 = vrot.lane.b32.xlu2 %v3505_v4, %s3448_s29 }
  0x1b   :  { %103 = vrot.lane.b32.xlu0 %v3510_v5, %s3445_s23  ;;  %125 = vperm.xlu1 %3132, %v3492_v2  }
  0x22   :  { %80 = vperm.xlu2 %3131, %v3519_v7  }
  0x23   :  { %36 = vperm.xlu0 %3129, %v3537_v9   ;;  %62 = vrot.lane.b32.xlu1 %v3542_v10, %s3446_s24 }
  0x2a   :  { %140 = vrot.lane.b32.xlu2 %v3510_v5, %s3448_s29 }
  0x2b   :  { %101 = vrot.lane.b32.xlu0 %v3524_v8, %s3445_s23  ;;  %121 = vperm.xlu1 %3132, %v3497_v3  }
  0x2c   :  { %3133 = vset.pattern.permute.xlu0 %v3449_v11 }
  0x32   :  { %76 = vperm.xlu2 %3131, %v3537_v9  }
  0x33   :  { %162 = vperm.xlu0 %3133, %v3492_v2   ;;  %179 = vrot.lane.b32.xlu1 %v3505_v4, %s3450_s0 }
  0x34   :  { %3135 = vset.pattern.permute.xlu1 %v3449_v11 }
  0x3a   :  { %3134 = vset.pattern.permute.xlu2 %v3447_v6 }
  0x3b   :  { %138 = vrot.lane.b32.xlu0 %v3524_v8, %s3448_s29  ;;  %99 = vrot.lane.b32.xlu1 %v3542_v10, %s3445_s23 }
  0x3c   :  { %117 = vperm.xlu2 %3134, %v3519_v7   ;;  %3136 = vset.pattern.permute.xlu0 %v3451_v12 }
  0x43   :  { %199 = vperm.xlu0 %3136, %v3492_v2   ;;  %158 = vperm.xlu1 %3135, %v3497_v3  }
  0x44   :  { %177 = vrot.lane.b32.xlu2 %v3510_v5, %s3450_s0 }
  0x4b   :  { %175 = vrot.lane.b32.xlu0 %v3524_v8, %s3450_s0  ;;  %216 = vrot.lane.b32.xlu1 %v3505_v4, %s3452_s8 }
  0x4c   :  { %113 = vperm.xlu2 %3134, %v3537_v9   ;;  %3139 = vset.pattern.permute.xlu0 %v3453_v13 }
  0x4d   :  { %3138 = vset.pattern.permute.xlu1 %v3451_v12 }
  0x53   :  { %236 = vperm.xlu0 %3139, %v3492_v2   ;;  %136 = vrot.lane.b32.xlu1 %v3542_v10, %s3448_s29 }
  0x54   :  { %3137 = vset.pattern.permute.xlu2 %v3449_v11 }
  0x55   :  { %154 = vperm.xlu2 %3137, %v3519_v7  }
  0x5b   :  { %195 = vperm.xlu1 %3138, %v3497_v3   ;;  %212 = vrot.lane.b32.xlu0 %v3524_v8, %s3452_s8 }
  0x5c   :  { %v3577_v14 = vpop.permute.xlu2 %88  ;;  %3142 = vset.pattern.permute.xlu0 %v3454_v15 }
  0x5d   :  { %214 = vrot.lane.b32.xlu2 %v3510_v5, %s3452_s8 }
  0x63   :  { %253 = vrot.lane.b32.xlu1 %v3505_v4, %s3455_s9  ;;  %273 = vperm.xlu0 %3142, %v3492_v2  }
  0x64   :  { %v3585_v16 = vpop.permute.xlu2 %105  ;;  %3141 = vset.pattern.permute.xlu1 %v3453_v13 }
  0x65   :  { %150 = vperm.xlu2 %3137, %v3537_v9  }
  0x6b   :  { %173 = vrot.lane.b32.xlu1 %v3542_v10, %s3450_s0  ;;  %249 = vrot.lane.b32.xlu0 %v3524_v8, %s3455_s9 }
  0x6c   :  { %v3592_v17 = vpop.permute.xlu2 %84  ;;  %3145 = vset.pattern.permute.xlu0 %v3456_v18 }
  0x6d   :  { %3140 = vset.pattern.permute.xlu2 %v3451_v12 }
  0x6e   :  { %191 = vperm.xlu2 %3140, %v3519_v7  }
  0x73   :  { %232 = vperm.xlu1 %3141, %v3497_v3   ;;  %310 = vperm.xlu0 %3145, %v3492_v2  }
  0x74   :  { %v3597_v19 = vpop.permute.xlu2 %142 }
  0x75   :  { %v3599_v20 = vpop.permute.xlu0 %51  ;;  %v3601_v21 = vpop.permute.xlu1 %46 }
  0x76   :  { %251 = vrot.lane.b32.xlu2 %v3510_v5, %s3455_s9  ;;  %v57_v12 = vmul.f32 %v3599_v20, %v3505_v4  ;;  %v3738_v20 = vperm.slane %v25_v63, 4 }
  0x7b   :  { %290 = vrot.lane.b32.xlu1 %v3505_v4, %s3457_s10  ;;  %286 = vrot.lane.b32.xlu0 %v3524_v8, %s3457_s10 }
  0x7c   :  { %v3609_v22 = vpop.permute.xlu2 %80  ;;  %3144 = vset.pattern.permute.xlu1 %v3454_v15  ;;  %3148 = vset.pattern.permute.xlu0 %v3458_v23 }
  0x7d   :  { %v3612_v24 = vpop.permute.xlu0 %68  ;;  %v3614_v25 = vpop.permute.xlu1 %66 }
  0x7e   :  { %187 = vperm.xlu2 %3140, %v3537_v9  }
  0x83   :  { %210 = vrot.lane.b32.xlu1 %v3542_v10, %s3452_s8  ;;  %347 = vperm.xlu0 %3148, %v3492_v2   ;;  %v3712_v2 = vperm.slane %v25_v63, 0 }
  0x84   :  { %v3620_v26 = vpop.permute.xlu2 %140 }
  0x85   :  { %v3622_v27 = vpop.permute.xlu0 %41  ;;  %v3624_v28 = vpop.permute.xlu1 %64 }
  0x86   :  { %3143 = vset.pattern.permute.xlu2 %v3453_v13  ;;  %v74_v13 = vmul.f32 %v3712_v2, %v3612_v24  ;;  %v3740_v24 = vperm.slane %v25_v63, 5 }
  0x87   :  { %228 = vperm.xlu2 %3143, %v3519_v7  }
  0x8b   :  { %269 = vperm.xlu1 %3144, %v3497_v3   ;;  %343 = vperm.xlu0 %3148, %v3497_v3  }
  0x8c   :  { %v3633_v31 = vpop.permute.xlu2 %76 }
  0x8d   :  { %v3629_v29 = vpop.permute.xlu0 %103  ;;  %v3631_v30 = vpop.permute.xlu1 %125  ;;  %6155 = vst [vmem:[#allocation2_spill] sm:$0xff] %v3633_v31 }
  0x8f   :  { %288 = vrot.lane.b32.xlu2 %v3510_v5, %s3457_s10 }
  0x93   :  { %327 = vrot.lane.b32.xlu1 %v3505_v4, %s3459_s11  ;;  %339 = vperm.xlu0 %3148, %v3519_v7  }
  0x94   :  { %3147 = vset.pattern.permute.xlu1 %v3456_v18 }
  0x95   :  { %v3640_v32 = vpop.permute.xlu0 %36  ;;  %v3642_v33 = vpop.permute.xlu1 %62 }
  0x96   :  { %v3644_v34 = vpop.permute.xlu2 %117 }
  0x97   :  { %224 = vperm.xlu2 %3143, %v3537_v9  }
  0x9b   :  { %247 = vrot.lane.b32.xlu1 %v3542_v10, %s3455_s9 }
  0x9d   :  { %v3649_v35 = vpop.permute.xlu0 %101  ;;  %v3651_v36 = vpop.permute.xlu1 %121 }
  0x9e   :  { %v3653_v37 = vpop.permute.xlu2 %177 }
  0x9f   :  { %3146 = vset.pattern.permute.xlu2 %v3454_v15 }
  0xa0   :  { %265 = vperm.xlu2 %3146, %v3519_v7  }
  0xa3   :  { %306 = vperm.xlu1 %3147, %v3497_v3   ;;  %v24_v3 = vld [vmem:[%s6068_s2 + $0x18] sm:$0xff] }
  0xa4   :  { %v33_v11 = vadd.f32 %v24_v3, %v3505_v4 }
  0xa5   :  { %v180_v38 = vpop.permute.xlu1 %179  ;;  %v163_v40 = vpop.permute.xlu0 %162 }
  0xa6   :  { %v3658_v39 = vpop.permute.xlu2 %113 }
  0xa7   :  { %6156 = vst [vmem:[#allocation3_spill] sm:$0xff] %v3658_v39 }
  0xa8   :  { %325 = vrot.lane.b32.xlu2 %v3510_v5, %s3459_s11 }
  0xa9   :  { %3152 = vset.pattern.permute.xlu2 %v6073_v0 }
  0xab   :  { %3149 = vset.pattern.permute.xlu1 %v3454_v15 }
  0xac   :  { %261 = vperm.xlu1 %3149, %v3537_v9  }
  0xad   :  { %v3665_v41 = vpop.permute.xlu1 %99  ;;  %v3671_v43 = vpop.permute.xlu0 %138 }
  0xae   :  { %6157 = vst [vmem:[#allocation4_spill] sm:$0xff] %v3665_v41 }
  0xaf   :  { %v3667_v42 = vpop.permute.xlu2 %154 }
  0xb0   :  { %284 = vrot.lane.b32.xlu2 %v3542_v10, %s3457_s10 }
  0xb4   :  { %3150 = vset.pattern.permute.xlu1 %v3456_v18  ;;  %v3728_v18 = vperm.slane %v25_v63, 2 }
  0xb5   :  { %302 = vperm.xlu1 %3150, %v3519_v7   ;;  %v3674_v44 = vpop.permute.xlu1 %158  ;;  %v200_v46 = vpop.permute.xlu0 %199 }
  0xb6   :  { %v148_v3 = vmul.f32 %v3728_v18, %v3597_v19 }
  0xb7   :  { %v3676_v45 = vpop.permute.xlu2 %214 }
  0xb8   :  { %323 = vrot.lane.b32.xlu2 %v3524_v8, %s3459_s11  ;;  %v168_v39 = vmul.f32 %v163_v40, %v148_v3 }
  0xbd   :  { %298 = vperm.xlu1 %3150, %v3537_v9   ;;  %v217_v47 = vpop.permute.xlu1 %216  ;;  %v3685_v49 = vpop.permute.xlu0 %175 }
  0xbe   :  { %v222_v19 = vmul.f32 %v3738_v20, %v217_v47 }
  0xbf   :  { %v3683_v48 = vpop.permute.xlu2 %150 }
  0xc0   :  { %321 = vrot.lane.b32.xlu2 %v3542_v10, %s3459_s11  ;;  %6158 = vst [vmem:[#allocation5_spill] sm:$0xff] %v3683_v48  ;;  %v3733_v48 = vperm.slane %v25_v63, 3 }
  0xc5   :  { %3151 = vset.pattern.permute.xlu1 %v3458_v23  ;;  %v3687_v50 = vpop.permute.xlu1 %136  ;;  %v237_v53 = vpop.permute.xlu0 %236 }
  0xc6   :  { %6159 = vst [vmem:[#allocation6_spill] sm:$0xff] %v3687_v50  ;;  %335 = vperm.xlu1 %3151, %v3537_v9   ;;  %v3719_v9 = vperm.slane %v25_v63, 1  ;;  %v242_v31 = vmul.f32 %v237_v53, %v222_v19  ;;  %v56_v53 = vmul.f32 %v3601_v21, %v3510_v5  ;;  %v184_v21 = vmul.f32 %v3733_v48, %v3653_v37  ;;  %v22_v37 = vld [vmem:[%s6068_s2 + $0x8] sm:$0xff] }
  0xc8   :  { %v3690_v51 = vpop.permute.xlu2 %191  ;;  %v111_v23 = vmul.f32 %v3719_v9, %v3585_v16  ;;  %v185_v16 = vmul.f32 %v3733_v48, %v180_v38 }
  0xca   :  { %v131_v4 = vmul.f32 %v3631_v30, %v111_v23  ;;  %v205_v50 = vmul.f32 %v200_v46, %v185_v16 }
  0xcd   :  { %v3692_v52 = vpop.permute.xlu1 %195  ;;  %v3697_v56 = vpop.permute.xlu0 %212 }
  0xce   :  { %3153 = vset.pattern.permute.xlu1 %v6073_v0  ;;  %v61_v0 = vadd.f32 %v57_v12, %v33_v11  ;;  %v3745_v11 = vperm.slane %v25_v63, 6 }
  0xd0   :  { %v3695_v54 = vpop.permute.xlu2 %251 }
  0xd5   :  { %v254_v55 = vpop.permute.xlu1 %253  ;;  %v274_v59 = vpop.permute.xlu0 %273 }
  0xd6   :  { %v259_v30 = vmul.f32 %v3740_v24, %v254_v55 }
  0xd8   :  { %v3701_v58 = vpop.permute.xlu2 %187  ;;  %v279_v40 = vmul.f32 %v274_v59, %v259_v30  ;;  %v221_v30 = vmul.f32 %v3738_v20, %v3676_v45 }
  0xd9   :  { %6161 = vst [vmem:[#allocation8_spill] sm:$0xff] %v3701_v58  ;;  %v94_v58 = vmul.f32 %v3577_v14, %v74_v13 }
  0xdd   :  { %v3699_v57 = vpop.permute.xlu1 %173  ;;  %v3707_v62 = vpop.permute.xlu0 %249 }
  0xde   :  { %6160 = vst [vmem:[#allocation7_spill] sm:$0xff] %v3699_v57  ;;  %v98_v57 = vadd.f32 %v94_v58, %v61_v0  ;;  %v23_v0 = vld [vmem:[%s6068_s2 + $0x10] sm:$0xff]  ;;  %v3755_v58 = vperm.slane %v25_v63, 7 }
  0xdf   :  { %v32_v47 = vadd.f32 %v23_v0, %v3510_v5  ;;  %v258_v0 = vmul.f32 %v3740_v24, %v3695_v54  ;;  %v55_v54 = vmul.f32 %v3622_v27, %v3524_v8  ;;  %v183_v27 = vmul.f32 %v3733_v48, %v3685_v49 }
  0xe0   :  { %v135_v13 = vadd.f32 %v131_v4, %v98_v57  ;;  %v73_v57 = vmul.f32 %v3712_v2, %v3614_v25 }
  0xe1   :  { %v3705_v61 = vpop.permute.xlu2 %228 }
  0xe2   :  { %v172_v23 = vadd.f32 %v168_v39, %v135_v13  ;;  %v93_v63 = vmul.f32 %v3592_v17, %v73_v57 }
  0xe4   :  { %v209_v38 = vadd.f32 %v205_v50, %v172_v23 }
  0xe5   :  { %v3703_v60 = vpop.permute.xlu1 %232  ;;  %v311_v7 = vpop.permute.xlu0 %310 }
  0xe6   :  { %v246_v46 = vadd.f32 %v242_v31, %v209_v38  ;;  %v60_v31 = vadd.f32 %v56_v53, %v32_v47  ;;  %v241_v38 = vmul.f32 %v3703_v60, %v221_v30  ;;  %v72_v60 = vmul.f32 %v3712_v2, %v3624_v28 }
  0xe8   :  { %v283_v4 = vadd.f32 %v279_v40, %v246_v46  ;;  %v97_v5 = vadd.f32 %v93_v63, %v60_v31  ;;  %v146_v63 = vmul.f32 %v3728_v18, %v3671_v43  ;;  %v257_v43 = vmul.f32 %v3740_v24, %v3707_v62 }
  0xe9   :  { %v3717_v6 = vpop.permute.xlu2 %288 }
  0xea   :  { %v295_v45 = vmul.f32 %v3745_v11, %v3717_v6  ;;  %v92_v6 = vmul.f32 %v3609_v22, %v72_v60 }
  0xed   :  { %v291_v1 = vpop.permute.xlu1 %290 }
  0xee   :  { %v296_v41 = vmul.f32 %v3745_v11, %v291_v1  ;;  %v110_v1 = vmul.f32 %v3719_v9, %v3629_v29 }
  0xf0   :  { %v316_v3 = vmul.f32 %v311_v7, %v296_v41  ;;  %v147_v41 = vmul.f32 %v3728_v18, %v3620_v26  ;;  %v130_v7 = vmul.f32 %v3651_v36, %v110_v1  ;;  %v204_v26 = vmul.f32 %v3692_v52, %v184_v21 }
  0xf1   :  { %v3747_v14 = vpop.permute.xlu2 %224  ;;  %v31_v52 = vadd.f32 %v22_v37, %v3524_v8 }
  0xf2   :  { %v320_v25 = vadd.f32 %v316_v3, %v283_v4  ;;  %v167_v29 = vmul.f32 %v3674_v44, %v147_v41  ;;  %v134_v17 = vadd.f32 %v130_v7, %v97_v5  ;;  %v203_v41 = vmul.f32 %v3690_v51, %v183_v27 }
  0xf3   :  { %v71_v51 = vmul.f32 %v3712_v2, %v3642_v33  ;;  %v6166_v33 = vld [vmem:[#allocation2_spill] sm:$0xff] }
  0xf4   :  { %v171_v36 = vadd.f32 %v167_v29, %v134_v17 }
  0xf5   :  { %v3726_v15 = vpop.permute.xlu1 %210  ;;  %v91_v2 = vmul.f32 %v6166_v33, %v71_v51 }
  0xf6   :  { %6162 = vst [vmem:[#allocation9_spill] sm:$0xff] %v3726_v15  ;;  %v3742_v15 = vpop.permute.xlu0 %286  ;;  %v208_v44 = vadd.f32 %v204_v26, %v171_v36  ;;  %v6165_v26 = vld [vmem:[#allocation4_spill] sm:$0xff] }
  0xf7   :  { %v294_v62 = vmul.f32 %v3745_v11, %v3742_v15 }
  0xf8   :  { %v245_v3 = vadd.f32 %v241_v38, %v208_v44  ;;  %v6167_v38 = vld [vmem:[#allocation6_spill] sm:$0xff] }
  0xf9   :  { %v145_v15 = vmul.f32 %v3728_v18, %v6167_v38  ;;  %v374_v18 = vld [vmem:[%s6070_s3 + $0x20] sm:$0xff] }
  0xfa   :  { %v266_v59 = vpop.permute.xlu2 %265 }
  0xfd   :  { %v270_v12 = vpop.permute.xlu1 %269 }
  0xfe   :  { %v348_v39 = vpop.permute.xlu0 %347  ;;  %v278_v40 = vmul.f32 %v270_v12, %v258_v0  ;;  %v109_v12 = vmul.f32 %v3719_v9, %v3649_v35  ;;  %v166_v35 = vmul.f32 %v3667_v42, %v146_v63  ;;  %v277_v42 = vmul.f32 %v266_v59, %v257_v43  ;;  %v360_v43 = vld [vmem:[%s6071_s1 + $0x10] sm:$0xff] }
  0xff   :  { %v108_v59 = vmul.f32 %v3719_v9, %v6165_v26 }
 0x100   :  { %v129_v8 = vmul.f32 %v3644_v34, %v109_v12  ;;  %v21_v34 = vld [vmem:[%s6068_s2] sm:$0xff] }
 0x101   :  { %v30_v29 = vadd.f32 %v21_v34, %v3542_v10  ;;  %v371_v34 = vld [vmem:[%s6070_s3 + $0x8] sm:$0xff] }
 0x102   :  { %v326_v23 = vpop.permute.xlu2 %325 }
 0x103   :  { %v332_v57 = vmul.f32 %v3755_v58, %v326_v23 }
 0x105   :  { %v328_v55 = vpop.permute.xlu1 %327 }
 0x106   :  { %v333_v50 = vmul.f32 %v3755_v58, %v328_v55  ;;  %v344_v46 = vpop.permute.xlu0 %343  ;;  %v282_v55 = vadd.f32 %v278_v40, %v245_v3  ;;  %v6168_v40 = vld [vmem:[#allocation3_spill] sm:$0xff] }
 0x107   :  { %v352_v53 = vmul.f32 %v344_v46, %v332_v57  ;;  %v128_v57 = vmul.f32 %v6168_v40, %v108_v59  ;;  %v6169_v46 = vld [vmem:[#allocation7_spill] sm:$0xff] }
 0x108   :  { %v353_v16 = vmul.f32 %v348_v39, %v333_v50  ;;  %v59_v50 = vadd.f32 %v55_v54, %v31_v52  ;;  %v182_v3 = vmul.f32 %v3733_v48, %v6169_v46  ;;  %v6171_v52 = vld [vmem:[#allocation5_spill] sm:$0xff] }
 0x109   :  { %v165_v54 = vmul.f32 %v6171_v52, %v145_v15 }
 0x10a   :  { %v3769_v13 = vadd.f32 %v353_v16, %v320_v25  ;;  %v285_v4 = vpop.permute.xlu2 %284  ;;  %v96_v28 = vadd.f32 %v92_v6, %v59_v50  ;;  %v220_v25 = vmul.f32 %v3738_v20, %v3697_v56  ;;  %v54_v56 = vmul.f32 %v3640_v32, %v3542_v10 }
 0x10c   :  { %6163 = vst [vmem:[#allocation10_spill] sm:$0xff] %v3769_v13  ;;  %491 = vmatpush.msra.mxu0 %v3769_v13  ;;  %v133_v22 = vadd.f32 %v129_v8, %v96_v28  ;;  %v240_v7 = vmul.f32 %v3705_v61, %v220_v25  ;;  %v370_v61 = vld [vmem:[%s6070_s3] sm:$0xff]  ;;  %v58_v0 = vadd.f32 %v54_v56, %v30_v29  ;;  %v373_v25 = vld [vmem:[%s6070_s3 + $0x18] sm:$0xff]  ;;  %v364_v29 = vld [vmem:[%s6071_s1 + $0x30] sm:$0xff] }
 0x10d   :  { %v3775_v19 = vpop.permute.xlu1 %247  ;;  %384 = vperm.xlu2 %3152, %v370_v61   ;;  %v365_v56 = vld [vmem:[%s6071_s1 + $0x38] sm:$0xff] }
 0x10e   :  { %v170_v49 = vadd.f32 %v166_v35, %v133_v22  ;;  %v340_v23 = vpop.permute.xlu0 %339  ;;  %v95_v9 = vadd.f32 %v91_v2, %v58_v0  ;;  %v256_v50 = vmul.f32 %v3740_v24, %v3775_v19 }
 0x110   :  { %v207_v21 = vadd.f32 %v203_v41, %v170_v49  ;;  %v361_v49 = vld [vmem:[%s6071_s1 + $0x18] sm:$0xff] }
 0x112   :  { %v324_v5 = vpop.permute.xlu2 %323  ;;  %v244_v17 = vadd.f32 %v240_v7, %v207_v21  ;;  %v376_v7 = vld [vmem:[%s6070_s3 + $0x30] sm:$0xff]  ;;  %v377_v21 = vld [vmem:[%s6070_s3 + $0x38] sm:$0xff] }
 0x113   :  { %v331_v30 = vmul.f32 %v3755_v58, %v324_v5  ;;  %v362_v5 = vld [vmem:[%s6071_s1 + $0x20] sm:$0xff] }
 0x114   :  { %v281_v10 = vadd.f32 %v277_v42, %v244_v17  ;;  %v363_v42 = vld [vmem:[%s6071_s1 + $0x28] sm:$0xff] }
 0x115   :  { %v307_v47 = vpop.permute.xlu1 %306  ;;  %v351_v37 = vmul.f32 %v340_v23, %v331_v30  ;;  %404 = vperm.xlu2 %3152, %v374_v18  }
 0x116   :  { %v315_v39 = vmul.f32 %v307_v47, %v295_v45  ;;  %v6172_v47 = vld [vmem:[#allocation9_spill] sm:$0xff] }
 0x117   :  { %v219_v60 = vmul.f32 %v3738_v20, %v6172_v47  ;;  %v293_v20 = vmul.f32 %v3745_v11, %v285_v4  ;;  %v375_v4 = vld [vmem:[%s6070_s3 + $0x28] sm:$0xff] }
 0x118   :  { %v319_v1 = vadd.f32 %v315_v39, %v282_v55  ;;  %v132_v55 = vadd.f32 %v128_v57, %v95_v9  ;;  %v6173_v39 = vld [vmem:[#allocation8_spill] sm:$0xff] }
 0x11a   :  { %v3799_v16 = vadd.f32 %v352_v53, %v319_v1  ;;  %v202_v53 = vmul.f32 %v6173_v39, %v182_v3  ;;  %v169_v48 = vadd.f32 %v165_v54, %v132_v55  ;;  %v239_v1 = vmul.f32 %v3747_v14, %v219_v60  ;;  %v322_v6 = vpop.permute.xlu2 %321  ;;  %v372_v14 = vld [vmem:[%s6070_s3 + $0x10] sm:$0xff] }
 0x11b   :  { %v330_v35 = vmul.f32 %v3755_v58, %v322_v6  ;;  %394 = vperm.xlu1 %3153, %v372_v14   ;;  %v358_v58 = vld [vmem:[%s6071_s1] sm:$0xff] }
 0x11c   :  { %6164 = vst [vmem:[#allocation11_spill] sm:$0xff] %v3799_v16  ;;  %492 = vmatpush.msra.mxu0 %v3799_v16  ;;  %v206_v63 = vadd.f32 %v202_v53, %v169_v48 }
 0x11d   :  { %399 = vperm.xlu2 %3152, %v373_v25  }
 0x11e   :  { %v262_v31 = vpop.permute.xlu1 %261  ;;  %v243_v27 = vadd.f32 %v239_v1, %v206_v63 }
 0x11f   :  { %v276_v8 = vmul.f32 %v262_v31, %v256_v50  ;;  %v359_v31 = vld [vmem:[%s6071_s1 + $0x8] sm:$0xff] }
 0x121   :  { %v280_v22 = vadd.f32 %v276_v8, %v243_v27 }
 0x123   :  { %389 = vperm.xlu1 %3153, %v371_v34  }
 0x125   :  { %409 = vperm.xlu2 %3152, %v375_v4  }
 0x127   :  { %v303_v36 = vpop.permute.xlu1 %302 }
 0x128   :  { %v314_v32 = vmul.f32 %v303_v36, %v294_v62 }
 0x12a   :  { %v318_v44 = vadd.f32 %v314_v32, %v281_v10 }
 0x12b   :  { %414 = vperm.xlu1 %3153, %v376_v7   ;;  %v3461_v7 = vmov -1e+30  }
 0x12c   :  { %v3834_v45 = vadd.f32 %v351_v37, %v318_v44 }
 0x12e   :  { %6170 = vst [vmem:[#allocation4_spill] sm:$0xff] %v3834_v45  ;;  %493 = vmatpush.msra.mxu0 %v3834_v45 }
 0x12f   :  { %v299_v12 = vpop.permute.xlu1 %298 }
 0x130   :  { %v313_v28 = vmul.f32 %v299_v12, %v293_v20 }
 0x132   :  { %v317_v41 = vadd.f32 %v313_v28, %v280_v22  ;;  %v366_v28 = vld [vmem:[%s6071_s1 + $0x40] sm:$0xff]  ;;  %v367_v22 = vld [vmem:[%s6071_s1 + $0x48] sm:$0xff] }
 0x133   :  { %419 = vperm.xlu1 %3153, %v377_v21  }
 0x138   :  { %v336_v24 = vpop.permute.xlu1 %335 }
 0x139   :  { %v350_v19 = vmul.f32 %v336_v24, %v330_v35  ;;  %v6175_v35 = vmov 0  }
 0x13b   :  { %v3855_v11 = vadd.f32 %v350_v19, %v317_v41  ;;  %v368_v41 = vld [vmem:[%s6071_s1 + $0x50] sm:$0xff] }
 0x13d   :  { %6174 = vst [vmem:[#allocation2_spill] sm:$0xff] %v3855_v11  ;;  %494 = vmatpush.msra.mxu0 %v3855_v11 }
 0x13e   :  { %2968 = vmatmul.msk.f32.vlgmr.msra.gmra.mxu0 %vm442_vm0, %v358_v58 }
 0x146   :  { %2969 = vmatmul.msk.f32.gmra.mxu0 %vm442_vm0, %v359_v31  ;;  %v369_v31 = vld [vmem:[%s6071_s1 + $0x58] sm:$0xff] }
 0x14e   :  { %2970 = vmatmul.msk.f32.gmra.mxu0 %vm442_vm0, %v360_v43  ;;  %v565_v43 = vlaneseq }
 0x150   :  { %v3946_v34 = vand.u32 127, %v565_v43 }
 0x152   :  { %vm567_vm2 = vcmp.ge.s32.totalorder %v3946_v34, 64 }
 0x153   :  { %vm584_vm4 = vmxor %vm567_vm2, %vm3460_vm3 }
 0x154   :  { %vm576_vm5 = vmxor %vm3460_vm3, %vm567_vm2 }
 0x155   :  { %vm592_vm6 = vmxor %vm576_vm5, %vm3460_vm3 }
 0x156   :  { %2971 = vmatmul.msk.f32.gmra.mxu0 %vm442_vm0, %v361_v49 }
 0x15e   :  { %2972 = vmatmul.msk.f32.gmra.mxu0 %vm442_vm0, %v362_v5  ;;  %v3954_v5 = vsel %vm584_vm4, 0.0, %v3461_v7 }
 0x166   :  { %2973 = vmatmul.msk.f32.gmra.mxu0 %vm442_vm0, %v363_v42 }
 0x167   :  { %v385_v51 = vpop.permute.xlu2 %384 }
 0x16e   :  { %2974 = vmatmul.msk.f32.gmra.mxu0 %vm442_vm0, %v364_v29 }
 0x16f   :  { %v405_v32 = vpop.permute.xlu2 %404 }
 0x176   :  { %2975 = vmatmul.msk.f32.gmra.mxu0 %vm442_vm0, %v365_v56 }
 0x177   :  { %v400_v46 = vpop.permute.xlu2 %399 }
 0x17e   :  { %2976 = vmatmul.msk.f32.gmra.mxu0 %vm442_vm0, %v366_v28 }
 0x17f   :  { %v3904_v9 = vpop.permute.xlu2 %409 }
 0x186   :  { %2977 = vmatmul.msk.f32.gmra.mxu0 %vm442_vm0, %v367_v22 }
 0x18d   :  { %v395_v30 = vpop.permute.xlu1 %394 }
 0x18e   :  { %2978 = vmatmul.msk.f32.gmra.mxu0 %vm442_vm0, %v368_v41 }
 0x195   :  { %v390_v26 = vpop.permute.xlu1 %389 }
 0x196   :  { %2979 = vmatmul.msk.f32.gmra.mxu0 %vm442_vm0, %v369_v31 }
 0x19d   :  { %v415_v38 = vpop.permute.xlu1 %414 }
 0x1a5   :  { %v420_v44 = vpop.permute.xlu1 %419 }
 0x1bb   :  { %v496_v17 = vpop.f32.mrf.mxu0 }
 0x1bc   :  { %v497_v62 = vadd.f32 %v496_v17, %v385_v51 }
 0x1be   :  { %616 = vxpose.xlu0.b32.start.end [1/1] (short) %v497_v62, 128 }
 0x1c3   :  { %v499_v61 = vpop.f32.mrf.mxu0 }
 0x1c4   :  { %v500_v59 = vadd.f32 %v499_v61, %v390_v26 }
 0x1c6   :  { %762 = vxpose.xlu1.b32.start.end [1/1] (short) %v500_v59, 128 }
 0x1cb   :  { %v502_v23 = vpop.f32.mrf.mxu0 }
 0x1cc   :  { %v503_v36 = vadd.f32 %v502_v23, %v395_v30 }
 0x1ce   :  { %907 = vxpose.xlu2.b32.start.end [1/1] (short) %v503_v36, 128 }
 0x1d3   :  { %v505_v10 = vpop.f32.mrf.mxu0 }
 0x1d4   :  { %v506_v3 = vadd.f32 %v505_v10, %v400_v46 }
 0x1db   :  { %v508_v0 = vpop.f32.mrf.mxu0 }
 0x1dc   :  { %v509_v33 = vadd.f32 %v508_v0, %v405_v32 }
 0x1de   :  { %712 = vmatpush.msra.mxu1 %v509_v33  ;;  %3080 = vmatpush.msra.mxu2 %v509_v33 }
 0x1e3   :  { %v3902_v2 = vpop.f32.mrf.mxu0 }
 0x1e4   :  { %v512_v51 = vadd.f32 %v3902_v2, %v3904_v9 }
 0x1eb   :  { %v514_v15 = vpop.f32.mrf.mxu0 }
 0x1ec   :  { %v515_v37 = vadd.f32 %v514_v15, %v415_v38 }
 0x1ee   :  { %1002 = vmatpush.msra.mxu3 %v515_v37 }
 0x1f3   :  { %v517_v40 = vpop.f32.mrf.mxu0 }
 0x1f4   :  { %v518_v57 = vadd.f32 %v517_v40, %v420_v44 }
 0x1f6   :  { %1147 = vmatpush.msrb.mxu0 %v518_v57 }
 0x1fb   :  { %v4043_v34 = vpop.f32.mrf.mxu0 }
 0x1fc   :  { %6176 = vst [vmem:[#allocation6_spill] sm:$0xff] %v4043_v34 }
 0x23e   :  { %1052 = vxpose.xlu0.b32.start.end [1/1] (short) %v506_v3, 128 }
 0x262   :  { %v632_v52 = vpop.trf.xlu0 }
 0x263   :  { %2980 = vmatmul.msk.f32.vlgmr.msra.gmra.mxu1 %vm648_vm1, %v632_v52 }
 0x267   :  { %v923_v54 = vpop.trf.xlu2 }
 0x268   :  { %3012 = vmatmul.msk.f32.vlgmr.msra.gmra.mxu3 %vm648_vm1, %v923_v54 }
 0x26a   :  { %v633_v47 = vpop.trf.xlu0  ;;  %v778_v23 = vpop.trf.xlu1 }
 0x26b   :  { %2981 = vmatmul.msk.f32.gmra.mxu1 %vm648_vm1, %v633_v47 }
 0x26f   :  { %v924_v60 = vpop.trf.xlu2 }
 0x270   :  { %3013 = vmatmul.msk.f32.gmra.mxu3 %vm648_vm1, %v924_v60 }
 0x272   :  { %v634_v18 = vpop.trf.xlu0  ;;  %v779_v0 = vpop.trf.xlu1 }
 0x273   :  { %2982 = vmatmul.msk.f32.gmra.mxu1 %vm648_vm1, %v634_v18 }
 0x277   :  { %v925_v55 = vpop.trf.xlu2 }
 0x278   :  { %3014 = vmatmul.msk.f32.gmra.mxu3 %vm648_vm1, %v925_v55 }
 0x27a   :  { %v635_v39 = vpop.trf.xlu0  ;;  %v780_v15 = vpop.trf.xlu1 }
 0x27b   :  { %2983 = vmatmul.msk.f32.gmra.mxu1 %vm648_vm1, %v635_v39 }
 0x27f   :  { %v926_v53 = vpop.trf.xlu2 }
 0x280   :  { %3015 = vmatmul.msk.f32.gmra.mxu3 %vm648_vm1, %v926_v53 }
 0x282   :  { %v636_v12 = vpop.trf.xlu0  ;;  %v781_v57 = vpop.trf.xlu1 }
 0x283   :  { %2984 = vmatmul.msk.f32.gmra.mxu1 %vm648_vm1, %v636_v12 }
 0x287   :  { %v927_v48 = vpop.trf.xlu2 }
 0x288   :  { %3016 = vmatmul.msk.f32.gmra.mxu3 %vm648_vm1, %v927_v48 }
 0x28a   :  { %v637_v1 = vpop.trf.xlu0  ;;  %v782_v52 = vpop.trf.xlu1 }
 0x28b   :  { %2985 = vmatmul.msk.f32.gmra.mxu1 %vm648_vm1, %v637_v1 }
 0x28f   :  { %v928_v50 = vpop.trf.xlu2 }
 0x290   :  { %3017 = vmatmul.msk.f32.gmra.mxu3 %vm648_vm1, %v928_v50 }
 0x292   :  { %v638_v6 = vpop.trf.xlu0  ;;  %v783_v18 = vpop.trf.xlu1 }
 0x293   :  { %2986 = vmatmul.msk.f32.gmra.mxu1 %vm648_vm1, %v638_v6 }
 0x297   :  { %v929_v63 = vpop.trf.xlu2 }
 0x298   :  { %3018 = vmatmul.msk.f32.gmra.mxu3 %vm648_vm1, %v929_v63  ;;  %v4017_v63 = vsel %vm592_vm6, 0.0, %v3461_v7 }
 0x29a   :  { %v639_v20 = vpop.trf.xlu0  ;;  %v784_v12 = vpop.trf.xlu1 }
 0x29b   :  { %2987 = vmatmul.msk.f32.gmra.mxu1 %vm648_vm1, %v639_v20 }
 0x29f   :  { %v930_v8 = vpop.trf.xlu2 }
 0x2a0   :  { %3019 = vmatmul.msk.f32.gmra.mxu3 %vm648_vm1, %v930_v8 }
 0x2a2   :  { %v640_v27 = vpop.trf.xlu0  ;;  %v785_v6 = vpop.trf.xlu1 }
 0x2a3   :  { %2988 = vmatmul.msk.f32.gmra.mxu1 %vm648_vm1, %v640_v27 }
 0x2a5   :  { %3154 = vset.pattern.permute.xlu0 %v6175_v35 }
 0x2a7   :  { %v931_v25 = vpop.trf.xlu2 }
 0x2a8   :  { %3020 = vmatmul.msk.f32.gmra.mxu3 %vm648_vm1, %v931_v25 }
 0x2aa   :  { %v641_v14 = vpop.trf.xlu0  ;;  %v786_v35 = vpop.trf.xlu1 }
 0x2ab   :  { %2989 = vmatmul.msk.f32.gmra.mxu1 %vm648_vm1, %v641_v14 }
 0x2af   :  { %v932_v24 = vpop.trf.xlu2 }
 0x2b0   :  { %3021 = vmatmul.msk.f32.gmra.mxu3 %vm648_vm1, %v932_v24 }
 0x2b2   :  { %v642_v19 = vpop.trf.xlu0 }
 0x2b3   :  { %2990 = vmatmul.msk.f32.gmra.mxu1 %vm648_vm1, %v642_v19 }
 0x2b7   :  { %v933_v58 = vpop.trf.xlu2 }
 0x2b8   :  { %3022 = vmatmul.msk.f32.gmra.mxu3 %vm648_vm1, %v933_v58 }
 0x2ba   :  { %v643_v4 = vpop.trf.xlu0 }
 0x2bb   :  { %2991 = vmatmul.msk.f32.gmra.mxu1 %vm648_vm1, %v643_v4 }
 0x2bf   :  { %v934_v49 = vpop.trf.xlu2 }
 0x2c0   :  { %3023 = vmatmul.msk.f32.gmra.mxu3 %vm648_vm1, %v934_v49 }
 0x2c2   :  { %v644_v21 = vpop.trf.xlu0 }
 0x2c3   :  { %2992 = vmatmul.msk.f32.gmra.mxu1 %vm648_vm1, %v644_v21 }
 0x2c7   :  { %v935_v42 = vpop.trf.xlu2 }
 0x2c8   :  { %3024 = vmatmul.msk.f32.gmra.mxu3 %vm648_vm1, %v935_v42 }
 0x2ca   :  { %v645_v29 = vpop.trf.xlu0 }
 0x2cb   :  { %2993 = vmatmul.msk.f32.gmra.mxu1 %vm648_vm1, %v645_v29  ;;  %v787_v29 = vpop.trf.xlu1 }
 0x2cf   :  { %v936_v56 = vpop.trf.xlu2 }
 0x2d0   :  { %3025 = vmatmul.msk.f32.gmra.mxu3 %vm648_vm1, %v936_v56 }
 0x2d2   :  { %v646_v17 = vpop.trf.xlu0 }
 0x2d3   :  { %2994 = vmatmul.msk.f32.vlgmr.msra.gmra.mxu2 %vm648_vm1, %v646_v17  ;;  %v4058_v17 = vpop.f32.mrf.mxu0 }
 0x2d4   :  { %857 = vmatpush.msra.mxu2 %v512_v51  ;;  %6177 = vst [vmem:[#allocation3_spill] sm:$0xff] %v4058_v17 }
 0x2d7   :  { %v937_v62 = vpop.trf.xlu2 }
 0x2d8   :  { %3026 = vmatmul.msk.f32.gmra.mxu3 %vm648_vm1, %v937_v62 }
 0x2da   :  { %v647_v30 = vpop.trf.xlu0 }
 0x2db   :  { %2995 = vmatmul.msk.f32.gmra.mxu2 %vm648_vm1, %v647_v30 }
 0x2df   :  { %v938_v61 = vpop.trf.xlu2 }
 0x2e0   :  { %v3965_v26 = vpop.f32.mrf.mxu1  ;;  %3027 = vmatmul.msk.f32.gmra.mxu3 %vm648_vm1, %v938_v61 }
 0x2e2   :  { %v1068_v59 = vpop.trf.xlu0 }
 0x2e3   :  { %3028 = vmatmul.msk.f32.vlgmr.msrb.gmra.mxu0 %vm648_vm1, %v1068_v59  ;;  %2996 = vmatmul.msk.f32.vlgmr.msra.gmra.mxu2 %vm648_vm1, %v778_v23  ;;  %v788_v59 = vpop.trf.xlu1 }
 0x2e8   :  { %v3970_v36 = vpop.f32.mrf.mxu1 }
 0x2ea   :  { %v1069_v10 = vpop.trf.xlu0 }
 0x2eb   :  { %v3972_v32 = vpop.f32.mrf.mxu3  ;;  %3029 = vmatmul.msk.f32.gmra.mxu0 %vm648_vm1, %v1069_v10  ;;  %2997 = vmatmul.msk.f32.gmra.mxu2 %vm648_vm1, %v779_v0 }
 0x2f0   :  { %v3976_v33 = vpop.f32.mrf.mxu1 }
 0x2f2   :  { %v1070_v2 = vpop.trf.xlu0 }
 0x2f3   :  { %v3978_v38 = vpop.f32.mrf.mxu3  ;;  %3030 = vmatmul.msk.f32.gmra.mxu0 %vm648_vm1, %v1070_v2  ;;  %2998 = vmatmul.msk.f32.gmra.mxu2 %vm648_vm1, %v780_v15 }
 0x2f8   :  { %v3982_v37 = vpop.f32.mrf.mxu1 }
 0x2fa   :  { %v1071_v44 = vpop.trf.xlu0 }
 0x2fb   :  { %v3984_v40 = vpop.f32.mrf.mxu3  ;;  %3031 = vmatmul.msk.f32.gmra.mxu0 %vm648_vm1, %v1071_v44  ;;  %2999 = vmatmul.msk.f32.gmra.mxu2 %vm648_vm1, %v781_v57  ;;  %v4075_v44 = vpop.f32.mrf.mxu0 }
 0x2fc   :  { %6178 = vst [vmem:[#allocation7_spill] sm:$0xff] %v4075_v44  ;;  %v789_v57 = vpop.trf.xlu1 }
 0x300   :  { %v3988_v46 = vpop.f32.mrf.mxu1 }
 0x302   :  { %v1072_v3 = vpop.trf.xlu0 }
 0x303   :  { %v3990_v9 = vpop.f32.mrf.mxu3  ;;  %3032 = vmatmul.msk.f32.gmra.mxu0 %vm648_vm1, %v1072_v3  ;;  %3000 = vmatmul.msk.f32.gmra.mxu2 %vm648_vm1, %v782_v52 }
 0x308   :  { %v3994_v54 = vpop.f32.mrf.mxu1 }
 0x30a   :  { %v1073_v47 = vpop.trf.xlu0 }
 0x30b   :  { %v3996_v60 = vpop.f32.mrf.mxu3  ;;  %3033 = vmatmul.msk.f32.gmra.mxu0 %vm648_vm1, %v1073_v47  ;;  %3001 = vmatmul.msk.f32.gmra.mxu2 %vm648_vm1, %v783_v18  ;;  %v790_v47 = vpop.trf.xlu1 }
 0x310   :  { %v4000_v55 = vpop.f32.mrf.mxu1 }
 0x312   :  { %v1074_v39 = vpop.trf.xlu0 }
 0x313   :  { %v4002_v53 = vpop.f32.mrf.mxu3  ;;  %3034 = vmatmul.msk.f32.gmra.mxu0 %vm648_vm1, %v1074_v39  ;;  %3002 = vmatmul.msk.f32.gmra.mxu2 %vm648_vm1, %v784_v12  ;;  %v4083_v39 = vpop.f32.mrf.mxu0 }
 0x314   :  { %6179 = vst [vmem:[#allocation5_spill] sm:$0xff] %v4083_v39 }
 0x318   :  { %v4006_v48 = vpop.f32.mrf.mxu1 }
 0x31a   :  { %v1075_v1 = vpop.trf.xlu0 }
 0x31b   :  { %v4011_v50 = vpop.f32.mrf.mxu3  ;;  %3035 = vmatmul.msk.f32.gmra.mxu0 %vm648_vm1, %v1075_v1  ;;  %3003 = vmatmul.msk.f32.gmra.mxu2 %vm648_vm1, %v785_v6  ;;  %v791_v6 = vpop.trf.xlu1 }
 0x320   :  { %v738_v20 = vpop.f32.mrf.mxu1 }
 0x321   :  { %v4020_v8 = vadd.f32 %v738_v20, %v4017_v63 }
 0x322   :  { %v1076_v27 = vpop.trf.xlu0 }
 0x323   :  { %v4022_v28 = vpop.f32.mrf.mxu3  ;;  %1213 = vmax.xlane.f32.xlu1 %v4020_v8  ;;  %3036 = vmatmul.msk.f32.gmra.mxu0 %vm648_vm1, %v1076_v27 }
 0x324   :  { %3004 = vmatmul.msk.f32.gmra.mxu2 %vm648_vm1, %v786_v35  ;;  %v4149_v11 = vadd.f32 %v4022_v28, %v3954_v5 }
 0x328   :  { %v741_v25 = vpop.f32.mrf.mxu1 }
 0x329   :  { %v4028_v14 = vadd.f32 %v741_v25, %v4017_v63 }
 0x32a   :  { %v1077_v22 = vpop.trf.xlu0 }
 0x32b   :  { %v4030_v24 = vpop.f32.mrf.mxu3  ;;  %1215 = vmax.xlane.f32.xlu1 %v4028_v14  ;;  %3037 = vmatmul.msk.f32.gmra.mxu0 %vm648_vm1, %v1077_v22 }
 0x32c   :  { %3005 = vmatmul.msk.f32.gmra.mxu2 %vm648_vm1, %v787_v29 }
 0x330   :  { %v744_v19 = vpop.f32.mrf.mxu1 }
 0x331   :  { %v4035_v41 = vadd.f32 %v744_v19, %v4017_v63  ;;  %v792_v19 = vpop.trf.xlu1 }
 0x332   :  { %v1078_v58 = vpop.trf.xlu0 }
 0x333   :  { %v1031_v4 = vpop.f32.mrf.mxu3  ;;  %1217 = vmax.xlane.f32.xlu1 %v4035_v41  ;;  %3038 = vmatmul.msk.f32.gmra.mxu0 %vm648_vm1, %v1078_v58 }
 0x334   :  { %v4040_v31 = vadd.f32 %v1031_v4, %v4017_v63  ;;  %3006 = vmatmul.msk.f32.gmra.mxu2 %vm648_vm1, %v788_v59 }
 0x336   :  { %1279 = vmax.xlane.f32.xlu2 %v4040_v31 }
 0x338   :  { %v747_v43 = vpop.f32.mrf.mxu1 }
 0x339   :  { %v4046_v49 = vadd.f32 %v747_v43, %v4017_v63  ;;  %v4106_v43 = vadd.f32 %v4006_v48, %v3954_v5 }
 0x33a   :  { %v1079_v7 = vpop.trf.xlu0 }
 0x33b   :  { %v1034_v21 = vpop.f32.mrf.mxu3  ;;  %1219 = vmax.xlane.f32.xlu1 %v4046_v49  ;;  %3039 = vmatmul.msk.f32.gmra.mxu0 %vm648_vm1, %v1079_v7  ;;  %v793_v7 = vpop.trf.xlu1 }
 0x33c   :  { %v4051_v42 = vadd.f32 %v1034_v21, %v4017_v63  ;;  %3007 = vmatmul.msk.f32.gmra.mxu2 %vm648_vm1, %v789_v57 }
 0x33e   :  { %1281 = vmax.xlane.f32.xlu2 %v4051_v42 }
 0x340   :  { %v750_v56 = vpop.f32.mrf.mxu1 }
 0x341   :  { %v4056_v51 = vadd.f32 %v750_v56, %v4017_v63 }
 0x342   :  { %v1080_v62 = vpop.trf.xlu0 }
 0x343   :  { %v1037_v30 = vpop.f32.mrf.mxu3  ;;  %1221 = vmax.xlane.f32.xlu1 %v4056_v51  ;;  %3040 = vmatmul.msk.f32.gmra.mxu0 %vm648_vm1, %v1080_v62 }
 0x344   :  { %v4063_v61 = vadd.f32 %v1037_v30, %v4017_v63  ;;  %3008 = vmatmul.msk.f32.gmra.mxu2 %vm648_vm1, %v790_v47 }
 0x346   :  { %1283 = vmax.xlane.f32.xlu2 %v4063_v61 }
 0x348   :  { %v753_v23 = vpop.f32.mrf.mxu1 }
 0x349   :  { %v4068_v10 = vadd.f32 %v753_v23, %v4017_v63 }
 0x34a   :  { %v1081_v0 = vpop.trf.xlu0 }
 0x34b   :  { %v1040_v2 = vpop.f32.mrf.mxu3  ;;  %1223 = vmax.xlane.f32.xlu1 %v4068_v10  ;;  %3041 = vmatmul.msk.f32.gmra.mxu0 %vm648_vm1, %v1081_v0 }
 0x34c   :  { %v4073_v15 = vadd.f32 %v1040_v2, %v4017_v63  ;;  %3009 = vmatmul.msk.f32.gmra.mxu2 %vm648_vm1, %v791_v6  ;;  %v4134_v6 = vadd.f32 %v4011_v50, %v3954_v5 }
 0x34e   :  { %1285 = vmax.xlane.f32.xlu2 %v4073_v15  ;;  %6181 = vst [vmem:[#allocation8_spill] sm:$0xff] %v4134_v6 }
 0x352   :  { %v1082_v3 = vpop.trf.xlu0 }
 0x353   :  { %v1043_v52 = vpop.f32.mrf.mxu3  ;;  %3042 = vmatmul.msk.f32.gmra.mxu0 %vm648_vm1, %v1082_v3 }
 0x354   :  { %v4097_v58 = vadd.f32 %v1043_v52, %v4017_v63  ;;  %3010 = vmatmul.msk.f32.gmra.mxu2 %vm648_vm1, %v792_v19 }
 0x356   :  { %v4081_v18 = vpop.f32.mrf.mxu2 }
 0x357   :  { %v4182_v39 = vadd.f32 %v4081_v18, %v4017_v63 }
 0x35a   :  { %v1083_v12 = vpop.trf.xlu0 }
 0x35b   :  { %v1046_v1 = vpop.f32.mrf.mxu3  ;;  %3043 = vmatmul.msk.f32.gmra.mxu0 %vm648_vm1, %v1083_v12 }
 0x35c   :  { %v4109_v21 = vadd.f32 %v1046_v1, %v4017_v63  ;;  %3011 = vmatmul.msk.f32.gmra.mxu2 %vm648_vm1, %v793_v7 }
 0x35e   :  { %v759_v20 = vpop.f32.mrf.mxu2 }
 0x35f   :  { %v4088_v27 = vadd.f32 %v759_v20, %v4017_v63 }
 0x360   :  { %v4090_v35 = vpop.f32.mrf.mxu0 }
 0x361   :  { %1227 = vmax.xlane.f32.xlu2 %v4088_v27 }
 0x363   :  { %v1049_v25 = vpop.f32.mrf.mxu3 }
 0x364   :  { %v4094_v22 = vadd.f32 %v1049_v25, %v4017_v63 }
 0x366   :  { %1291 = vmax.xlane.f32.xlu0 %v4094_v22  ;;  %v4116_v56 = vpop.f32.mrf.mxu2 }
 0x368   :  { %v4101_v4 = vpop.f32.mrf.mxu0 }
 0x369   :  { %1287 = vmax.xlane.f32.xlu2 %v4097_v58 }
 0x36e   :  { %1211 = vmax.xlane.f32.xlu0 %v4106_v43  ;;  %v4120_v30 = vpop.f32.mrf.mxu2 }
 0x370   :  { %v4113_v29 = vpop.f32.mrf.mxu0 }
 0x371   :  { %1289 = vmax.xlane.f32.xlu2 %v4109_v21 }
 0x376   :  { %v4122_v23 = vpop.f32.mrf.mxu2 }
 0x378   :  { %v4118_v62 = vpop.f32.mrf.mxu0 }
 0x37e   :  { %v868_v2 = vpop.f32.mrf.mxu2 }
 0x380   :  { %v1161_v48 = vpop.f32.mrf.mxu0 }
 0x386   :  { %v4126_v3 = vpop.f32.mrf.mxu2 }
 0x388   :  { %v1164_v59 = vpop.f32.mrf.mxu0 }
 0x389   :  { %v4175_v13 = vadd.f32 %v1164_v59, %v3954_v5 }
 0x38b   :  { %6184 = vst [vmem:[#allocation14_spill] sm:$0xff] %v4175_v13 }
 0x38e   :  { %v874_v12 = vpop.f32.mrf.mxu2 }
 0x390   :  { %v1167_v0 = vpop.f32.mrf.mxu0 }
 0x396   :  { %v877_v7 = vpop.f32.mrf.mxu2 }
 0x397   :  { %v4190_v34 = vadd.f32 %v877_v7, %v3954_v5 }
 0x398   :  { %v4124_v57 = vpop.f32.mrf.mxu0 }
 0x3a0   :  { %v1173_v52 = vpop.f32.mrf.mxu0 }
 0x3a1   :  { %v4129_v47 = vadd.f32 %v1173_v52, %v4017_v63  ;;  %v4145_v52 = vadd.f32 %v3988_v46, %v3954_v5  ;;  %v4162_v46 = vadd.f32 %v3994_v54, %v3954_v5  ;;  %v4178_v54 = vadd.f32 %v1167_v0, %v3954_v5 }
 0x3a3   :  { %6180 = vst [vmem:[#allocation9_spill] sm:$0xff] %v4129_v47  ;;  %1309 = vmax.xlane.f32.xlu0 %v4129_v47 }
 0x3a4   :  { %6182 = vst [vmem:[#allocation12_spill] sm:$0xff] %v4145_v52 }
 0x3a5   :  { %6185 = vst [vmem:[#allocation15_spill] sm:$0xff] %v4178_v54 }
 0x3a8   :  { %v1176_v1 = vpop.f32.mrf.mxu0 }
 0x3a9   :  { %v4137_v20 = vadd.f32 %v1176_v1, %v4017_v63  ;;  %v4141_v25 = vpop.xlane.xlu2 %1279  ;;  %v4158_v1 = vadd.f32 %v874_v12, %v3954_v5 }
 0x3ab   :  { %1273 = vmax.xlane.f32.xlu0 %v4134_v6  ;;  %1311 = vmax.xlane.f32.xlu2 %v4137_v20  ;;  %6183 = vst [vmem:[#allocation13_spill] sm:$0xff] %v4158_v1 }
 0x3b0   :  { %v1179_v19 = vpop.f32.mrf.mxu0 }
 0x3b1   :  { %v4152_v50 = vadd.f32 %v1179_v19, %v4017_v63  ;;  %v4164_v16 = vpop.xlane.xlu2 %1281  ;;  %v4169_v19 = vpop.f32.mrf.mxu2 }
 0x3b3   :  { %1205 = vmax.xlane.f32.xlu0 %v4145_v52  ;;  %1275 = vmax.xlane.f32.xlu2 %v4149_v11 }
 0x3b4   :  { %1313 = vmax.xlane.f32.xlu1 %v4152_v50 }
 0x3b8   :  { %v1182_v45 = vpop.f32.mrf.mxu0 }
 0x3b9   :  { %v4167_v28 = vadd.f32 %v1182_v45, %v4017_v63  ;;  %v4184_v45 = vpop.xlane.xlu2 %1283  ;;  %v883_v17 = vpop.f32.mrf.mxu2 }
 0x3ba   :  { %v4193_v59 = vadd.f32 %v883_v17, %v4017_v63  ;;  %v4210_v17 = vadd.f32 %v3976_v33, %v3954_v5 }
 0x3bb   :  { %1239 = vmax.xlane.f32.xlu0 %v4158_v1  ;;  %1207 = vmax.xlane.f32.xlu2 %v4162_v46 }
 0x3bc   :  { %1315 = vmax.xlane.f32.xlu1 %v4167_v28  ;;  %6186 = vst [vmem:[#allocation16_spill] sm:$0xff] %v4193_v59 }
 0x3bd   :  { %6187 = vst [vmem:[#allocation17_spill] sm:$0xff] %v4210_v17 }
 0x3c0   :  { %v1185_v12 = vpop.f32.mrf.mxu0 }
 0x3c1   :  { %v4196_v0 = vadd.f32 %v1185_v12, %v4017_v63  ;;  %v4201_v44 = vpop.xlane.xlu2 %1285  ;;  %v4214_v12 = vadd.f32 %v3996_v60, %v3954_v5  ;;  %v4230_v60 = vadd.f32 %v868_v2, %v3954_v5  ;;  %v4246_v2 = vadd.f32 %v4118_v62, %v3954_v5 }
 0x3c2   :  { %v4263_v62 = vadd.f32 %v4030_v24, %v4017_v63  ;;  %v4280_v24 = vadd.f32 %v4000_v55, %v3954_v5 }
 0x3c3   :  { %1303 = vmax.xlane.f32.xlu0 %v4175_v13  ;;  %1305 = vmax.xlane.f32.xlu2 %v4178_v54  ;;  %v4203_v13 = vpop.xlane.xlu1 %1213  ;;  %6188 = vst [vmem:[#allocation18_spill] sm:$0xff] %v4214_v12  ;;  %v4225_v54 = vadd.f32 %v1161_v48, %v3954_v5  ;;  %v4242_v48 = vadd.f32 %v3970_v36, %v3954_v5 }
 0x3c4   :  { %1225 = vmax.xlane.f32.xlu1 %v4182_v39  ;;  %6190 = vst [vmem:[#allocation20_spill] sm:$0xff] %v4230_v60  ;;  %v4259_v36 = vadd.f32 %v3978_v38, %v3954_v5 }
 0x3c5   :  { %6189 = vst [vmem:[#allocation19_spill] sm:$0xff] %v4225_v54 }
 0x3c6   :  { %6191 = vst [vmem:[#allocation21_spill] sm:$0xff] %v4242_v48 }
 0x3c7   :  { %6192 = vst [vmem:[#allocation22_spill] sm:$0xff] %v4246_v2 }
 0x3c8   :  { %v1188_v18 = vpop.f32.mrf.mxu0  ;;  %6194 = vst [vmem:[#allocation24_spill] sm:$0xff] %v4259_v36 }
 0x3c9   :  { %v4206_v7 = vadd.f32 %v1188_v18, %v4017_v63 }
 0x3cb   :  { %1245 = vmax.xlane.f32.xlu0 %v4193_v59  ;;  %1241 = vmax.xlane.f32.xlu2 %v4190_v34  ;;  %v4227_v33 = vpop.xlane.xlu1 %1215  ;;  %v4276_v59 = vadd.f32 %v4120_v30, %v3954_v5  ;;  %v4294_v30 = vadd.f32 %v4124_v57, %v3954_v5 }
 0x3cc   :  { %1317 = vmax.xlane.f32.xlu1 %v4196_v0 }
 0x3cd   :  { %6195 = vst [vmem:[#allocation25_spill] sm:$0xff] %v4276_v59 }
 0x3d0   :  { %v1191_v1 = vpop.f32.mrf.mxu0 }
 0x3d1   :  { %v4222_v18 = vadd.f32 %v1191_v1, %v4017_v63 }
 0x3d3   :  { %1201 = vmax.xlane.f32.xlu0 %v4210_v17  ;;  %1269 = vmax.xlane.f32.xlu2 %v4214_v12  ;;  %v4248_v6 = vpop.xlane.xlu1 %1217 }
 0x3d4   :  { %1319 = vmax.xlane.f32.xlu1 %v4206_v7  ;;  %v4219_v52 = vpop.xlane.xlu2 %1227 }
 0x3d8   :  { %v1194_v17 = vpop.f32.mrf.mxu0 }
 0x3d9   :  { %v4238_v1 = vadd.f32 %v1194_v17, %v4017_v63  ;;  %v4255_v17 = vadd.f32 %v3965_v26, %v3954_v5 }
 0x3db   :  { %1235 = vmax.xlane.f32.xlu0 %v4230_v60  ;;  %1301 = vmax.xlane.f32.xlu2 %v4225_v54  ;;  %v886_v60 = vpop.f32.mrf.mxu2  ;;  %6193 = vst [vmem:[#allocation23_spill] sm:$0xff] %v4255_v17 }
 0x3dc   :  { %1321 = vmax.xlane.f32.xlu1 %v4222_v18  ;;  %v4235_v12 = vpop.xlane.xlu2 %1287  ;;  %v4272_v26 = vadd.f32 %v886_v60, %v4017_v63 }
 0x3e3   :  { %1199 = vmax.xlane.f32.xlu0 %v4242_v48  ;;  %1299 = vmax.xlane.f32.xlu2 %v4246_v2  ;;  %v4269_v48 = vpop.xlane.xlu1 %1219  ;;  %v889_v47 = vpop.f32.mrf.mxu2 }
 0x3e4   :  { %1323 = vmax.xlane.f32.xlu1 %v4238_v1  ;;  %v1290_v54 = vpop.xlane.xlu2 %1289 }
 0x3e5   :  { %v1371_v2 = vsub.f32 %v4109_v21, %v1290_v54  ;;  %v4288_v54 = vadd.f32 %v889_v47, %v4017_v63  ;;  %v4304_v47 = vadd.f32 %v4002_v53, %v3954_v5 }
 0x3e7   :  { %v1481_v38 = vmul.f32 1.442695, %v1371_v2 }
 0x3e9   :  { %3155 = vpow2.f32 %v1481_v38 }
 0x3eb   :  { %1263 = vmax.xlane.f32.xlu0 %v4259_v36  ;;  %1197 = vmax.xlane.f32.xlu2 %v4255_v17  ;;  %v4285_v21 = vpop.xlane.xlu1 %1221  ;;  %v892_v55 = vpop.f32.mrf.mxu2 }
 0x3ec   :  { %1277 = vmax.xlane.f32.xlu1 %v4263_v62  ;;  %v4300_v2 = vadd.f32 %v892_v55, %v4017_v63  ;;  %v4314_v55 = vadd.f32 %v4169_v19, %v3954_v5  ;;  %v4331_v19 = vadd.f32 %v4126_v3, %v3954_v5  ;;  %v1340_v3 = vsub.f32 %v4088_v27, %v4219_v52 }
 0x3ed   :  { %v1370_v27 = vsub.f32 %v4097_v58, %v4235_v12 }
 0x3ef   :  { %v4290_v60 = vpop.eup %3155 }
 0x3f0   :  { %6196 = vst [vmem:[#allocation26_spill] sm:$0xff] %v4290_v60 }
 0x3f3   :  { %1231 = vmax.xlane.f32.xlu0 %v4276_v59  ;;  %1247 = vmax.xlane.f32.xlu2 %v4272_v26  ;;  %v1224_v38 = vpop.xlane.xlu1 %1223  ;;  %v895_v36 = vpop.f32.mrf.mxu2 }
 0x3f4   :  { %1209 = vmax.xlane.f32.xlu1 %v4280_v24  ;;  %v1338_v57 = vsub.f32 %v4068_v10, %v1224_v38  ;;  %v4310_v59 = vadd.f32 %v895_v36, %v4017_v63  ;;  %v4322_v10 = vadd.f32 %v3982_v37, %v3954_v5  ;;  %v4339_v37 = vadd.f32 %v4101_v4, %v3954_v5 }
 0x3f5   :  { %v1419_v4 = vmul.f32 1.442695, %v1340_v3  ;;  %v4372_v3 = vadd.f32 %v4122_v23, %v3954_v5 }
 0x3f6   :  { %6197 = vst [vmem:[#allocation27_spill] sm:$0xff] %v4310_v59 }
 0x3f7   :  { %6200 = vst [vmem:[#allocation30_spill] sm:$0xff] %v4339_v37 }
 0x3f8   :  { %6205 = vst [vmem:[#allocation35_spill] sm:$0xff] %v4372_v3 }
 0x3fb   :  { %1609 = vadd.xlane.f32.xlu0 %v4290_v60  ;;  %1249 = vmax.xlane.f32.xlu2 %v4288_v54  ;;  %v1415_v60 = vmul.f32 1.442695, %v1338_v57  ;;  %v898_v36 = vpop.f32.mrf.mxu2  ;;  %v4343_v57 = vadd.f32 %v3990_v9, %v3954_v5  ;;  %v4358_v9 = vadd.f32 %v3984_v40, %v3954_v5 }
 0x3fc   :  { %1307 = vmax.xlane.f32.xlu1 %v4294_v30  ;;  %v4327_v38 = vadd.f32 %v898_v36, %v4017_v63 }
 0x3fd   :  { %3157 = vpow2.f32 %v1415_v60  ;;  %6201 = vst [vmem:[#allocation31_spill] sm:$0xff] %v4343_v57 }
 0x3fe   :  { %6199 = vst [vmem:[#allocation29_spill] sm:$0xff] %v4327_v38  ;;  %3159 = vpow2.f32 %v1419_v4  ;;  %v1292_v4 = vpop.xlane.xlu0 %1291 }
 0x3ff   :  { %6203 = vst [vmem:[#allocation33_spill] sm:$0xff] %v4358_v9  ;;  %v1372_v23 = vsub.f32 %v4094_v22, %v1292_v4  ;;  %v1336_v22 = vsub.f32 %v4046_v49, %v4269_v48 }
 0x403   :  { %1251 = vmax.xlane.f32.xlu2 %v4300_v2  ;;  %v4318_v53 = vpop.eup %3157  ;;  %v901_v36 = vpop.f32.mrf.mxu2 }
 0x404   :  { %1271 = vmax.xlane.f32.xlu1 %v4304_v47  ;;  %6198 = vst [vmem:[#allocation28_spill] sm:$0xff] %v4318_v53 }
 0x406   :  { %v4403_v4 = vpop.xlane.xlu0 %1211 }
 0x40b   :  { %1253 = vmax.xlane.f32.xlu2 %v4310_v59 }
 0x40c   :  { %1243 = vmax.xlane.f32.xlu1 %v4314_v55 }
 0x413   :  { %1543 = vadd.xlane.f32.xlu2 %v4318_v53 }
 0x414   :  { %1203 = vmax.xlane.f32.xlu1 %v4322_v10 }
 0x41b   :  { %1255 = vmax.xlane.f32.xlu2 %v4327_v38  ;;  %v4354_v38 = vadd.f32 %v901_v36, %v4017_v63  ;;  %v4368_v36 = vpop.eup %3159 }
 0x41c   :  { %1237 = vmax.xlane.f32.xlu1 %v4331_v19  ;;  %6204 = vst [vmem:[#allocation34_spill] sm:$0xff] %v4368_v36 }
 0x41d   :  { %6202 = vst [vmem:[#allocation32_spill] sm:$0xff] %v4354_v38 }
 0x41e   :  { %v4335_v60 = vpop.xlane.xlu2 %1311 }
 0x423   :  { %1295 = vmax.xlane.f32.xlu2 %v4339_v37 }
 0x424   :  { %1267 = vmax.xlane.f32.xlu1 %v4343_v57  ;;  %v1479_v57 = vmul.f32 1.442695, %v1370_v27  ;;  %v4383_v27 = vadd.f32 %v4113_v29, %v3954_v5  ;;  %v1483_v29 = vmul.f32 1.442695, %v1372_v23  ;;  %v4413_v23 = vpop.xlane.xlu0 %1309 }
 0x426   :  { %v4349_v17 = vpop.xlane.xlu2 %1275  ;;  %3161 = vpow2.f32 %v1479_v57  ;;  %6207 = vst [vmem:[#allocation37_spill] sm:$0xff] %v4383_v27  ;;  %v904_v57 = vpop.f32.mrf.mxu2 }
 0x427   :  { %v4351_v53 = vpop.xlane.xlu1 %1313 }
 0x42b   :  { %1257 = vmax.xlane.f32.xlu2 %v4354_v38 }
 0x42c   :  { %1265 = vmax.xlane.f32.xlu1 %v4358_v9  ;;  %v4379_v9 = vpop.eup %3161 }
 0x42d   :  { %6206 = vst [vmem:[#allocation36_spill] sm:$0xff] %v4379_v9 }
 0x42e   :  { %v4364_v52 = vpop.xlane.xlu2 %1207 }
 0x42f   :  { %v4366_v37 = vpop.xlane.xlu1 %1315 }
 0x433   :  { %1547 = vadd.xlane.f32.xlu2 %v4368_v36  ;;  %v4393_v36 = vadd.f32 %v904_v57, %v4017_v63 }
 0x434   :  { %1233 = vmax.xlane.f32.xlu1 %v4372_v3  ;;  %v1337_v3 = vsub.f32 %v4056_v51, %v4285_v21 }
 0x436   :  { %v4376_v40 = vpop.xlane.xlu2 %1305  ;;  %v1413_v59 = vmul.f32 1.442695, %v1337_v3 }
 0x437   :  { %v1226_v58 = vpop.xlane.xlu1 %1225 }
 0x438   :  { %v1339_v12 = vsub.f32 %v4182_v39, %v1226_v58 }
 0x43a   :  { %v1417_v38 = vmul.f32 1.442695, %v1339_v12 }
 0x43b   :  { %1607 = vadd.xlane.f32.xlu2 %v4379_v9 }
 0x43c   :  { %3163 = vpow2.f32 %v1417_v38  ;;  %1297 = vmax.xlane.f32.xlu1 %v4383_v27  ;;  %v1411_v38 = vmul.f32 1.442695, %v1336_v22  ;;  %v1369_v27 = vsub.f32 %v4073_v15, %v4201_v44  ;;  %v4437_v44 = vpop.xlane.xlu0 %1273 }
 0x43d   :  { %3165 = vpow2.f32 %v1483_v29  ;;  %v4420_v29 = vadd.f32 %v3972_v32, %v3954_v5  ;;  %v4433_v32 = vadd.f32 %v4090_v35, %v3954_v5 }
 0x43e   :  { %v4390_v39 = vpop.xlane.xlu2 %1241  ;;  %3167 = vpow2.f32 %v1413_v59 }
 0x43f   :  { %v1318_v58 = vpop.xlane.xlu1 %1317  ;;  %3169 = vpow2.f32 %v1411_v38  ;;  %v1368_v38 = vsub.f32 %v4063_v61, %v4184_v45  ;;  %v1334_v45 = vsub.f32 %v4028_v14, %v4227_v33  ;;  %v1383_v33 = vsub.f32 %v4152_v50, %v4351_v53 }
 0x440   :  { %v1385_v61 = vsub.f32 %v4196_v0, %v1318_v58  ;;  %v1335_v50 = vsub.f32 %v4035_v41, %v4248_v6  ;;  %v1382_v41 = vsub.f32 %v4137_v20, %v4335_v60  ;;  %v1384_v6 = vsub.f32 %v4167_v28, %v4366_v37 }
 0x441   :  { %v1366_v28 = vsub.f32 %v4040_v31, %v4141_v25 }
 0x442   :  { %v4395_v12 = vpop.eup %3163 }
 0x443   :  { %1259 = vmax.xlane.f32.xlu2 %v4393_v36  ;;  %v4405_v63 = vpop.eup %3165 }
 0x444   :  { %1545 = vadd.xlane.f32.xlu1 %v4395_v12  ;;  %v4407_v3 = vpop.eup %3167  ;;  %v4456_v14 = vpop.xlane.xlu0 %1205 }
 0x445   :  { %6208 = vst [vmem:[#allocation38_spill] sm:$0xff] %v4407_v3  ;;  %v4416_v57 = vpop.eup %3169 }
 0x446   :  { %v4401_v51 = vpop.xlane.xlu2 %1269 }
 0x447   :  { %v1320_v21 = vpop.xlane.xlu1 %1319 }
 0x448   :  { %v1386_v0 = vsub.f32 %v4206_v7, %v1320_v21  ;;  %v1333_v7 = vsub.f32 %v4020_v8, %v4203_v13  ;;  %v1409_v8 = vmul.f32 1.442695, %v1335_v50 }
 0x44a   :  { %v1405_v21 = vmul.f32 1.442695, %v1333_v7 }
 0x44b   :  { %1611 = vadd.xlane.f32.xlu2 %v4405_v63 }
 0x44c   :  { %1541 = vadd.xlane.f32.xlu1 %v4407_v3 }
 0x44e   :  { %v4411_v49 = vpop.xlane.xlu2 %1301 }
 0x44f   :  { %v1322_v48 = vpop.xlane.xlu1 %1321 }
 0x450   :  { %v1387_v59 = vsub.f32 %v4222_v18, %v1322_v48  ;;  %v1477_v18 = vmul.f32 1.442695, %v1369_v27  ;;  %v1509_v27 = vmul.f32 1.442695, %v1385_v61  ;;  %v1505_v61 = vmul.f32 1.442695, %v1383_v33 }
 0x452   :  { %v1513_v22 = vmul.f32 1.442695, %v1387_v59  ;;  %v1475_v59 = vmul.f32 1.442695, %v1368_v38 }
 0x453   :  { %1539 = vadd.xlane.f32.xlu2 %v4416_v57 }
 0x454   :  { %3171 = vpow2.f32 %v1513_v22  ;;  %1261 = vmax.xlane.f32.xlu1 %v4420_v29 }
 0x455   :  { %3173 = vpow2.f32 %v1477_v18 }
 0x456   :  { %v4428_v9 = vpop.xlane.xlu2 %1299 }
 0x457   :  { %v1324_v48 = vpop.xlane.xlu1 %1323 }
 0x458   :  { %v1388_v3 = vsub.f32 %v4238_v1, %v1324_v48  ;;  %v1407_v48 = vmul.f32 1.442695, %v1334_v45 }
 0x45a   :  { %v4435_v15 = vpop.eup %3171  ;;  %v1515_v22 = vmul.f32 1.442695, %v1388_v3 }
 0x45b   :  { %6209 = vst [vmem:[#allocation39_spill] sm:$0xff] %v4435_v15  ;;  %1641 = vadd.xlane.f32.xlu0 %v4435_v15  ;;  %1293 = vmax.xlane.f32.xlu2 %v4433_v32  ;;  %v4446_v38 = vpop.eup %3173  ;;  %v1367_v15 = vsub.f32 %v4051_v42, %v4164_v16  ;;  %v1511_v16 = vmul.f32 1.442695, %v1386_v0  ;;  %v4466_v42 = vadd.f32 %v4116_v56, %v3954_v5  ;;  %v4480_v56 = vpop.xlane.xlu0 %1239 }
 0x45c   :  { %3175 = vpow2.f32 %v1515_v22 }
 0x45d   :  { %3177 = vpow2.f32 %v1475_v59  ;;  %v1473_v59 = vmul.f32 1.442695, %v1367_v15 }
 0x45e   :  { %v4444_v35 = vpop.xlane.xlu2 %1197  ;;  %3179 = vpow2.f32 %v1509_v27 }
 0x45f   :  { %v1278_v1 = vpop.xlane.xlu1 %1277  ;;  %3181 = vpow2.f32 %v1407_v48 }
 0x460   :  { %3183 = vpow2.f32 %v1473_v59  ;;  %v1365_v5 = vsub.f32 %v4263_v62, %v1278_v1  ;;  %v1503_v59 = vmul.f32 1.442695, %v1382_v41 }
 0x461   :  { %3185 = vpow2.f32 %v1511_v16 }
 0x462   :  { %v4448_v3 = vpop.eup %3175  ;;  %3187 = vpow2.f32 %v1505_v61  ;;  %v1469_v48 = vmul.f32 1.442695, %v1365_v5  ;;  %v1507_v61 = vmul.f32 1.442695, %v1384_v6  ;;  %v1332_v6 = vsub.f32 %v4106_v43, %v4403_v4 }
 0x463   :  { %v4450_v18 = vpop.eup %3177  ;;  %1605 = vadd.xlane.f32.xlu0 %v4446_v38  ;;  %1643 = vadd.xlane.f32.xlu1 %v4448_v3  ;;  %3189 = vpow2.f32 %v1405_v21  ;;  %v4502_v20 = vpop.xlane.xlu0 %1303 }
 0x464   :  { %1603 = vadd.xlane.f32.xlu2 %v4450_v18  ;;  %v4468_v45 = vpop.eup %3179  ;;  %3191 = vpow2.f32 %v1409_v8 }
 0x465   :  { %v4470_v27 = vpop.eup %3181  ;;  %3193 = vpow2.f32 %v1469_v48 }
 0x466   :  { %v4462_v58 = vpop.xlane.xlu2 %1247  ;;  %v4484_v15 = vpop.eup %3183  ;;  %3195 = vpow2.f32 %v1503_v59 }
 0x467   :  { %v1210_v22 = vpop.xlane.xlu1 %1209  ;;  %v4486_v0 = vpop.eup %3185  ;;  %3197 = vpow2.f32 %v1507_v61  ;;  %v1403_v61 = vmul.f32 1.442695, %v1332_v6 }
 0x468   :  { %v4488_v33 = vpop.eup %3187  ;;  %v1331_v62 = vsub.f32 %v4280_v24, %v1210_v22  ;;  %v1364_v24 = vsub.f32 %v4149_v11, %v4349_v17  ;;  %v1471_v22 = vmul.f32 1.442695, %v1366_v28 }
 0x469   :  { %6210 = vst [vmem:[#allocation40_spill] sm:$0xff] %v4488_v33  ;;  %v4504_v60 = vpop.eup %3189 }
 0x46a   :  { %v1401_v7 = vmul.f32 1.442695, %v1331_v62  ;;  %v4506_v50 = vpop.eup %3191  ;;  %v1467_v21 = vmul.f32 1.442695, %v1364_v24 }
 0x46b   :  { %1637 = vadd.xlane.f32.xlu0 %v4468_v45  ;;  %1229 = vmax.xlane.f32.xlu1 %v4466_v42  ;;  %v4510_v37 = vpop.eup %3193  ;;  %v1246_v11 = vpop.xlane.xlu0 %1245 }
 0x46c   :  { %1535 = vadd.xlane.f32.xlu2 %v4470_v27  ;;  %3199 = vpow2.f32 %v1401_v7  ;;  %v4520_v25 = vpop.eup %3195 }
 0x46d   :  { %6211 = vst [vmem:[#allocation41_spill] sm:$0xff] %v4520_v25  ;;  %v4522_v48 = vpop.eup %3197  ;;  %3201 = vpow2.f32 %v1471_v22 }
 0x46e   :  { %v4482_v53 = vpop.xlane.xlu2 %1249  ;;  %3203 = vpow2.f32 %v1467_v21 }
 0x46f   :  { %v1308_v13 = vpop.xlane.xlu1 %1307  ;;  %v1351_v21 = vsub.f32 %v4288_v54, %v4482_v53  ;;  %v1350_v54 = vsub.f32 %v4272_v26, %v4462_v58  ;;  %v6217_v58 = vld [vmem:[#allocation8_spill] sm:$0xff] }
 0x470   :  { %v1380_v62 = vsub.f32 %v4294_v30, %v1308_v13  ;;  %v6213_v30 = vld [vmem:[#allocation16_spill] sm:$0xff] }
 0x471   :  { %v1441_v6 = vmul.f32 1.442695, %v1351_v21 }
 0x472   :  { %v4524_v41 = vpop.eup %3199  ;;  %v1499_v24 = vmul.f32 1.442695, %v1380_v62 }
 0x473   :  { %1601 = vadd.xlane.f32.xlu0 %v4484_v15  ;;  %1639 = vadd.xlane.f32.xlu1 %v4486_v0  ;;  %v4536_v28 = vpop.eup %3201  ;;  %v4547_v13 = vpop.xlane.xlu0 %1201 }
 0x474   :  { %1633 = vadd.xlane.f32.xlu2 %v4488_v33  ;;  %v4538_v4 = vpop.eup %3203 }
 0x476   :  { %v4498_v1 = vpop.xlane.xlu2 %1251 }
 0x477   :  { %v4500_v16 = vpop.xlane.xlu1 %1271 }
 0x478   :  { %v1362_v53 = vsub.f32 %v4304_v47, %v4500_v16  ;;  %v6218_v47 = vld [vmem:[#allocation15_spill] sm:$0xff] }
 0x479   :  { %v1379_v16 = vsub.f32 %v6218_v47, %v4376_v40  ;;  %v6220_v40 = vld [vmem:[#allocation18_spill] sm:$0xff] }
 0x47a   :  { %v1463_v21 = vmul.f32 1.442695, %v1362_v53 }
 0x47b   :  { %1533 = vadd.xlane.f32.xlu0 %v4504_v60  ;;  %1537 = vadd.xlane.f32.xlu1 %v4506_v50  ;;  %v1497_v53 = vmul.f32 1.442695, %v1379_v16 }
 0x47c   :  { %1597 = vadd.xlane.f32.xlu2 %v4510_v37 }
 0x47e   :  { %v4517_v5 = vpop.xlane.xlu2 %1253 }
 0x47f   :  { %v1244_v8 = vpop.xlane.xlu1 %1243 }
 0x480   :  { %v1348_v31 = vsub.f32 %v4314_v55, %v1244_v8  ;;  %v1330_v55 = vsub.f32 %v4162_v46, %v4364_v52  ;;  %v1347_v46 = vsub.f32 %v4190_v34, %v4390_v39  ;;  %v1349_v52 = vsub.f32 %v6213_v30, %v1246_v11  ;;  %v6215_v11 = vld [vmem:[#allocation9_spill] sm:$0xff] }
 0x481   :  { %v1439_v30 = vmul.f32 1.442695, %v1350_v54 }
 0x482   :  { %v1435_v17 = vmul.f32 1.442695, %v1348_v31  ;;  %v1399_v43 = vmul.f32 1.442695, %v1330_v55  ;;  %v1433_v31 = vmul.f32 1.442695, %v1347_v46 }
 0x483   :  { %1631 = vadd.xlane.f32.xlu0 %v4520_v25  ;;  %1635 = vadd.xlane.f32.xlu1 %v4522_v48  ;;  %v1437_v34 = vmul.f32 1.442695, %v1349_v52 }
 0x484   :  { %3205 = vpow2.f32 %v1435_v17  ;;  %1529 = vadd.xlane.f32.xlu2 %v4524_v41 }
 0x485   :  { %3207 = vpow2.f32 %v1403_v61  ;;  %v1381_v61 = vsub.f32 %v6215_v11, %v4413_v23 }
 0x486   :  { %v4534_v59 = vpop.xlane.xlu2 %1543  ;;  %3209 = vpow2.f32 %v1399_v43  ;;  %v4569_v43 = vpop.xlane.xlu0 %1235 }
 0x487   :  { %v1204_v7 = vpop.xlane.xlu1 %1203  ;;  %3211 = vpow2.f32 %v1499_v24  ;;  %v1501_v23 = vmul.f32 1.442695, %v1381_v61 }
 0x488   :  { %3213 = vpow2.f32 %v1433_v31 }
 0x489   :  { %3215 = vpow2.f32 %v1437_v34  ;;  %v1363_v34 = vsub.f32 %v6217_v58, %v4437_v44 }
 0x48a   :  { %v4540_v22 = vpop.eup %3205  ;;  %3217 = vpow2.f32 %v1441_v6  ;;  %v1328_v6 = vsub.f32 %v4322_v10, %v1204_v7  ;;  %v1352_v10 = vsub.f32 %v4300_v2, %v4498_v1  ;;  %v6222_v2 = vld [vmem:[#allocation12_spill] sm:$0xff] }
 0x48b   :  { %6212 = vst [vmem:[#allocation42_spill] sm:$0xff] %v4540_v22  ;;  %1595 = vadd.xlane.f32.xlu0 %v4538_v4  ;;  %1599 = vadd.xlane.f32.xlu1 %v4536_v28  ;;  %v4554_v39 = vpop.eup %3207  ;;  %3219 = vpow2.f32 %v1501_v23  ;;  %v1465_v61 = vmul.f32 1.442695, %v1363_v34  ;;  %v1329_v1 = vsub.f32 %v6222_v2, %v4456_v14 }
 0x48c   :  { %1563 = vadd.xlane.f32.xlu2 %v4540_v22  ;;  %v4556_v55 = vpop.eup %3209  ;;  %3221 = vpow2.f32 %v1439_v30  ;;  %v1395_v58 = vmul.f32 1.442695, %v1328_v6  ;;  %v1361_v30 = vsub.f32 %v6220_v40, %v4401_v51  ;;  %v1443_v16 = vmul.f32 1.442695, %v1352_v10 }
 0x48d   :  { %v4558_v62 = vpop.eup %3211  ;;  %3223 = vpow2.f32 %v1463_v21  ;;  %v1397_v14 = vmul.f32 1.442695, %v1329_v1 }
 0x48e   :  { %v4552_v8 = vpop.xlane.xlu2 %1255  ;;  %6214 = vst [vmem:[#allocation16_spill] sm:$0xff] %v4558_v62  ;;  %v4575_v52 = vpop.eup %3213  ;;  %3225 = vpow2.f32 %v1465_v61  ;;  %v1461_v34 = vmul.f32 1.442695, %v1361_v30  ;;  %v6224_v30 = vld [vmem:[#allocation32_spill] sm:$0xff] }
 0x48f   :  { %v1238_v17 = vpop.xlane.xlu1 %1237  ;;  %6216 = vst [vmem:[#allocation9_spill] sm:$0xff] %v4575_v52  ;;  %v4577_v31 = vpop.eup %3215  ;;  %3227 = vpow2.f32 %v1497_v53 }
 0x490   :  { %v4579_v26 = vpop.eup %3217  ;;  %v4591_v23 = vpop.xlane.xlu0 %1199  ;;  %3229 = vpow2.f32 %v1395_v58  ;;  %v1345_v7 = vsub.f32 %v4331_v19, %v1238_v17  ;;  %v6223_v19 = vld [vmem:[#allocation27_spill] sm:$0xff] }
 0x491   :  { %v4593_v44 = vpop.eup %3219  ;;  %v1353_v17 = vsub.f32 %v6223_v19, %v4517_v5 }
 0x492   :  { %6219 = vst [vmem:[#allocation8_spill] sm:$0xff] %v4593_v44  ;;  %v1429_v6 = vmul.f32 1.442695, %v1345_v7 }
 0x493   :  { %1527 = vadd.xlane.f32.xlu0 %v4556_v55  ;;  %1531 = vadd.xlane.f32.xlu1 %v4554_v39  ;;  %v1445_v2 = vmul.f32 1.442695, %v1353_v17  ;;  %v6228_v17 = vld [vmem:[#allocation19_spill] sm:$0xff] }
 0x494   :  { %1627 = vadd.xlane.f32.xlu2 %v4558_v62  ;;  %v4595_v62 = vpop.eup %3221 }
 0x495   :  { %v4597_v25 = vpop.eup %3223 }
 0x496   :  { %v4571_v24 = vpop.xlane.xlu2 %1295  ;;  %v4609_v51 = vpop.eup %3225 }
 0x497   :  { %v4573_v46 = vpop.xlane.xlu1 %1267  ;;  %v4611_v61 = vpop.eup %3227 }
 0x498   :  { %6221 = vst [vmem:[#allocation15_spill] sm:$0xff] %v4611_v61  ;;  %v4613_v53 = vpop.xlane.xlu0 %1263  ;;  %v4615_v40 = vpop.eup %3229 }
 0x49b   :  { %1561 = vadd.xlane.f32.xlu0 %v4575_v52  ;;  %1565 = vadd.xlane.f32.xlu1 %v4577_v31 }
 0x49c   :  { %1569 = vadd.xlane.f32.xlu2 %v4579_v26 }
 0x49e   :  { %v1258_v11 = vpop.xlane.xlu2 %1257 }
 0x49f   :  { %v4589_v54 = vpop.xlane.xlu1 %1265  ;;  %v1355_v10 = vsub.f32 %v6224_v30, %v1258_v11 }
 0x4a0   :  { %v4640_v1 = vpop.xlane.xlu0 %1231 }
 0x4a3   :  { %1567 = vadd.xlane.f32.xlu0 %v4595_v62  ;;  %1629 = vadd.xlane.f32.xlu1 %v4593_v44 }
 0x4a4   :  { %1591 = vadd.xlane.f32.xlu2 %v4597_v25 }
 0x4a6   :  { %v1548_v21 = vpop.xlane.xlu2 %1547 }
 0x4a7   :  { %3231 = vrcp.f32 %v1548_v21  ;;  %v4607_v47 = vpop.xlane.xlu1 %1233  ;;  %v6225_v21 = vld [vmem:[#allocation34_spill] sm:$0xff] }
 0x4a8   :  { %3233 = vpow2.f32 %v1461_v34 }
 0x4a9   :  { %3235 = vpow2.f32 %v1443_v16  ;;  %v1449_v16 = vmul.f32 1.442695, %v1355_v10 }
 0x4aa   :  { %3237 = vpow2.f32 %v1429_v6  ;;  %v6226_v6 = vld [vmem:[#allocation13_spill] sm:$0xff] }
 0x4ab   :  { %1625 = vadd.xlane.f32.xlu0 %v4611_v61  ;;  %1593 = vadd.xlane.f32.xlu1 %v4609_v51  ;;  %3239 = vpow2.f32 %v1397_v14  ;;  %v1346_v11 = vsub.f32 %v6226_v6, %v4480_v56 }
 0x4ac   :  { %1523 = vadd.xlane.f32.xlu2 %v4615_v40  ;;  %3241 = vpow2.f32 %v1445_v2  ;;  %v6229_v2 = vld [vmem:[#allocation14_spill] sm:$0xff] }
 0x4ad   :  { %v3232_v58 = vpop.eup %3231  ;;  %3243 = vpow2.f32 %v1449_v16  ;;  %v1431_v10 = vmul.f32 1.442695, %v1346_v11  ;;  %v1378_v22 = vsub.f32 %v6229_v2, %v4502_v20  ;;  %v6231_v11 = vld [vmem:[#allocation33_spill] sm:$0xff] }
 0x4ae   :  { %v4625_v7 = vpop.xlane.xlu2 %1607  ;;  %v1724_v44 = vmul.f32 %v3232_v58, %v6225_v21  ;;  %v4630_v61 = vpop.eup %3233  ;;  %v1377_v58 = vsub.f32 %v6228_v17, %v4411_v49  ;;  %v6230_v49 = vld [vmem:[#allocation17_spill] sm:$0xff] }
 0x4af   :  { %v4628_v34 = vpop.xlane.xlu1 %1297  ;;  %v4632_v52 = vpop.eup %3235  ;;  %v1327_v16 = vsub.f32 %v6230_v49, %v4547_v13 }
 0x4b0   :  { %1773 = vmatpush.xpose.msrb.mxu1 %v1724_v44  ;;  %v4634_v5 = vpop.eup %3237  ;;  %v6227_v44 = vld [vmem:[#allocation29_spill] sm:$0xff]  ;;  %v1493_v6 = vmul.f32 1.442695, %v1377_v58 }
 0x4b1   :  { %v1354_v19 = vsub.f32 %v6227_v44, %v4552_v8  ;;  %v4647_v14 = vpop.eup %3239  ;;  %v1359_v44 = vsub.f32 %v6231_v11, %v4589_v54  ;;  %v1393_v58 = vmul.f32 1.442695, %v1327_v16 }
 0x4b2   :  { %v4649_v33 = vpop.eup %3241 }
 0x4b3   :  { %1589 = vadd.xlane.f32.xlu0 %v4630_v61  ;;  %1571 = vadd.xlane.f32.xlu1 %v4632_v52  ;;  %v1447_v56 = vmul.f32 1.442695, %v1354_v19  ;;  %v4654_v8 = vpop.eup %3243  ;;  %v1495_v19 = vmul.f32 1.442695, %v1378_v22  ;;  %v1457_v2 = vmul.f32 1.442695, %v1359_v44 }
 0x4b4   :  { %1557 = vadd.xlane.f32.xlu2 %v4634_v5  ;;  %v6232_v22 = vld [vmem:[#allocation31_spill] sm:$0xff] }
 0x4b6   :  { %v1260_v30 = vpop.xlane.xlu2 %1259 }
 0x4b7   :  { %v1546_v21 = vpop.xlane.xlu1 %1545  ;;  %v1356_v11 = vsub.f32 %v4393_v36, %v1260_v30 }
 0x4b8   :  { %3245 = vrcp.f32 %v1546_v21 }
 0x4b9   :  { %3247 = vrcp.f32 %v4534_v59  ;;  %v1610_v59 = vpop.xlane.xlu0 %1609  ;;  %v1451_v36 = vmul.f32 1.442695, %v1356_v11 }
 0x4ba   :  { %3249 = vpow2.f32 %v1431_v10 }
 0x4bb   :  { %1573 = vadd.xlane.f32.xlu0 %v4649_v33  ;;  %1525 = vadd.xlane.f32.xlu1 %v4647_v14  ;;  %3251 = vpow2.f32 %v1447_v56 }
 0x4bc   :  { %1577 = vadd.xlane.f32.xlu2 %v4654_v8  ;;  %3253 = vpow2.f32 %v1493_v6  ;;  %v1360_v6 = vsub.f32 %v6232_v22, %v4573_v46 }
 0x4be   :  { %v3246_v20 = vpop.eup %3245  ;;  %v1612_v17 = vpop.xlane.xlu2 %1611 }
 0x4bf   :  { %v1542_v10 = vpop.xlane.xlu1 %1541  ;;  %3255 = vrcp.f32 %v1612_v17  ;;  %v1723_v13 = vmul.f32 %v3246_v20, %v4395_v12  ;;  %v3248_v21 = vpop.eup %3247  ;;  %v6233_v12 = vld [vmem:[#allocation28_spill] sm:$0xff]  ;;  %v6234_v20 = vld [vmem:[#allocation23_spill] sm:$0xff] }
 0x4c0   :  { %3257 = vrcp.f32 %v1542_v10  ;;  %v4664_v49 = vpop.eup %3249  ;;  %v1722_v16 = vmul.f32 %v3248_v21, %v6233_v12  ;;  %v1459_v10 = vmul.f32 1.442695, %v1360_v6  ;;  %v6238_v6 = vld [vmem:[#allocation21_spill] sm:$0xff] }
 0x4c1   :  { %3259 = vrcp.f32 %v1610_v59  ;;  %1774 = vmatpush.xpose.msrb.mxu1 %v1723_v13  ;;  %v4666_v54 = vpop.eup %3251  ;;  %v6235_v13 = vld [vmem:[#allocation38_spill] sm:$0xff]  ;;  %v1326_v11 = vsub.f32 %v6238_v6, %v4591_v23 }
 0x4c2   :  { %3261 = vpow2.f32 %v1495_v19  ;;  %v4668_v56 = vpop.eup %3253  ;;  %v1325_v19 = vsub.f32 %v6234_v20, %v4444_v35 }
 0x4c3   :  { %3263 = vpow2.f32 %v1393_v58  ;;  %1575 = vadd.xlane.f32.xlu0 %v4666_v54  ;;  %1559 = vadd.xlane.f32.xlu1 %v4664_v49 }
 0x4c4   :  { %3265 = vpow2.f32 %v1457_v2  ;;  %1621 = vadd.xlane.f32.xlu2 %v4668_v56  ;;  %v1389_v22 = vmul.f32 1.442695, %v1325_v19  ;;  %v6239_v19 = vld [vmem:[#allocation25_spill] sm:$0xff] }
 0x4c5   :  { %v3256_v44 = vpop.eup %3255  ;;  %3267 = vrcp.f32 %v4625_v7  ;;  %1775 = vmatpush.xpose.msrb.mxu1 %v1722_v16  ;;  %v6236_v7 = vld [vmem:[#allocation26_spill] sm:$0xff] }
 0x4c6   :  { %v3258_v59 = vpop.eup %3257  ;;  %v1540_v46 = vpop.xlane.xlu2 %1539  ;;  %v1756_v17 = vmul.f32 %v3256_v44, %v4405_v63  ;;  %v6237_v63 = vld [vmem:[#allocation20_spill] sm:$0xff] }
 0x4c7   :  { %v3260_v58 = vpop.eup %3259  ;;  %3269 = vrcp.f32 %v1540_v46  ;;  %v1721_v21 = vmul.f32 %v3258_v59, %v6235_v13  ;;  %v1344_v44 = vsub.f32 %v6237_v63, %v4569_v43  ;;  %v1342_v59 = vsub.f32 %v6239_v19, %v4640_v1  ;;  %v4698_v46 = vpop.xlane.xlu1 %1261 }
 0x4c8   :  { %v4682_v2 = vpop.eup %3261  ;;  %1813 = vmatpush.xpose.msrb.mxu3 %v1756_v17  ;;  %v1755_v12 = vmul.f32 %v3260_v58, %v6236_v7  ;;  %3271 = vpow2.f32 %v1459_v10  ;;  %v6240_v10 = vld [vmem:[#allocation36_spill] sm:$0xff] }
 0x4c9   :  { %v4684_v30 = vpop.eup %3263  ;;  %1776 = vmatpush.xpose.msrb.mxu1 %v1721_v21  ;;  %3273 = vpow2.f32 %v1451_v36  ;;  %v1427_v23 = vmul.f32 1.442695, %v1344_v44  ;;  %v1391_v21 = vmul.f32 1.442695, %v1326_v11 }
 0x4ca   :  { %v4686_v35 = vpop.eup %3265  ;;  %3275 = vpow2.f32 %v1389_v22  ;;  %v1423_v22 = vmul.f32 1.442695, %v1342_v59 }
 0x4cb   :  { %v3268_v16 = vpop.eup %3267  ;;  %1623 = vadd.xlane.f32.xlu1 %v4682_v2  ;;  %1521 = vadd.xlane.f32.xlu0 %v4684_v30  ;;  %3277 = vpow2.f32 %v1427_v23 }
 0x4cc   :  { %1585 = vadd.xlane.f32.xlu2 %v4686_v35  ;;  %1814 = vmatpush.xpose.msrb.mxu3 %v1755_v12  ;;  %v1754_v13 = vmul.f32 %v3268_v16, %v6240_v10  ;;  %v6241_v12 = vld [vmem:[#allocation22_spill] sm:$0xff]  ;;  %3279 = vpow2.f32 %v1391_v21 }
 0x4cd   :  { %v3270_v20 = vpop.eup %3269  ;;  %v1376_v63 = vsub.f32 %v6241_v12, %v4428_v9  ;;  %3281 = vpow2.f32 %v1423_v22 }
 0x4ce   :  { %v4700_v43 = vpop.xlane.xlu0 %1641  ;;  %v4702_v17 = vpop.xlane.xlu2 %1293  ;;  %v1720_v58 = vmul.f32 %v3270_v20, %v4416_v57  ;;  %v6242_v57 = vld [vmem:[#allocation35_spill] sm:$0xff] }
 0x4cf   :  { %v4706_v36 = vpop.eup %3271  ;;  %v1343_v16 = vsub.f32 %v6242_v57, %v4607_v47  ;;  %v1491_v11 = vmul.f32 1.442695, %v1376_v63  ;;  %v6244_v47 = vld [vmem:[#allocation37_spill] sm:$0xff] }
 0x4d0   :  { %1777 = vmatpush.xpose.msrb.mxu1 %v1720_v58  ;;  %1815 = vmatpush.xpose.msrb.mxu3 %v1754_v13  ;;  %v4708_v7 = vpop.eup %3273  ;;  %v6243_v58 = vld [vmem:[#allocation24_spill] sm:$0xff]  ;;  %v1375_v23 = vsub.f32 %v6244_v47, %v4628_v34  ;;  %v6245_v34 = vld [vmem:[#allocation30_spill] sm:$0xff] }
 0x4d1   :  { %v4710_v1 = vpop.eup %3275  ;;  %v1425_v19 = vmul.f32 1.442695, %v1343_v16  ;;  %v1358_v10 = vsub.f32 %v6243_v58, %v4613_v53 }
 0x4d2   :  { %v4721_v59 = vpop.eup %3277 }
 0x4d3   :  { %1587 = vadd.xlane.f32.xlu1 %v4706_v36  ;;  %1579 = vadd.xlane.f32.xlu0 %v4708_v7  ;;  %v4723_v9 = vpop.eup %3279  ;;  %v1455_v22 = vmul.f32 1.442695, %v1358_v10  ;;  %v1374_v10 = vsub.f32 %v6245_v34, %v4571_v24 }
 0x4d4   :  { %1517 = vadd.xlane.f32.xlu2 %v4710_v1  ;;  %v4727_v13 = vpop.eup %3281 }
 0x4d6   :  { %v4719_v44 = vpop.xlane.xlu1 %1643  ;;  %v1606_v6 = vpop.xlane.xlu0 %1605 }
 0x4d7   :  { %v1604_v20 = vpop.xlane.xlu2 %1603  ;;  %3283 = vrcp.f32 %v1606_v6 }
 0x4d8   :  { %3285 = vrcp.f32 %v1604_v20 }
 0x4d9   :  { %3287 = vpow2.f32 %v1491_v11  ;;  %v1489_v11 = vmul.f32 1.442695, %v1375_v23 }
 0x4da   :  { %3289 = vpow2.f32 %v1425_v19 }
 0x4db   :  { %1555 = vadd.xlane.f32.xlu0 %v4721_v59  ;;  %1519 = vadd.xlane.f32.xlu1 %v4723_v9  ;;  %3291 = vpow2.f32 %v1455_v22 }
 0x4dc   :  { %1551 = vadd.xlane.f32.xlu2 %v4727_v13 }
 0x4dd   :  { %v3284_v21 = vpop.eup %3283 }
 0x4de   :  { %v1230_v12 = vpop.xlane.xlu1 %1229  ;;  %v4734_v63 = vpop.xlane.xlu0 %1637  ;;  %v1753_v16 = vmul.f32 %v3284_v21, %v4446_v38  ;;  %v1357_v38 = vsub.f32 %v4420_v29, %v4698_v46  ;;  %v1487_v21 = vmul.f32 1.442695, %v1374_v10  ;;  %v1373_v29 = vsub.f32 %v4433_v32, %v4702_v17 }
 0x4df   :  { %v1341_v53 = vsub.f32 %v4466_v42, %v1230_v12  ;;  %v1536_v57 = vpop.xlane.xlu2 %1535  ;;  %v3286_v6 = vpop.eup %3285 }
 0x4e0   :  { %v4738_v20 = vpop.eup %3287  ;;  %1816 = vmatpush.xpose.msrb.mxu3 %v1753_v16  ;;  %v1752_v42 = vmul.f32 %v3286_v6, %v4450_v18  ;;  %v1453_v24 = vmul.f32 1.442695, %v1357_v38  ;;  %v1485_v34 = vmul.f32 1.442695, %v1373_v29 }
 0x4e1   :  { %v1421_v19 = vmul.f32 1.442695, %v1341_v53  ;;  %v4740_v58 = vpop.eup %3289 }
 0x4e2   :  { %v4753_v12 = vpop.eup %3291 }
 0x4e3   :  { %3293 = vpow2.f32 %v1421_v19  ;;  %1619 = vadd.xlane.f32.xlu0 %v4738_v20  ;;  %1553 = vadd.xlane.f32.xlu1 %v4740_v58 }
 0x4e4   :  { %3295 = vpow2.f32 %v1489_v11  ;;  %1817 = vmatpush.xpose.msrb.mxu3 %v1752_v42 }
 0x4e6   :  { %v4749_v47 = vpop.xlane.xlu1 %1639  ;;  %v1602_v23 = vpop.xlane.xlu0 %1601 }
 0x4e7   :  { %v4751_v22 = vpop.xlane.xlu2 %1633  ;;  %3297 = vrcp.f32 %v1602_v23 }
 0x4e8   :  { %3299 = vpow2.f32 %v1487_v21 }
 0x4e9   :  { %v4755_v53 = vpop.eup %3293  ;;  %3301 = vpow2.f32 %v1453_v24 }
 0x4ea   :  { %v4757_v16 = vpop.eup %3295  ;;  %1549 = vadd.xlane.f32.xlu2 %v4755_v53 }
 0x4eb   :  { %1617 = vadd.xlane.f32.xlu1 %v4757_v16  ;;  %1583 = vadd.xlane.f32.xlu0 %v4753_v12 }
 0x4ed   :  { %v3298_v18 = vpop.eup %3297 }
 0x4ee   :  { %v1538_v46 = vpop.xlane.xlu1 %1537  ;;  %v1534_v6 = vpop.xlane.xlu0 %1533  ;;  %v1751_v19 = vmul.f32 %v3298_v18, %v4484_v15 }
 0x4ef   :  { %3303 = vrcp.f32 %v1538_v46  ;;  %v1598_v11 = vpop.xlane.xlu2 %1597  ;;  %v4765_v10 = vpop.eup %3299 }
 0x4f0   :  { %3305 = vrcp.f32 %v1536_v57  ;;  %1818 = vmatpush.xpose.msrb.mxu3 %v1751_v19  ;;  %v4767_v42 = vpop.eup %3301 }
 0x4f1   :  { %3307 = vpow2.f32 %v1485_v34 }
 0x4f2   :  { %3309 = vrcp.f32 %v1534_v6 }
 0x4f3   :  { %1615 = vadd.xlane.f32.xlu1 %v4765_v10  ;;  %1581 = vadd.xlane.f32.xlu0 %v4767_v42 }
 0x4f5   :  { %v3304_v32 = vpop.eup %3303 }
 0x4f6   :  { %v4771_v17 = vpop.xlane.xlu1 %1635  ;;  %v4773_v38 = vpop.xlane.xlu0 %1631  ;;  %v1719_v15 = vmul.f32 %v3304_v32, %v4506_v50  ;;  %v380_v50 = vld [vmem:[%s6070_s3 + $0x50] sm:$0xff] }
 0x4f7   :  { %v3306_v23 = vpop.eup %3305  ;;  %v1530_v21 = vpop.xlane.xlu2 %1529 }
 0x4f8   :  { %1778 = vmatpush.xpose.msrb.mxu1 %v1719_v15  ;;  %v4776_v57 = vpop.eup %3307  ;;  %v1718_v24 = vmul.f32 %v3306_v23, %v4470_v27 }
 0x4f9   :  { %6246 = vst [vmem:[#allocation18_spill] sm:$0xff] %v4776_v57  ;;  %v3310_v29 = vpop.eup %3309 }
 0x4fa   :  { %v1717_v6 = vmul.f32 %v3310_v29, %v4504_v60  ;;  %v1860_v60 = vld [vmem:[%s6070_s3 + $0x78] sm:$0xff] }
 0x4fb   :  { %1613 = vadd.xlane.f32.xlu0 %v4776_v57 }
 0x4fc   :  { %1779 = vmatpush.xpose.msrb.mxu1 %v1718_v24 }
 0x4fe   :  { %v1600_v18 = vpop.xlane.xlu1 %1599  ;;  %v1596_v46 = vpop.xlane.xlu0 %1595 }
 0x4ff   :  { %3311 = vrcp.f32 %v1600_v18  ;;  %v4781_v19 = vpop.xlane.xlu2 %1563 }
 0x500   :  { %1780 = vmatpush.xpose.msrb.mxu1 %v1717_v6  ;;  %3313 = vrcp.f32 %v1598_v11  ;;  %v378_v11 = vld [vmem:[%s6070_s3 + $0x40] sm:$0xff] }
 0x501   :  { %3315 = vrcp.f32 %v1596_v46 }
 0x502   :  { %434 = vperm.xlu2 %3152, %v380_v50  }
 0x505   :  { %v3312_v34 = vpop.eup %3311 }
 0x506   :  { %v1532_v27 = vpop.xlane.xlu1 %1531  ;;  %v1528_v32 = vpop.xlane.xlu0 %1527  ;;  %v1750_v15 = vmul.f32 %v3312_v34, %v4536_v28  ;;  %v379_v28 = vld [vmem:[%s6070_s3 + $0x48] sm:$0xff] }
 0x507   :  { %v3314_v23 = vpop.eup %3313  ;;  %3317 = vrcp.f32 %v1532_v27  ;;  %v4787_v24 = vpop.xlane.xlu2 %1627 }
 0x508   :  { %1819 = vmatpush.xpose.msrb.mxu3 %v1750_v15  ;;  %3319 = vrcp.f32 %v1530_v21  ;;  %v1749_v29 = vmul.f32 %v3314_v23, %v4510_v37  ;;  %v3316_v18 = vpop.eup %3315  ;;  %v1858_v37 = vld [vmem:[%s6070_s3 + $0x68] sm:$0xff] }
 0x509   :  { %3321 = vrcp.f32 %v1528_v32  ;;  %v1748_v34 = vmul.f32 %v3316_v18, %v4538_v4  ;;  %v381_v32 = vld [vmem:[%s6070_s3 + $0x58] sm:$0xff]  ;;  %v1956_v4 = vld [vmem:[%s6070_s3 + $0xf0] sm:$0xff] }
 0x50a   :  { %1878 = vperm.xlu2 %3152, %v1860_v60  }
 0x50c   :  { %424 = vperm.xlu1 %3153, %v378_v11   ;;  %1820 = vmatpush.xpose.msrb.mxu3 %v1749_v29 }
 0x50d   :  { %v3318_v46 = vpop.eup %3317 }
 0x50e   :  { %v4799_v6 = vpop.xlane.xlu1 %1565  ;;  %v4801_v50 = vpop.xlane.xlu0 %1561  ;;  %v1716_v21 = vmul.f32 %v3318_v46, %v4554_v39  ;;  %v1953_v46 = vld [vmem:[%s6070_s3 + $0xd8] sm:$0xff] }
 0x50f   :  { %v3320_v27 = vpop.eup %3319  ;;  %v4805_v15 = vpop.xlane.xlu2 %1569  ;;  %429 = vperm.xlu0 %3154, %v379_v28   ;;  %v1957_v28 = vld [vmem:[%s6070_s3 + $0xf8] sm:$0xff] }
 0x510   :  { %1781 = vmatpush.xpose.msrb.mxu1 %v1716_v21  ;;  %1821 = vmatpush.xpose.msrb.mxu3 %v1748_v34  ;;  %v1715_v23 = vmul.f32 %v3320_v27, %v4524_v41  ;;  %v3322_v39 = vpop.eup %3321  ;;  %v1859_v41 = vld [vmem:[%s6070_s3 + $0x70] sm:$0xff]  ;;  %v1954_v27 = vld [vmem:[%s6070_s3 + $0xe0] sm:$0xff] }
 0x511   :  { %v1714_v29 = vmul.f32 %v3322_v39, %v4556_v55 }
 0x512   :  { %1868 = vperm.xlu2 %3152, %v1858_v37   ;;  %v1857_v37 = vld [vmem:[%s6070_s3 + $0x60] sm:$0xff] }
 0x514   :  { %439 = vperm.xlu1 %3153, %v381_v32   ;;  %1782 = vmatpush.xpose.msrb.mxu1 %v1715_v23  ;;  %v1950_v32 = vld [vmem:[%s6070_s3 + $0xc0] sm:$0xff] }
 0x516   :  { %v4817_v60 = vpop.xlane.xlu1 %1629  ;;  %v4819_v11 = vpop.xlane.xlu0 %1567 }
 0x517   :  { %v1592_v18 = vpop.xlane.xlu2 %1591  ;;  %2030 = vperm.xlu0 %3154, %v1956_v4  }
 0x518   :  { %1783 = vmatpush.xpose.msrb.mxu1 %v1714_v29 }
 0x51a   :  { %2035 = vperm.xlu2 %3152, %v1957_v28  }
 0x51c   :  { %1873 = vperm.xlu1 %3153, %v1859_v41  }
 0x51e   :  { %v1594_v21 = vpop.xlane.xlu1 %1593  ;;  %v4831_v34 = vpop.xlane.xlu0 %1625 }
 0x51f   :  { %3323 = vrcp.f32 %v1594_v21  ;;  %v1524_v55 = vpop.xlane.xlu2 %1523  ;;  %2015 = vperm.xlu0 %3154, %v1953_v46   ;;  %v1955_v46 = vld [vmem:[%s6070_s3 + $0xe8] sm:$0xff] }
 0x520   :  { %3325 = vrcp.f32 %v1592_v18  ;;  %v1951_v18 = vld [vmem:[%s6070_s3 + $0xc8] sm:$0xff] }
 0x522   :  { %2020 = vperm.xlu2 %3152, %v1954_v27  }
 0x524   :  { %1863 = vperm.xlu1 %3153, %v1857_v37  }
 0x525   :  { %v3324_v23 = vpop.eup %3323 }
 0x526   :  { %v4842_v39 = vpop.xlane.xlu1 %1571  ;;  %v1590_v4 = vpop.xlane.xlu0 %1589  ;;  %v1747_v29 = vmul.f32 %v3324_v23, %v4609_v51  ;;  %v1947_v51 = vld [vmem:[%s6070_s3 + $0xa8] sm:$0xff] }
 0x527   :  { %v3326_v28 = vpop.eup %3325  ;;  %v4845_v41 = vpop.xlane.xlu2 %1557  ;;  %2000 = vperm.xlu0 %3154, %v1950_v32   ;;  %3327 = vrcp.f32 %v1590_v4 }
 0x528   :  { %1822 = vmatpush.xpose.msrb.mxu3 %v1747_v29  ;;  %v1746_v21 = vmul.f32 %v3326_v28, %v4597_v25  ;;  %v1948_v29 = vld [vmem:[%s6070_s3 + $0xb0] sm:$0xff] }
 0x529   :  { %v1952_v25 = vld [vmem:[%s6070_s3 + $0xd0] sm:$0xff] }
 0x52a   :  { %2005 = vperm.xlu2 %3152, %v1951_v18   ;;  %v1944_v28 = vld [vmem:[%s6070_s3 + $0x90] sm:$0xff] }
 0x52c   :  { %2025 = vperm.xlu1 %3153, %v1955_v46   ;;  %1823 = vmatpush.xpose.msrb.mxu3 %v1746_v21 }
 0x52d   :  { %v3328_v27 = vpop.eup %3327 }
 0x52e   :  { %v1526_v37 = vpop.xlane.xlu1 %1525  ;;  %v4857_v23 = vpop.xlane.xlu0 %1573  ;;  %v1745_v4 = vmul.f32 %v3328_v27, %v4630_v61 }
 0x52f   :  { %3329 = vrcp.f32 %v1526_v37  ;;  %v1578_v32 = vpop.xlane.xlu2 %1577  ;;  %1985 = vperm.xlu0 %3154, %v1947_v51   ;;  %v1949_v37 = vld [vmem:[%s6070_s3 + $0xb8] sm:$0xff] }
 0x530   :  { %3331 = vrcp.f32 %v1524_v55  ;;  %1824 = vmatpush.xpose.msrb.mxu3 %v1745_v4  ;;  %v1945_v55 = vld [vmem:[%s6070_s3 + $0x98] sm:$0xff] }
 0x532   :  { %1990 = vperm.xlu2 %3152, %v1948_v29  }
 0x534   :  { %2010 = vperm.xlu1 %3153, %v1952_v25  }
 0x535   :  { %v3330_v18 = vpop.eup %3329 }
 0x536   :  { %v4869_v46 = vpop.xlane.xlu1 %1559  ;;  %v1576_v61 = vpop.xlane.xlu0 %1575  ;;  %v1713_v21 = vmul.f32 %v3330_v18, %v4647_v14  ;;  %v2871_v14 = vld [vmem:[%s6070_s3 + $0x100] sm:$0xff] }
 0x537   :  { %v3332_v27 = vpop.eup %3331  ;;  %1970 = vperm.xlu0 %3154, %v1944_v28   ;;  %v4875_v51 = vpop.xlane.xlu2 %1621  ;;  %v1942_v28 = vld [vmem:[%s6070_s3 + $0x80] sm:$0xff] }
 0x538   :  { %1784 = vmatpush.xpose.msrb.mxu1 %v1713_v21  ;;  %v1712_v4 = vmul.f32 %v3332_v27, %v4615_v40  ;;  %v1946_v18 = vld [vmem:[%s6070_s3 + $0xa0] sm:$0xff]  ;;  %v2874_v21 = vld [vmem:[%s6070_s3 + $0x118] sm:$0xff] }
 0x53a   :  { %1975 = vperm.xlu2 %3152, %v1945_v55  }
 0x53c   :  { %1995 = vperm.xlu1 %3153, %v1949_v37   ;;  %1785 = vmatpush.xpose.msrb.mxu1 %v1712_v4 }
 0x53e   :  { %v4884_v29 = vpop.xlane.xlu1 %1623  ;;  %v1522_v25 = vpop.xlane.xlu0 %1521 }
 0x53f   :  { %2877 = vperm.xlu0 %3154, %v2871_v14   ;;  %3333 = vrcp.f32 %v1522_v25  ;;  %v1586_v40 = vpop.xlane.xlu2 %1585  ;;  %v2873_v14 = vld [vmem:[%s6070_s3 + $0x110] sm:$0xff]  ;;  %v1943_v25 = vld [vmem:[%s6070_s3 + $0x88] sm:$0xff] }
 0x542   :  { %1960 = vperm.xlu2 %3152, %v1942_v28  }
 0x544   :  { %1980 = vperm.xlu1 %3153, %v1946_v18  }
 0x545   :  { %v3334_v27 = vpop.eup %3333 }
 0x546   :  { %v1588_v55 = vpop.xlane.xlu1 %1587  ;;  %v1580_v37 = vpop.xlane.xlu0 %1579  ;;  %v1711_v4 = vmul.f32 %v3334_v27, %v4684_v30 }
 0x547   :  { %3335 = vrcp.f32 %v1588_v55  ;;  %2892 = vperm.xlu0 %3154, %v2874_v21   ;;  %v1518_v18 = vpop.xlane.xlu2 %1517 }
 0x548   :  { %3337 = vrcp.f32 %v1580_v37  ;;  %1786 = vmatpush.xpose.msrb.mxu1 %v1711_v4 }
 0x549   :  { %3339 = vrcp.f32 %v1586_v40 }
 0x54a   :  { %3341 = vrcp.f32 %v1578_v32  ;;  %2887 = vperm.xlu2 %3152, %v2873_v14   ;;  %v2872_v32 = vld [vmem:[%s6070_s3 + $0x108] sm:$0xff] }
 0x54b   :  { %3343 = vrcp.f32 %v1576_v61 }
 0x54c   :  { %1965 = vperm.xlu1 %3153, %v1943_v25  }
 0x54d   :  { %v3336_v28 = vpop.eup %3335 }
 0x54e   :  { %v3338_v55 = vpop.eup %3337  ;;  %v1520_v30 = vpop.xlane.xlu1 %1519  ;;  %v1744_v57 = vmul.f32 %v3336_v28, %v4706_v36 }
 0x54f   :  { %v4902_v27 = vpop.xlane.xlu0 %1555  ;;  %v3340_v21 = vpop.eup %3339  ;;  %3345 = vrcp.f32 %v1520_v30  ;;  %v1740_v40 = vmul.f32 %v3338_v55, %v4708_v7 }
 0x550   :  { %v3342_v37 = vpop.eup %3341  ;;  %3347 = vrcp.f32 %v4719_v44  ;;  %1825 = vmatpush.xpose.msrb.mxu3 %v1744_v57  ;;  %v1743_v61 = vmul.f32 %v3340_v21, %v4686_v35 }
 0x551   :  { %3349 = vrcp.f32 %v1518_v18  ;;  %1793 = vmatpush.xpose.msra.mxu2 %v1740_v40  ;;  %v1739_v36 = vmul.f32 %v3342_v37, %v4654_v8  ;;  %v3344_v4 = vpop.eup %3343 }
 0x552   :  { %3351 = vrcp.f32 %v4857_v23  ;;  %v1738_v23 = vmul.f32 %v3344_v4, %v4666_v54 }
 0x553   :  { %3353 = vrcp.f32 %v4700_v43 }
 0x554   :  { %2882 = vperm.xlu1 %3153, %v2872_v32   ;;  %1826 = vmatpush.xpose.msrb.mxu3 %v1743_v61  ;;  %3355 = vrcp.f32 %v4842_v39 }
 0x555   :  { %v3346_v7 = vpop.eup %3345  ;;  %1794 = vmatpush.xpose.msra.mxu2 %v1739_v36  ;;  %3357 = vrcp.f32 %v4749_v47 }
 0x556   :  { %v3348_v44 = vpop.eup %3347  ;;  %v1710_v14 = vmul.f32 %v3346_v7, %v4723_v9  ;;  %3359 = vrcp.f32 %v4805_v15  ;;  %v4924_v9 = vpop.xlane.xlu2 %1551 }
 0x557   :  { %v4915_v57 = vpop.xlane.xlu0 %1619  ;;  %v3350_v25 = vpop.eup %3349  ;;  %v1772_v39 = vmul.f32 %v3348_v44, %v4448_v3  ;;  %3361 = vrcp.f32 %v4819_v11 }
 0x558   :  { %v3352_v35 = vpop.eup %3351  ;;  %1787 = vmatpush.xpose.msrb.mxu1 %v1710_v14  ;;  %v1709_v8 = vmul.f32 %v3350_v25, %v4710_v1  ;;  %3363 = vrcp.f32 %v4734_v63  ;;  %v6247_v1 = vld [vmem:[#allocation39_spill] sm:$0xff]  ;;  %v1554_v3 = vpop.xlane.xlu1 %1553 }
 0x559   :  { %1795 = vmatpush.xpose.msra.mxu2 %v1738_v23  ;;  %v3354_v43 = vpop.eup %3353  ;;  %v1737_v28 = vmul.f32 %v3352_v35, %v4649_v33  ;;  %v6252_v35 = vld [vmem:[#allocation41_spill] sm:$0xff] }
 0x55a   :  { %v3356_v18 = vpop.eup %3355  ;;  %v1771_v55 = vmul.f32 %v3354_v43, %v6247_v1 }
 0x55b   :  { %v3358_v47 = vpop.eup %3357  ;;  %v1736_v15 = vmul.f32 %v3356_v18, %v4632_v52 }
 0x55c   :  { %1788 = vmatpush.xpose.msrb.mxu1 %v1709_v8  ;;  %v3360_v30 = vpop.eup %3359  ;;  %v1770_v11 = vmul.f32 %v3358_v47, %v4486_v0 }
 0x55d   :  { %1796 = vmatpush.xpose.msra.mxu2 %v1737_v28  ;;  %v1735_v33 = vmul.f32 %v3360_v30, %v4579_v26  ;;  %v3362_v21 = vpop.eup %3361 }
 0x55e   :  { %v3364_v40 = vpop.eup %3363  ;;  %v4934_v63 = vpop.xlane.xlu2 %1549 }
 0x55f   :  { %v1584_v54 = vpop.xlane.xlu0 %1583  ;;  %v1769_v0 = vmul.f32 %v3364_v40, %v4468_v45 }
 0x560   :  { %1833 = vmatpush.xpose.msra.mxu1 %v1772_v39  ;;  %3365 = vrcp.f32 %v1584_v54  ;;  %v6253_v39 = vld [vmem:[#allocation8_spill] sm:$0xff] }
 0x561   :  { %1797 = vmatpush.xpose.msra.mxu2 %v1736_v15  ;;  %3367 = vrcp.f32 %v4799_v6  ;;  %v1734_v6 = vmul.f32 %v3362_v21, %v4595_v62  ;;  %v6254_v15 = vld [vmem:[#allocation16_spill] sm:$0xff] }
 0x562   :  { %3369 = vrcp.f32 %v4771_v17 }
 0x563   :  { %3371 = vrcp.f32 %v4781_v19 }
 0x564   :  { %1834 = vmatpush.xpose.msra.mxu1 %v1771_v55  ;;  %3373 = vrcp.f32 %v4751_v22  ;;  %v4944_v22 = vpop.xlane.xlu1 %1617 }
 0x565   :  { %1798 = vmatpush.xpose.msra.mxu2 %v1735_v33  ;;  %v6256_v33 = vld [vmem:[#allocation15_spill] sm:$0xff] }
 0x566   :  { %v3366_v52 = vpop.eup %3365  ;;  %v435_v45 = vpop.permute.xlu2 %434 }
 0x567   :  { %v1582_v37 = vpop.xlane.xlu0 %1581  ;;  %v1742_v17 = vmul.f32 %v3366_v52, %v4753_v12  ;;  %v3368_v32 = vpop.eup %3367 }
 0x568   :  { %1835 = vmatpush.xpose.msra.mxu1 %v1770_v11  ;;  %3375 = vrcp.f32 %v1582_v37  ;;  %v3370_v26 = vpop.eup %3369  ;;  %v1733_v19 = vmul.f32 %v3368_v32, %v4577_v31  ;;  %v6249_v31 = vld [vmem:[#allocation40_spill] sm:$0xff] }
 0x569   :  { %1799 = vmatpush.xpose.msra.mxu2 %v1734_v6  ;;  %1827 = vmatpush.xpose.msrb.mxu3 %v1742_v17  ;;  %3377 = vrcp.f32 %v4801_v50  ;;  %v3372_v61 = vpop.eup %3371  ;;  %v1768_v62 = vmul.f32 %v3370_v26, %v4522_v48  ;;  %v6248_v50 = vld [vmem:[#allocation42_spill] sm:$0xff]  ;;  %v6250_v48 = vld [vmem:[#allocation7_spill] sm:$0xff] }
 0x56a   :  { %3379 = vrcp.f32 %v4773_v38  ;;  %v3374_v12 = vpop.eup %3373  ;;  %v1732_v4 = vmul.f32 %v3372_v61, %v6248_v50  ;;  %v527_v25 = vadd.f32 %v6250_v48, %v435_v45  ;;  %v6257_v17 = vld [vmem:[#allocation3_spill] sm:$0xff]  ;;  %v6258_v61 = vld [vmem:[#allocation18_spill] sm:$0xff]  ;;  %v1855_v50 = vld [vmem:[%s6071_s1 + $0x70] sm:$0xff] }
 0x56b   :  { %3381 = vrcp.f32 %v4869_v46  ;;  %v1767_v44 = vmul.f32 %v3374_v12, %v6249_v31  ;;  %v6251_v46 = vld [vmem:[#allocation9_spill] sm:$0xff] }
 0x56c   :  { %1836 = vmatpush.xpose.msra.mxu1 %v1769_v0  ;;  %3383 = vrcp.f32 %v4817_v60  ;;  %v1616_v43 = vpop.xlane.xlu1 %1615 }
 0x56d   :  { %1800 = vmatpush.xpose.msra.mxu2 %v1733_v19  ;;  %3385 = vrcp.f32 %v4845_v41 }
 0x56e   :  { %v3376_v36 = vpop.eup %3375  ;;  %3387 = vrcp.f32 %v4787_v24  ;;  %v1879_v31 = vpop.permute.xlu2 %1878 }
 0x56f   :  { %v1741_v38 = vmul.f32 %v3376_v36, %v4767_v42  ;;  %v3378_v7 = vpop.eup %3377  ;;  %3389 = vrcp.f32 %v4902_v27 }
 0x570   :  { %1837 = vmatpush.xpose.msra.mxu1 %v1768_v62  ;;  %v3380_v14 = vpop.eup %3379  ;;  %v1731_v60 = vmul.f32 %v3378_v7, %v6251_v46  ;;  %3391 = vrcp.f32 %v4831_v34  ;;  %v6255_v34 = vld [vmem:[#allocation6_spill] sm:$0xff] }
 0x571   :  { %1801 = vmatpush.xpose.msra.mxu2 %v1732_v4  ;;  %1828 = vmatpush.xpose.msrb.mxu3 %v1741_v38  ;;  %v3382_v23 = vpop.eup %3381  ;;  %v1766_v8 = vmul.f32 %v3380_v14, %v6252_v35  ;;  %3393 = vrcp.f32 %v1554_v3  ;;  %v1856_v4 = vld [vmem:[%s6071_s1 + $0x78] sm:$0xff]  ;;  %v6260_v35 = vld [vmem:[#allocation10_spill] sm:$0xff] }
 0x572   :  { %v3384_v42 = vpop.eup %3383  ;;  %v1730_v41 = vmul.f32 %v3382_v23, %v4664_v49  ;;  %3395 = vrcp.f32 %v4884_v29 }
 0x573   :  { %v3386_v28 = vpop.eup %3385  ;;  %v1765_v18 = vmul.f32 %v3384_v42, %v6253_v39  ;;  %3397 = vrcp.f32 %v4924_v9  ;;  %v6264_v39 = vld [vmem:[#allocation4_spill] sm:$0xff] }
 0x574   :  { %1838 = vmatpush.xpose.msra.mxu1 %v1767_v44  ;;  %1829 = vmatmul.f32.vlgmr.msrb.gmra.mxu3 %v527_v25  ;;  %v3388_v24 = vpop.eup %3387  ;;  %v1729_v54 = vmul.f32 %v3386_v28, %v4634_v5  ;;  %3399 = vrcp.f32 %v4875_v51  ;;  %v1614_v5 = vpop.xlane.xlu0 %1613 }
 0x575   :  { %1802 = vmatpush.xpose.msra.mxu2 %v1731_v60  ;;  %v3390_v47 = vpop.eup %3389  ;;  %v1764_v27 = vmul.f32 %v3388_v24, %v6254_v15  ;;  %3401 = vrcp.f32 %v4934_v63  ;;  %v6266_v24 = vld [vmem:[#allocation2_spill] sm:$0xff]  ;;  %v1931_v15 = vld [vmem:[%s6071_s1 + $0xa8] sm:$0xff] }
 0x576   :  { %v3392_v1 = vpop.eup %3391  ;;  %v1728_v30 = vmul.f32 %v3390_v47, %v4721_v59  ;;  %3403 = vrcp.f32 %v4915_v57  ;;  %v1869_v60 = vpop.permute.xlu2 %1868  ;;  %v1926_v47 = vld [vmem:[%s6071_s1 + $0x80] sm:$0xff] }
 0x577   :  { %v3394_v3 = vpop.eup %3393  ;;  %v1763_v29 = vmul.f32 %v3392_v1, %v6256_v33  ;;  %3405 = vrcp.f32 %v4944_v22  ;;  %v1932_v1 = vld [vmem:[%s6071_s1 + $0xb0] sm:$0xff]  ;;  %v1935_v33 = vld [vmem:[%s6071_s1 + $0xc8] sm:$0xff] }
 0x578   :  { %1839 = vmatpush.xpose.msra.mxu1 %v1766_v8  ;;  %v3396_v11 = vpop.eup %3395  ;;  %v1727_v9 = vmul.f32 %v3394_v3, %v4740_v58  ;;  %3407 = vrcp.f32 %v1616_v43  ;;  %v1930_v3 = vld [vmem:[%s6071_s1 + $0xa0] sm:$0xff] }
 0x579   :  { %1803 = vmatpush.xpose.msra.mxu2 %v1730_v41  ;;  %v3398_v21 = vpop.eup %3397  ;;  %v1762_v51 = vmul.f32 %v3396_v11, %v4682_v2  ;;  %3409 = vrcp.f32 %v1614_v5  ;;  %v6262_v41 = vld [vmem:[#allocation11_spill] sm:$0xff]  ;;  %v1937_v11 = vld [vmem:[%s6071_s1 + $0xd8] sm:$0xff]  ;;  %v1938_v5 = vld [vmem:[%s6071_s1 + $0xe0] sm:$0xff] }
 0x57a   :  { %v3400_v40 = vpop.eup %3399  ;;  %v1726_v59 = vmul.f32 %v3398_v21, %v4727_v13  ;;  %v1940_v21 = vld [vmem:[%s6071_s1 + $0xf0] sm:$0xff] }
 0x57b   :  { %v3402_v52 = vpop.eup %3401  ;;  %v1761_v37 = vmul.f32 %v3400_v40, %v4668_v56 }
 0x57c   :  { %1840 = vmatpush.xpose.msra.mxu1 %v1765_v18  ;;  %v3404_v63 = vpop.eup %3403  ;;  %v1725_v58 = vmul.f32 %v3402_v52, %v4755_v53 }
 0x57d   :  { %1804 = vmatpush.xpose.msra.mxu2 %v1729_v54  ;;  %v1760_v6 = vmul.f32 %v3404_v63, %v4738_v20  ;;  %v3406_v2 = vpop.eup %3405  ;;  %v6259_v20 = vld [vmem:[#allocation5_spill] sm:$0xff] }
 0x57e   :  { %v425_v49 = vpop.permute.xlu1 %424  ;;  %v1759_v13 = vmul.f32 %v3406_v2, %v4757_v16  ;;  %v3408_v0 = vpop.eup %3407  ;;  %v1853_v16 = vld [vmem:[%s6071_s1 + $0x60] sm:$0xff] }
 0x57f   :  { %v521_v55 = vadd.f32 %v6255_v34, %v425_v49  ;;  %v1758_v56 = vmul.f32 %v3408_v0, %v4765_v10  ;;  %v3410_v26 = vpop.eup %3409  ;;  %v1854_v10 = vld [vmem:[%s6071_s1 + $0x68] sm:$0xff]  ;;  %v1928_v49 = vld [vmem:[%s6071_s1 + $0x90] sm:$0xff]  ;;  %v1933_v34 = vld [vmem:[%s6071_s1 + $0xb8] sm:$0xff]  ;;  %v5083_v40 = vpop.permute.xlu2 %2035 }
 0x580   :  { %1841 = vmatpush.xpose.msra.mxu1 %v1764_v27  ;;  %v1757_v53 = vmul.f32 %v3410_v26, %v6258_v61  ;;  %v1927_v27 = vld [vmem:[%s6071_s1 + $0x88] sm:$0xff] }
 0x581   :  { %1805 = vmatpush.xpose.msra.mxu2 %v1728_v30  ;;  %1789 = vmatmul.f32.vlgmr.msrb.gmra.mxu1 %v521_v55  ;;  %v430_v57 = vpop.permute.xlu0 %429  ;;  %v1929_v55 = vld [vmem:[%s6071_s1 + $0x98] sm:$0xff]  ;;  %v1934_v30 = vld [vmem:[%s6071_s1 + $0xc0] sm:$0xff] }
 0x582   :  { %v524_v32 = vadd.f32 %v6257_v17, %v430_v57 }
 0x584   :  { %1842 = vmatpush.xpose.msra.mxu1 %v1763_v29  ;;  %v1936_v29 = vld [vmem:[%s6071_s1 + $0xd0] sm:$0xff] }
 0x585   :  { %1806 = vmatpush.xpose.msra.mxu2 %v1727_v9  ;;  %v1939_v9 = vld [vmem:[%s6071_s1 + $0xe8] sm:$0xff] }
 0x586   :  { %v440_v19 = vpop.permute.xlu1 %439 }
 0x587   :  { %v530_v22 = vadd.f32 %v6259_v20, %v440_v19 }
 0x588   :  { %1843 = vmatpush.xpose.msra.mxu1 %v1762_v51  ;;  %v1941_v51 = vld [vmem:[%s6071_s1 + $0xf8] sm:$0xff] }
 0x589   :  { %1807 = vmatpush.xpose.msra.mxu2 %v1726_v59  ;;  %v5085_v59 = vpop.permute.xlu2 %2020 }
 0x58c   :  { %1844 = vmatpush.xpose.msra.mxu1 %v1761_v37  ;;  %v5089_v37 = vpop.permute.xlu0 %2030 }
 0x58d   :  { %1808 = vmatpush.xpose.msra.mxu2 %v1725_v58 }
 0x58e   :  { %v1874_v14 = vpop.permute.xlu1 %1873 }
 0x590   :  { %1845 = vmatpush.xpose.msra.mxu1 %v1760_v6  ;;  %1809 = vmatmul.f32.vlgmr.msra.gmra.mxu2 %v524_v32 }
 0x591   :  { %v5087_v52 = vpop.permute.xlu2 %2005 }
 0x594   :  { %1846 = vmatpush.xpose.msra.mxu1 %v1759_v13  ;;  %v5093_v58 = vpop.permute.xlu0 %2015 }
 0x596   :  { %v1864_v42 = vpop.permute.xlu1 %1863 }
 0x598   :  { %1847 = vmatpush.xpose.msra.mxu1 %v1758_v56 }
 0x599   :  { %v1991_v63 = vpop.permute.xlu2 %1990 }
 0x59c   :  { %1848 = vmatpush.xpose.msra.mxu1 %v1757_v53  ;;  %v5099_v17 = vpop.permute.xlu0 %2000 }
 0x59e   :  { %v5091_v57 = vpop.permute.xlu1 %2025 }
 0x59f   :  { %1849 = vmatmul.f32.vlgmr.msra.gmra.mxu1 %v530_v22 }
 0x5a1   :  { %v5095_v6 = vpop.permute.xlu2 %1975 }
 0x5a4   :  { %v1986_v61 = vpop.permute.xlu0 %1985 }
 0x5a6   :  { %v5097_v2 = vpop.permute.xlu1 %2010 }
 0x5a9   :  { %v1961_v13 = vpop.permute.xlu2 %1960 }
 0x5ae   :  { %v1996_v0 = vpop.permute.xlu1 %1995 }
 0x5b6   :  { %v5110_v22 = vpop.permute.xlu1 %1980 }
 0x5f7   :  { %v1830_v36 = vpop.f32.mrf.mxu3 }
 0x5fe   :  { %v1790_v62 = vpop.f32.mrf.mxu1 }
 0x613   :  { %v1810_v45 = vpop.f32.mrf.mxu2 }
 0x61c   :  { %v1850_v12 = vpop.f32.mrf.mxu1 }
 0x61d   :  { %1905 = vmatpush.msra.mxu2 %v1850_v12 }
 0x61f   :  { %1906 = vmatpush.msra.mxu2 %v1830_v36 }
 0x621   :  { %1907 = vmatpush.msra.mxu2 %v1810_v45 }
 0x623   :  { %1908 = vmatpush.msra.mxu2 %v1790_v62 }
 0x624   :  { %3044 = vmatmul.msk.f32.vlgmr.msra.gmra.mxu2 %vm442_vm0, %v1853_v16 }
 0x62c   :  { %3045 = vmatmul.msk.f32.gmra.mxu2 %vm442_vm0, %v1854_v10 }
 0x634   :  { %3046 = vmatmul.msk.f32.gmra.mxu2 %vm442_vm0, %v1855_v50 }
 0x63c   :  { %3047 = vmatmul.msk.f32.gmra.mxu2 %vm442_vm0, %v1856_v4 }
 0x6a7   :  { %v1910_v38 = vpop.f32.mrf.mxu2 }
 0x6a8   :  { %v1911_v43 = vadd.f32 %v1910_v38, %v1864_v42 }
 0x6aa   :  { %v5013_v54 = vadd.f32 %v1911_v43, %v6266_v24 }
 0x6ac   :  { %6267 = vst [vmem:[#allocation34_spill] sm:$0xff] %v5013_v54 }
 0x6af   :  { %v1913_v7 = vpop.f32.mrf.mxu2 }
 0x6b0   :  { %v1914_v23 = vadd.f32 %v1913_v7, %v1869_v60  ;;  %v1966_v7 = vpop.permute.xlu1 %1965 }
 0x6b2   :  { %v5008_v18 = vadd.f32 %v1914_v23, %v6264_v39 }
 0x6b4   :  { %6265 = vst [vmem:[#allocation32_spill] sm:$0xff] %v5008_v18 }
 0x6b7   :  { %v1916_v44 = vpop.f32.mrf.mxu2 }
 0x6b8   :  { %v1917_v25 = vadd.f32 %v1916_v44, %v1874_v14 }
 0x6ba   :  { %v5003_v28 = vadd.f32 %v1917_v25, %v6262_v41 }
 0x6bc   :  { %6263 = vst [vmem:[#allocation27_spill] sm:$0xff] %v5003_v28 }
 0x6bf   :  { %v1919_v48 = vpop.f32.mrf.mxu2 }
 0x6c0   :  { %v1920_v46 = vadd.f32 %v1919_v48, %v1879_v31 }
 0x6c2   :  { %v5000_v8 = vadd.f32 %v1920_v46, %v6260_v35 }
 0x6c4   :  { %6261 = vst [vmem:[#allocation12_spill] sm:$0xff] %v5000_v8  ;;  %2098 = vmatpush.msrb.mxu1 %v5000_v8  ;;  %3081 = vmatpush.msra.mxu3 %v5000_v8 }
 0x6c6   :  { %2099 = vmatpush.msrb.mxu1 %v5003_v28  ;;  %3082 = vmatpush.msra.mxu3 %v5003_v28 }
 0x6c8   :  { %2100 = vmatpush.msrb.mxu1 %v5008_v18  ;;  %3083 = vmatpush.msra.mxu3 %v5008_v18 }
 0x6ca   :  { %2101 = vmatpush.msrb.mxu1 %v5013_v54  ;;  %3084 = vmatpush.msra.mxu3 %v5013_v54 }
 0x6cb   :  { %3048 = vmatmul.msk.f32.vlgmr.msrb.gmra.mxu1 %vm442_vm0, %v1926_v47  ;;  %3053 = vmatmul.msk.f32.vlgmr.msra.gmra.mxu3 %vm442_vm0, %v1931_v15  ;;  %v1971_v15 = vpop.permute.xlu0 %1970 }
 0x6d3   :  { %3049 = vmatmul.msk.f32.gmra.mxu1 %vm442_vm0, %v1927_v27  ;;  %3054 = vmatmul.msk.f32.gmra.mxu3 %vm442_vm0, %v1932_v1 }
 0x6db   :  { %3050 = vmatmul.msk.f32.gmra.mxu1 %vm442_vm0, %v1928_v49  ;;  %3055 = vmatmul.msk.f32.gmra.mxu3 %vm442_vm0, %v1933_v34 }
 0x6e3   :  { %3051 = vmatmul.msk.f32.gmra.mxu1 %vm442_vm0, %v1929_v55  ;;  %3056 = vmatmul.msk.f32.gmra.mxu3 %vm442_vm0, %v1934_v30 }
 0x6eb   :  { %3052 = vmatmul.msk.f32.gmra.mxu1 %vm442_vm0, %v1930_v3  ;;  %3057 = vmatmul.msk.f32.gmra.mxu3 %vm442_vm0, %v1935_v33 }
 0x6f3   :  { %3058 = vmatmul.msk.f32.gmra.mxu3 %vm442_vm0, %v1936_v29 }
 0x6fb   :  { %3059 = vmatmul.msk.f32.gmra.mxu3 %vm442_vm0, %v1937_v11 }
 0x703   :  { %3060 = vmatmul.msk.f32.gmra.mxu3 %vm442_vm0, %v1938_v5 }
 0x70b   :  { %3061 = vmatmul.msk.f32.gmra.mxu3 %vm442_vm0, %v1939_v9 }
 0x713   :  { %3062 = vmatmul.msk.f32.gmra.mxu3 %vm442_vm0, %v1940_v21 }
 0x71b   :  { %3063 = vmatmul.msk.f32.gmra.mxu3 %vm442_vm0, %v1941_v51 }
 0x748   :  { %v2103_v32 = vpop.f32.mrf.mxu1 }
 0x749   :  { %v5101_v56 = vadd.f32 %v2103_v32, %v1961_v13 }
 0x74b   :  { %6268 = vst [vmem:[#allocation13_spill] sm:$0xff] %v5101_v56  ;;  %v5104_v19 = vmul.f32 0.70710677, %v5101_v56 }
 0x74d   :  { %6269 = vst [vmem:[#allocation29_spill] sm:$0xff] %v5104_v19  ;;  %v2183_v20 = vmul.f32 %v5104_v19, %v5104_v19 }
 0x74e   :  { %v2118_v26 = vpop.f32.mrf.mxu3 }
 0x74f   :  { %v5106_v53 = vadd.f32 %v2118_v26, %v1986_v61  ;;  %v5115_v36 = vmin.f32 %v2183_v20, 16.0 }
 0x750   :  { %v2106_v50 = vpop.f32.mrf.mxu1 }
 0x751   :  { %6270 = vst [vmem:[#allocation19_spill] sm:$0xff] %v5106_v53  ;;  %v5113_v62 = vmul.f32 0.70710677, %v5106_v53  ;;  %v2196_v10 = vmul.f32 3.8918573e-05, %v5115_v36  ;;  %v5127_v44 = vadd.f32 %v2106_v50, %v1966_v7 }
 0x752   :  { %v2185_v49 = vmul.f32 2.1237322e-06, %v5115_v36 }
 0x753   :  { %v2383_v45 = vmul.f32 %v5113_v62, %v5113_v62  ;;  %v2197_v31 = vadd.f32 0.001143296, %v2196_v10  ;;  %6272 = vst [vmem:[#allocation17_spill] sm:$0xff] %v5127_v44  ;;  %v5134_v46 = vmul.f32 0.70710677, %v5127_v44 }
 0x754   :  { %v2186_v5 = vadd.f32 0.00028619796, %v2185_v49 }
 0x755   :  { %v5122_v4 = vmin.f32 %v2383_v45, 16.0  ;;  %v2198_v25 = vmul.f32 %v2197_v31, %v5115_v36  ;;  %6273 = vst [vmem:[#allocation33_spill] sm:$0xff] %v5134_v46  ;;  %v2223_v42 = vmul.f32 %v5134_v46, %v5134_v46 }
 0x756   :  { %v2121_v12 = vpop.f32.mrf.mxu3 }
 0x757   :  { %v5119_v16 = vadd.f32 %v2121_v12, %v1991_v63  ;;  %v2396_v14 = vmul.f32 3.8918573e-05, %v5122_v4  ;;  %v2199_v35 = vadd.f32 0.014752088, %v2198_v25  ;;  %v5143_v24 = vmin.f32 %v2223_v42, 16.0 }
 0x758   :  { %v2109_v47 = vpop.f32.mrf.mxu1  ;;  %v2385_v30 = vmul.f32 2.1237322e-06, %v5122_v4  ;;  %v2187_v12 = vmul.f32 %v2186_v5, %v5115_v36 }
 0x759   :  { %6271 = vst [vmem:[#allocation14_spill] sm:$0xff] %v5119_v16  ;;  %v5125_v38 = vmul.f32 0.70710677, %v5119_v16  ;;  %v2397_v60 = vadd.f32 0.001143296, %v2396_v14  ;;  %v2200_v39 = vmul.f32 %v2199_v35, %v5115_v36  ;;  %v5146_v34 = vadd.f32 %v2109_v47, %v1971_v15 }
 0x75a   :  { %v2236_v3 = vmul.f32 3.8918573e-05, %v5143_v24  ;;  %v2386_v51 = vadd.f32 0.00028619796, %v2385_v30  ;;  %v2225_v32 = vmul.f32 2.1237322e-06, %v5143_v24 }
 0x75b   :  { %v2423_v48 = vmul.f32 %v5125_v38, %v5125_v38  ;;  %v2398_v43 = vmul.f32 %v2397_v60, %v5122_v4  ;;  %6274 = vst [vmem:[#allocation31_spill] sm:$0xff] %v5146_v34  ;;  %v2201_v55 = vadd.f32 0.112945676, %v2200_v39  ;;  %v5153_v9 = vmul.f32 0.70710677, %v5146_v34 }
 0x75c   :  { %v2237_v63 = vadd.f32 0.001143296, %v2236_v3  ;;  %v2387_v50 = vmul.f32 %v2386_v51, %v5122_v4  ;;  %v2226_v31 = vadd.f32 0.00028619796, %v2225_v32  ;;  %v2188_v60 = vadd.f32 0.0036580483, %v2187_v12 }
 0x75d   :  { %v5136_v23 = vmin.f32 %v2423_v48, 16.0  ;;  %v2399_v27 = vadd.f32 0.014752088, %v2398_v43  ;;  %6275 = vst [vmem:[#allocation28_spill] sm:$0xff] %v5153_v9  ;;  %v2202_v21 = vmul.f32 %v2201_v55, %v5115_v36  ;;  %v2263_v45 = vmul.f32 %v5153_v9, %v5153_v9 }
 0x75e   :  { %v2124_v11 = vpop.f32.mrf.mxu3  ;;  %v2238_v7 = vmul.f32 %v2237_v63, %v5143_v24  ;;  %v2388_v43 = vadd.f32 0.0036580483, %v2387_v50  ;;  %v2227_v39 = vmul.f32 %v2226_v31, %v5143_v24  ;;  %v2189_v49 = vmul.f32 %v2188_v60, %v5115_v36 }
 0x75f   :  { %v2436_v41 = vmul.f32 3.8918573e-05, %v5136_v23  ;;  %v2400_v33 = vmul.f32 %v2399_v27, %v5122_v4  ;;  %v5157_v13 = vadd.f32 %v2124_v11, %v1996_v0  ;;  %v2425_v61 = vmul.f32 2.1237322e-06, %v5136_v23 }
 0x760   :  { %v2203_v10 = vadd.f32 0.4994258, %v2202_v21  ;;  %v5170_v35 = vmin.f32 %v2263_v45, 16.0  ;;  %v2389_v3 = vmul.f32 %v2388_v43, %v5122_v4  ;;  %v2112_v63 = vpop.f32.mrf.mxu1 }
 0x761   :  { %v2437_v1 = vadd.f32 0.001143296, %v2436_v41  ;;  %6276 = vst [vmem:[#allocation23_spill] sm:$0xff] %v5157_v13  ;;  %v2401_v26 = vadd.f32 0.112945676, %v2400_v33  ;;  %v5191_v50 = vadd.f32 %v2112_v63, %v5095_v6 }
 0x762   :  { %v5166_v14 = vmul.f32 0.70710677, %v5157_v13  ;;  %v2426_v48 = vadd.f32 0.00028619796, %v2425_v61  ;;  %v2204_v42 = vmul.f32 %v2203_v10, %v5115_v36  ;;  %v2239_v41 = vadd.f32 0.014752088, %v2238_v7 }
 0x763   :  { %v2438_v29 = vmul.f32 %v2437_v1, %v5136_v23  ;;  %v2402_v0 = vmul.f32 %v2401_v26, %v5122_v4  ;;  %v2276_v55 = vmul.f32 3.8918573e-05, %v5170_v35  ;;  %v2190_v26 = vadd.f32 0.05243302, %v2189_v49  ;;  %6278 = vst [vmem:[#allocation26_spill] sm:$0xff] %v5191_v50 }
 0x764   :  { %v2463_v47 = vmul.f32 %v5166_v14, %v5166_v14  ;;  %v2427_v27 = vmul.f32 %v2426_v48, %v5136_v23  ;;  %v5179_v30 = vadd.f32 1.0, %v2204_v42  ;;  %v2240_v33 = vmul.f32 %v2239_v41, %v5143_v24 }
 0x765   :  { %v2439_v20 = vadd.f32 0.014752088, %v2438_v29  ;;  %v2403_v15 = vadd.f32 0.4994258, %v2402_v0  ;;  %v2228_v29 = vadd.f32 0.0036580483, %v2227_v39  ;;  %v2191_v48 = vmul.f32 %v2190_v26, %v5115_v36 }
 0x766   :  { %6277 = vst [vmem:[#allocation38_spill] sm:$0xff] %v5179_v30  ;;  %v5183_v11 = vmin.f32 %v2463_v47, 16.0  ;;  %v2428_v21 = vadd.f32 0.0036580483, %v2427_v27  ;;  %v2127_v32 = vpop.f32.mrf.mxu3  ;;  %v2277_v61 = vadd.f32 0.001143296, %v2276_v55  ;;  %3411 = vrcp.f32 %v5179_v30 }
 0x767   :  { %v2440_v25 = vmul.f32 %v2439_v20, %v5136_v23  ;;  %v2404_v5 = vmul.f32 %v2403_v15, %v5122_v4  ;;  %v2390_v20 = vadd.f32 0.05243302, %v2389_v3  ;;  %v2241_v12 = vadd.f32 0.112945676, %v2240_v33 }
 0x768   :  { %v2229_v45 = vmul.f32 %v2228_v29, %v5143_v24  ;;  %v2476_v10 = vmul.f32 3.8918573e-05, %v5183_v11  ;;  %v2429_v31 = vmul.f32 %v2428_v21, %v5136_v23  ;;  %v5201_v43 = vadd.f32 %v2127_v32, %v5099_v17 }
 0x769   :  { %v2441_v1 = vadd.f32 0.112945676, %v2440_v25  ;;  %v5193_v7 = vadd.f32 1.0, %v2404_v5  ;;  %v2278_v25 = vmul.f32 %v2277_v61, %v5170_v35  ;;  %v2391_v60 = vmul.f32 %v2390_v20, %v5122_v4 }
 0x76a   :  { %v2242_v42 = vmul.f32 %v2241_v12, %v5143_v24  ;;  %6279 = vst [vmem:[#allocation20_spill] sm:$0xff] %v5201_v43  ;;  %v2230_v41 = vadd.f32 0.05243302, %v2229_v45  ;;  %v2477_v39 = vadd.f32 0.001143296, %v2476_v10  ;;  %vm2211_vm7 = vweird.f32 %v5179_v30 }
 0x76b   :  { %v2442_v51 = vmul.f32 %v2441_v1, %v5136_v23  ;;  %v5204_v6 = vmul.f32 0.70710677, %v5191_v50  ;;  %3413 = vrcp.f32 %v5193_v7  ;;  %v2430_v15 = vadd.f32 0.05243302, %v2429_v31 }
 0x76c   :  { %v5206_v47 = vpop.eup %3411  ;;  %v2265_v1 = vmul.f32 2.1237322e-06, %v5170_v35  ;;  %v2192_v49 = vadd.f32 0.18741608, %v2191_v48  ;;  %v2279_v55 = vadd.f32 0.014752088, %v2278_v25  ;;  %v2231_v21 = vmul.f32 %v2230_v41, %v5143_v24 }
 0x76d   :  { %v2443_v0 = vadd.f32 0.4994258, %v2442_v51  ;;  %6280 = vst [vmem:[#allocation21_spill] sm:$0xff] %v5204_v6  ;;  %v2392_v3 = vadd.f32 0.18741608, %v2391_v60  ;;  %v2207_v5 = vmul.f32 %v5206_v47, %v5179_v30  ;;  %v2478_v51 = vmul.f32 %v2477_v39, %v5183_v11  ;;  %v2857_v30 = vld [vmem:[%s6071_s1 + $0x110] sm:$0xff] }
 0x76e   :  { %6281 = vst [vmem:[#allocation25_spill] sm:$0xff] %v5206_v47  ;;  %v2243_v33 = vadd.f32 0.4994258, %v2242_v42  ;;  %v5212_v17 = vmul.f32 0.70710677, %v5201_v43  ;;  %v5214_v29 = vpop.f32.mrf.mxu3  ;;  %v2303_v63 = vmul.f32 %v5204_v6, %v5204_v6  ;;  %v2431_v32 = vmul.f32 %v2430_v15, %v5136_v23 }
 0x76f   :  { %v2444_v27 = vmul.f32 %v2443_v0, %v5136_v23  ;;  %v2266_v61 = vadd.f32 0.00028619796, %v2265_v1  ;;  %v2193_v20 = vmul.f32 %v2192_v49, %v5115_v36  ;;  %v2280_v12 = vmul.f32 %v2279_v55, %v5170_v35 }
 0x770   :  { %v2393_v10 = vmul.f32 %v2392_v3, %v5122_v4  ;;  %v2244_v31 = vmul.f32 %v2243_v33, %v5143_v24  ;;  %v2503_v0 = vmul.f32 %v5212_v17, %v5212_v17  ;;  %v2208_v48 = vsub.f32 1.0, %v2207_v5 }
 0x771   :  { %v5223_v26 = vadd.f32 1.0, %v2444_v27  ;;  %v5227_v45 = vpop.eup %3413  ;;  %v2232_v25 = vadd.f32 0.18741608, %v2231_v21  ;;  %v2479_v60 = vadd.f32 0.014752088, %v2478_v51  ;;  %v5233_v42 = vmin.f32 %v2303_v63, 16.0 }
 0x772   :  { %v2432_v41 = vadd.f32 0.18741608, %v2431_v32  ;;  %v2267_v36 = vmul.f32 %v2266_v61, %v5170_v35  ;;  %v2465_v39 = vmul.f32 2.1237322e-06, %v5183_v11  ;;  %v5238_v15 = vadd.f32 1.1283791, %v2193_v20 }
 0x773   :  { %3415 = vrcp.f32 %v5223_v26  ;;  %v2407_v4 = vmul.f32 %v5227_v45, %v5193_v7  ;;  %v2281_v27 = vadd.f32 0.112945676, %v2280_v12  ;;  %v5244_v49 = vadd.f32 1.0, %v2244_v31 }
 0x774   :  { %6282 = vst [vmem:[#allocation36_spill] sm:$0xff] %v5238_v15  ;;  %v5246_v55 = vmin.f32 %v2503_v0, 16.0  ;;  %v2394_v3 = vadd.f32 1.1283791, %v2393_v10  ;;  %v2233_v33 = vmul.f32 %v2232_v25, %v5143_v24  ;;  %v2480_v5 = vmul.f32 %v2479_v60, %v5183_v11 }
 0x775   :  { %6283 = vst [vmem:[#allocation22_spill] sm:$0xff] %v5244_v49  ;;  %v2316_v21 = vmul.f32 3.8918573e-05, %v5233_v42  ;;  %v2209_v51 = vmul.f32 %v5206_v47, %v2208_v48  ;;  %v2433_v63 = vmul.f32 %v2432_v41, %v5136_v23  ;;  %v2268_v32 = vadd.f32 0.0036580483, %v2267_v36  ;;  %v2115_v36 = vpop.f32.mrf.mxu1 }
 0x776   :  { %v2466_v61 = vadd.f32 0.00028619796, %v2465_v39  ;;  %v2133_v20 = vpop.f32.mrf.mxu3  ;;  %v2408_v31 = vsub.f32 1.0, %v2407_v4  ;;  %v2417_v0 = vand.u32 2147483648, %v5193_v7  ;;  %v2282_v10 = vmul.f32 %v2281_v27, %v5170_v35 }
 0x777   :  { %vm2212_vm8 = vweird.f32 %v5206_v47  ;;  %v2415_v24 = vand.u32 2147483647, %v5193_v7  ;;  %3417 = vrcp.f32 %v5244_v49  ;;  %v2516_v23 = vmul.f32 3.8918573e-05, %v5246_v55 }
 0x778   :  { %v5263_v48 = vmul.f32 %v2394_v3, %v5113_v62  ;;  %v5265_v25 = vadd.f32 1.1283791, %v2233_v33  ;;  %v2481_v60 = vadd.f32 0.112945676, %v2480_v5  ;;  %v2317_v41 = vadd.f32 0.001143296, %v2316_v21  ;;  %vm5287_vm10 = vmor %vm2211_vm7, %vm2212_vm8 }
 0x779   :  { %v5256_v1 = vpop.eup %3415  ;;  %v5268_v39 = vadd.f32 %v5206_v47, %v2209_v51  ;;  %v2434_v4 = vadd.f32 1.1283791, %v2433_v63  ;;  %v2269_v27 = vmul.f32 %v2268_v32, %v5170_v35  ;;  %v2467_v12 = vmul.f32 %v2466_v61, %v5183_v11 }
 0x77a   :  { %6284 = vst [vmem:[#allocation35_spill] sm:$0xff] %v5265_v25  ;;  %v2409_v8 = vmul.f32 %v5227_v45, %v2408_v31  ;;  %vm2411_vm9 = vweird.f32 %v5193_v7  ;;  %v5274_v28 = vor.u32 1.1754944e-38, %v2417_v0  ;;  %v2447_v62 = vmul.f32 %v5256_v1, %v5223_v26 }
 0x77b   :  { %6285 = vst [vmem:[#allocation24_spill] sm:$0xff] %v5268_v39  ;;  %v2283_v3 = vadd.f32 0.4994258, %v2282_v10  ;;  %v2505_v5 = vmul.f32 2.1237322e-06, %v5246_v55  ;;  %v5281_v51 = vadd.f32 %v2115_v36, %v5110_v22  ;;  %v6287_v63 = vmov 0 }
 0x77c   :  { %v2517_v21 = vadd.f32 0.001143296, %v2516_v23  ;;  %v6288_v63 = vsel %vm5287_vm10, 4294967295, %v6287_v63  ;;  %vm2412_vm11 = vweird.f32 %v5227_v45  ;;  %v2482_v61 = vmul.f32 %v2481_v60, %v5183_v11 }
 0x77d   :  { %6286 = vst [vmem:[#allocation37_spill] sm:$0xff] %v5281_v51  ;;  %v2318_v31 = vmul.f32 %v2317_v41, %v5233_v42  ;;  %v5295_v0 = vpop.eup %3417  ;;  %v5302_v10 = vmul.f32 %v2434_v4, %v5125_v38  ;;  %v2270_v23 = vadd.f32 0.05243302, %v2269_v27  ;;  %v2468_v36 = vadd.f32 0.0036580483, %v2467_v12  ;;  %vm5338_vm14 = vmor %vm2411_vm9, %vm2412_vm11 }
 0x77e   :  { %6289 = vst [vmem:[#allocation30_spill] sm:$0xff] %v6288_v63  ;;  %v2410_v33 = vadd.f32 %v5227_v45, %v2409_v8  ;;  %v2448_v18 = vsub.f32 1.0, %v2447_v62  ;;  %v2284_v32 = vmul.f32 %v2283_v3, %v5170_v35  ;;  %v2305_v60 = vmul.f32 2.1237322e-06, %v5233_v42  ;;  %v2136_v8 = vpop.f32.mrf.mxu3 }
 0x77f   :  { %6290 = vst [vmem:[#allocation39_spill] sm:$0xff] %v5295_v0  ;;  %vm5307_vm12 = vcmp.eq.f32.partialorder %v2415_v24, 8.507059e+37  ;;  %v2506_v54 = vadd.f32 0.00028619796, %v2505_v5  ;;  %v2518_v56 = vmul.f32 %v2517_v21, %v5246_v55  ;;  %v5313_v22 = vmul.f32 0.70710677, %v5281_v51 }
 0x780   :  { %v5317_v38 = vadd.f32 %v5214_v29, %v5087_v52  ;;  %v2247_v12 = vmul.f32 %v5295_v0, %v5244_v49  ;;  %vm2451_vm13 = vweird.f32 %v5223_v26  ;;  %v2483_v24 = vadd.f32 0.4994258, %v2482_v61 }
 0x781   :  { %6293 = vst [vmem:[#allocation42_spill] sm:$0xff] %v5313_v22  ;;  %v2319_v4 = vadd.f32 0.014752088, %v2318_v31  ;;  %v2455_v27 = vand.u32 2147483647, %v5223_v26  ;;  %v2457_v62 = vand.u32 2147483648, %v5223_v26  ;;  %v2469_v3 = vmul.f32 %v2468_v36, %v5183_v11 }
 0x782   :  { %6294 = vst [vmem:[#allocation40_spill] sm:$0xff] %v5317_v38  ;;  %v5326_v5 = vadd.f32 %v2133_v20, %v5097_v2  ;;  %v2449_v52 = vmul.f32 %v5256_v1, %v2448_v18  ;;  %v5329_v29 = vadd.f32 1.0, %v2284_v32  ;;  %v2306_v21 = vadd.f32 0.00028619796, %v2305_v60 }
 0x783   :  { %v5332_v44 = vadd.f32 %v2136_v8, %v5093_v58  ;;  %v2507_v31 = vmul.f32 %v2506_v54, %v5246_v55  ;;  %v2519_v2 = vadd.f32 0.014752088, %v2518_v56  ;;  %v2343_v18 = vmul.f32 %v5313_v22, %v5313_v22 }
 0x784   :  { %6295 = vst [vmem:[#allocation7_spill] sm:$0xff] %v5326_v5  ;;  %v5346_v20 = vmul.f32 0.70710677, %v5317_v38  ;;  %v2414_v58 = vsel %vm5338_vm14, %v5227_v45, %v2410_v33  ;;  %v2248_v32 = vsub.f32 1.0, %v2247_v12  ;;  %vm2252_vm15 = vweird.f32 %v5295_v0 }
 0x785   :  { %6296 = vst [vmem:[#allocation9_spill] sm:$0xff] %v5329_v29  ;;  %v2484_v7 = vmul.f32 %v2483_v24, %v5183_v11  ;;  %v2320_v36 = vmul.f32 %v2319_v4, %v5233_v42  ;;  %vm2452_vm0 = vweird.f32 %v5256_v1  ;;  %v2271_v54 = vmul.f32 %v2270_v23, %v5170_v35 }
 0x786   :  { %6297 = vst [vmem:[#allocation41_spill] sm:$0xff] %v5332_v44  ;;  %v2470_v56 = vadd.f32 0.05243302, %v2469_v3  ;;  %v5357_v60 = vmul.f32 0.70710677, %v5326_v5  ;;  %vm2251_vm1 = vweird.f32 %v5244_v49  ;;  %v2450_v8 = vadd.f32 %v5256_v1, %v2449_v52  ;;  %vm5381_vm2 = vmor %vm2451_vm13, %vm2452_vm0 }
 0x787   :  { %3419 = vrcp.f32 %v5329_v29  ;;  %v2307_v45 = vmul.f32 %v2306_v21, %v5233_v42  ;;  %v5364_v33 = vmul.f32 0.70710677, %v5332_v44  ;;  %v2508_v12 = vadd.f32 0.0036580483, %v2507_v31  ;;  %vm5427_vm4 = vmor %vm2251_vm1, %vm2252_vm15 }
 0x788   :  { %v2520_v24 = vmul.f32 %v2519_v2, %v5246_v55  ;;  %v5367_v4 = vmin.f32 %v2343_v18, 16.0  ;;  %v2543_v23 = vmul.f32 %v5346_v20, %v5346_v20  ;;  %v2419_v3 = vsel %vm5307_vm12, %v5274_v28, %v2414_v58 }
 0x789   :  { %v2249_v52 = vmul.f32 %v5295_v0, %v2248_v32  ;;  %v5375_v61 = vadd.f32 1.0, %v2484_v7  ;;  %v2321_v21 = vadd.f32 0.112945676, %v2320_v36  ;;  %vm5385_vm3 = vcmp.eq.f32.partialorder %v2455_v27, 8.507059e+37 }
 0x78a   :  { %v2272_v18 = vadd.f32 0.18741608, %v2271_v54  ;;  %v2471_v28 = vmul.f32 %v2470_v56, %v5183_v11  ;;  %v2583_v41 = vmul.f32 %v5357_v60, %v5357_v60  ;;  %v2454_v58 = vsel %vm5381_vm2, %v5256_v1, %v2450_v8  ;;  %v2139_v56 = vpop.f32.mrf.mxu3 }
 0x78b   :  { %v2458_v32 = vor.u32 1.1754944e-38, %v2457_v62  ;;  %v2308_v26 = vadd.f32 0.0036580483, %v2307_v45  ;;  %v2623_v7 = vmul.f32 %v5364_v33, %v5364_v33  ;;  %v2509_v27 = vmul.f32 %v2508_v12, %v5246_v55 }
 0x78c   :  { %v2521_v36 = vadd.f32 0.112945676, %v2520_v24  ;;  %v2345_v34 = vmul.f32 2.1237322e-06, %v5367_v4  ;;  %v5399_v54 = vmin.f32 %v2543_v23, 16.0  ;;  %v5404_v51 = vadd.f32 %v5295_v0, %v2249_v52 }
 0x78d   :  { %v5401_v50 = vpop.eup %3419  ;;  %3421 = vrcp.f32 %v5375_v61  ;;  %v2322_v1 = vmul.f32 %v2321_v21, %v5233_v42  ;;  %v2356_v62 = vmul.f32 3.8918573e-05, %v5367_v4  ;;  %v5410_v8 = vmul.f32 %v2419_v3, %v5263_v48 }
 0x78e   :  { %6304 = vst [vmem:[#allocation8_spill] sm:$0xff] %v5401_v50  ;;  %v2273_v45 = vmul.f32 %v2272_v18, %v5170_v35  ;;  %v2472_v12 = vadd.f32 0.18741608, %v2471_v28  ;;  %v5413_v24 = vmin.f32 %v2583_v41, 16.0  ;;  %v2459_v23 = vsel %vm5385_vm3, %v2458_v32, %v2454_v58 }
 0x78f   :  { %6305 = vst [vmem:[#allocation16_spill] sm:$0xff] %v5404_v51  ;;  %v2309_v52 = vmul.f32 %v2308_v26, %v5233_v42  ;;  %v5418_v31 = vmin.f32 %v2623_v7, 16.0  ;;  %v5421_v53 = vadd.f32 %v2139_v56, %v5085_v59  ;;  %v6308_v48 = vmov 0 }
 0x790   :  { %6306 = vst [vmem:[#allocation6_spill] sm:$0xff] %v5410_v8  ;;  %v6309_v48 = vsel %vm5427_vm4, 4294967295, %v6308_v48  ;;  %v2510_v35 = vadd.f32 0.05243302, %v2509_v27  ;;  %v2522_v3 = vmul.f32 %v2521_v36, %v5246_v55  ;;  %v2346_v21 = vadd.f32 0.00028619796, %v2345_v34 }
 0x791   :  { %6307 = vst [vmem:[#allocation15_spill] sm:$0xff] %v5421_v53  ;;  %v2556_v2 = vmul.f32 3.8918573e-05, %v5399_v54  ;;  %v2287_v18 = vmul.f32 %v5401_v50, %v5329_v29  ;;  %v2323_v28 = vadd.f32 0.4994258, %v2322_v1  ;;  %v2473_v26 = vmul.f32 %v2472_v12, %v5183_v11 }
 0x792   :  { %6310 = vst [vmem:[#allocation3_spill] sm:$0xff] %v6309_v48  ;;  %v2357_v41 = vadd.f32 0.001143296, %v2356_v62  ;;  %v5439_v58 = vadd.f32 1.1283791, %v2273_v45  ;;  %v5447_v27 = vmul.f32 %v2459_v23, %v5302_v10  ;;  %v2511_v1 = vmul.f32 %v2510_v35, %v5246_v55  ;;  %v2142_v35 = vpop.f32.mrf.mxu3 }
 0x793   :  { %v2596_v34 = vmul.f32 3.8918573e-05, %v5413_v24  ;;  %v5444_v7 = vpop.eup %3421  ;;  %v2310_v36 = vadd.f32 0.05243302, %v2309_v52  ;;  %v2636_v56 = vmul.f32 3.8918573e-05, %v5418_v31  ;;  %v2347_v45 = vmul.f32 %v2346_v21, %v5367_v4 }
 0x794   :  { %6311 = vst [vmem:[#allocation18_spill] sm:$0xff] %v5439_v58  ;;  %v5451_v59 = vmul.f32 0.70710677, %v5421_v53  ;;  %v2523_v62 = vadd.f32 0.4994258, %v2522_v3  ;;  %v2288_v11 = vsub.f32 1.0, %v2287_v18  ;;  %v2324_v12 = vmul.f32 %v2323_v28, %v5233_v42 }
 0x795   :  { %6312 = vst [vmem:[#allocation5_spill] sm:$0xff] %v5447_v27  ;;  %v2557_v32 = vadd.f32 0.001143296, %v2556_v2  ;;  %v2358_v16 = vmul.f32 %v2357_v41, %v5367_v4  ;;  %v2474_v23 = vadd.f32 1.1283791, %v2473_v26  ;;  %v2487_v52 = vmul.f32 %v5444_v7, %v5375_v61 }
 0x796   :  { %v2663_v10 = vmul.f32 %v5451_v59, %v5451_v59  ;;  %v2545_v39 = vmul.f32 2.1237322e-06, %v5399_v54  ;;  %v2597_v47 = vadd.f32 0.001143296, %v2596_v34  ;;  %vm2291_vm5 = vweird.f32 %v5329_v29 }
 0x797   :  { %vm2292_vm6 = vweird.f32 %v5401_v50  ;;  %v2311_v21 = vmul.f32 %v2310_v36, %v5233_v42  ;;  %v2637_v2 = vadd.f32 0.001143296, %v2636_v56  ;;  %v2512_v18 = vadd.f32 0.18741608, %v2511_v1 }
 0x798   :  { %v2524_v28 = vmul.f32 %v2523_v62, %v5246_v55  ;;  %v2348_v41 = vadd.f32 0.0036580483, %v2347_v45  ;;  %v2558_v26 = vmul.f32 %v2557_v32, %v5399_v54  ;;  %v2289_v63 = vmul.f32 %v5401_v50, %v2288_v11  ;;  %vm5500_vm7 = vmor %vm2291_vm5, %vm2292_vm6 }
 0x799   :  { %v5469_v15 = vadd.f32 1.0, %v2324_v12  ;;  %v2359_v34 = vadd.f32 0.014752088, %v2358_v16  ;;  %v5471_v19 = vmin.f32 %v2663_v10, 16.0  ;;  %v5474_v13 = vmul.f32 %v2474_v23, %v5166_v14 }
 0x79a   :  { %v2488_v3 = vsub.f32 1.0, %v2487_v52  ;;  %v2546_v51 = vadd.f32 0.00028619796, %v2545_v39  ;;  %v2598_v36 = vmul.f32 %v2597_v47, %v5413_v24  ;;  %v2497_v56 = vand.u32 2147483648, %v5375_v61 }
 0x79b   :  { %6313 = vst [vmem:[#allocation10_spill] sm:$0xff] %v5474_v13  ;;  %v2312_v1 = vadd.f32 0.18741608, %v2311_v21  ;;  %v2585_v62 = vmul.f32 2.1237322e-06, %v5413_v24  ;;  %v2638_v32 = vmul.f32 %v2637_v2, %v5418_v31  ;;  %v2513_v45 = vmul.f32 %v2512_v18, %v5246_v55 }
 0x79c   :  { %v5481_v11 = vadd.f32 1.0, %v2524_v28  ;;  %v2349_v16 = vmul.f32 %v2348_v41, %v5367_v4  ;;  %v2559_v12 = vadd.f32 0.014752088, %v2558_v26  ;;  %v5485_v14 = vadd.f32 %v5401_v50, %v2289_v63  ;;  %v2145_v26 = vpop.f32.mrf.mxu3 }
 0x79d   :  { %3423 = vrcp.f32 %v5469_v15  ;;  %v2360_v47 = vmul.f32 %v2359_v34, %v5367_v4  ;;  %v2676_v39 = vmul.f32 3.8918573e-05, %v5471_v19  ;;  %v2489_v10 = vmul.f32 %v5444_v7, %v2488_v3 }
 0x79e   :  { %6314 = vst [vmem:[#allocation11_spill] sm:$0xff] %v5485_v14  ;;  %v2495_v23 = vand.u32 2147483647, %v5375_v61  ;;  %v2547_v55 = vmul.f32 %v2546_v51, %v5399_v54  ;;  %v2599_v52 = vadd.f32 0.014752088, %v2598_v36  ;;  %v5494_v28 = vadd.f32 %v2142_v35, %v5091_v57 }
 0x79f   :  { %v2586_v21 = vadd.f32 0.00028619796, %v2585_v62  ;;  %v2639_v2 = vadd.f32 0.014752088, %v2638_v32  ;;  %v2677_v18 = vadd.f32 0.001143296, %v2676_v39  ;;  %3425 = vrcp.f32 %v5481_v11 }
 0x7a0   :  { %6315 = vst [vmem:[#allocation4_spill] sm:$0xff] %v5494_v28  ;;  %v6316_v63 = vmov 0  ;;  %v2514_v3 = vadd.f32 1.1283791, %v2513_v45  ;;  %v2350_v41 = vadd.f32 0.05243302, %v2349_v16  ;;  %v2560_v51 = vmul.f32 %v2559_v12, %v5399_v54 }
 0x7a1   :  { %v6317_v63 = vsel %vm5500_vm7, 4294967295, %v6316_v63  ;;  %v5510_v35 = vor.u32 1.1754944e-38, %v2497_v56  ;;  %v5513_v34 = vmul.f32 %v2312_v1, %v5233_v42  ;;  %v2361_v36 = vadd.f32 0.112945676, %v2360_v47 }
 0x7a2   :  { %6318 = vst [vmem:[#allocation2_spill] sm:$0xff] %v6317_v63  ;;  %vm2491_vm8 = vweird.f32 %v5375_v61  ;;  %vm2492_vm9 = vweird.f32 %v5444_v7  ;;  %v2548_v32 = vadd.f32 0.0036580483, %v2547_v55  ;;  %v2600_v45 = vmul.f32 %v2599_v52, %v5413_v24 }
 0x7a3   :  { %6319 = vst [vmem:[#allocation43_spill] sm:$0xff] %v5513_v34  ;;  %v5519_v16 = vpop.eup %3423  ;;  %v2587_v12 = vmul.f32 %v2586_v21, %v5413_v24  ;;  %v2640_v56 = vmul.f32 %v2639_v2, %v5418_v31  ;;  %v2678_v39 = vmul.f32 %v2677_v18, %v5471_v19  ;;  %v5525_v42 = vmul.f32 0.70710677, %v5494_v28  ;;  %vm5575_vm12 = vmor %vm2491_vm8, %vm2492_vm9 }
 0x7a4   :  { %v5528_v1 = vadd.f32 %v5444_v7, %v2489_v10  ;;  %v5531_v47 = vmul.f32 %v2514_v3, %v5212_v17  ;;  %v2351_v55 = vmul.f32 %v2350_v41, %v5367_v4  ;;  %v2561_v52 = vadd.f32 0.112945676, %v2560_v51  ;;  %v2148_v43 = vpop.f32.mrf.mxu3 }
 0x7a5   :  { %v2537_v57 = vand.u32 2147483648, %v5481_v11  ;;  %v2362_v21 = vmul.f32 %v2361_v36, %v5367_v4  ;;  %v2679_v62 = vadd.f32 0.014752088, %v2678_v39  ;;  %v2703_v2 = vmul.f32 %v5525_v42, %v5525_v42  ;;  %v5538_v18 = vpop.eup %3425 }
 0x7a6   :  { %v5542_v10 = vmul.f32 %v5519_v16, %v5469_v15  ;;  %v2549_v17 = vmul.f32 %v2548_v32, %v5399_v54  ;;  %v2601_v3 = vadd.f32 0.112945676, %v2600_v45  ;;  %v2625_v41 = vmul.f32 2.1237322e-06, %v5418_v31 }
 0x7a7   :  { %v2588_v51 = vadd.f32 0.0036580483, %v2587_v12  ;;  %v2641_v0 = vadd.f32 0.112945676, %v2640_v56  ;;  %v2680_v48 = vmul.f32 %v2679_v62, %v5471_v19  ;;  %v5547_v36 = vmin.f32 %v2703_v2, 16.0 }
 0x7a8   :  { %vm5549_vm11 = vcmp.eq.f32.partialorder %v2495_v23, 8.507059e+37  ;;  %v5554_v46 = vadd.f32 0.18741608, %v2351_v55  ;;  %v2562_v8 = vmul.f32 %v2561_v52, %v5399_v54  ;;  %v5558_v32 = vadd.f32 %v2145_v26, %v5089_v37  ;;  %v2870_v37 = vld [vmem:[%s6071_s1 + $0x178] sm:$0xff] }
 0x7a9   :  { %v2527_v45 = vmul.f32 %v5538_v18, %v5481_v11  ;;  %v5562_v12 = vor.u32 1.1754944e-38, %v2537_v57  ;;  %v2363_v62 = vadd.f32 0.4994258, %v2362_v21  ;;  %v2681_v56 = vadd.f32 0.112945676, %v2680_v48  ;;  %3088 = vmatpush.lsf.msrb.mxu2 %v2870_v37  ;;  %v2868_v37 = vld [vmem:[%s6071_s1 + $0x168] sm:$0xff] }
 0x7aa   :  { %v2602_v2 = vmul.f32 %v2601_v3, %v5413_v24  ;;  %v2665_v25 = vmul.f32 2.1237322e-06, %v5471_v19  ;;  %v2716_v55 = vmul.f32 3.8918573e-05, %v5547_v36  ;;  %v2550_v48 = vadd.f32 0.05243302, %v2549_v17 }
 0x7ab   :  { %v2589_v57 = vmul.f32 %v2588_v51, %v5413_v24  ;;  %v2626_v52 = vadd.f32 0.00028619796, %v2625_v41  ;;  %v2642_v21 = vmul.f32 %v2641_v0, %v5418_v31  ;;  %v2869_v3 = vld [vmem:[%s6071_s1 + $0x170] sm:$0xff]  ;;  %v2494_v61 = vsel %vm5575_vm12, %v5444_v7, %v5528_v1 }
 0x7ac   :  { %v2563_v23 = vadd.f32 0.4994258, %v2562_v8  ;;  %v2717_v14 = vadd.f32 0.001143296, %v2716_v55  ;;  %v5589_v50 = vmul.f32 0.70710677, %v5558_v32  ;;  %v2364_v41 = vmul.f32 %v2363_v62, %v5367_v4  ;;  %3089 = vmatpush.lsf.msrb.mxu2 %v2869_v3 }
 0x7ad   :  { %v2528_v17 = vsub.f32 1.0, %v2527_v45  ;;  %v2682_v0 = vmul.f32 %v2681_v56, %v5471_v19  ;;  %v5594_v51 = vadd.f32 %v2148_v43, %v5083_v40  ;;  %v2603_v26 = vadd.f32 0.4994258, %v2602_v2  ;;  %v2867_v40 = vld [vmem:[%s6071_s1 + $0x160] sm:$0xff] }
 0x7ae   :  { %v2666_v7 = vadd.f32 0.00028619796, %v2665_v25  ;;  %v2718_v8 = vmul.f32 %v2717_v14, %v5547_v36  ;;  %v2743_v1 = vmul.f32 %v5589_v50, %v5589_v50  ;;  %v2551_v45 = vmul.f32 %v2550_v48, %v5399_v54  ;;  %3090 = vmatpush.lsf.msrb.mxu2 %v2868_v37 }
 0x7af   :  { %v2590_v62 = vadd.f32 0.05243302, %v2589_v57  ;;  %v2627_v56 = vmul.f32 %v2626_v52, %v5418_v31  ;;  %v2643_v55 = vadd.f32 0.4994258, %v2642_v21  ;;  %v2564_v43 = vmul.f32 %v2563_v23, %v5399_v54  ;;  %v2866_v23 = vld [vmem:[%s6071_s1 + $0x158] sm:$0xff] }
 0x7b0   :  { %v2705_v25 = vmul.f32 2.1237322e-06, %v5547_v36  ;;  %v2719_v2 = vadd.f32 0.014752088, %v2718_v8  ;;  %v5609_v14 = vmin.f32 %v2743_v1, 16.0  ;;  %v5614_v48 = vsel %vm5549_vm11, %v5510_v35, %v2494_v61  ;;  %3091 = vmatpush.lsf.msrb.mxu2 %v2867_v40  ;;  %v2865_v1 = vld [vmem:[%s6071_s1 + $0x150] sm:$0xff] }
 0x7b1   :  { %6324 = vst [vmem:[#allocation44_spill] sm:$0xff] %v5614_v48  ;;  %v5616_v57 = vadd.f32 1.0, %v2364_v41  ;;  %v2683_v52 = vadd.f32 0.4994258, %v2682_v0  ;;  %v5619_v21 = vmul.f32 0.70710677, %v5594_v51  ;;  %v2604_v3 = vmul.f32 %v2603_v26, %v5413_v24 }
 0x7b2   :  { %v2667_v37 = vmul.f32 %v2666_v7, %v5471_v19  ;;  %v2720_v8 = vmul.f32 %v2719_v2, %v5547_v36  ;;  %v2745_v35 = vmul.f32 2.1237322e-06, %v5609_v14  ;;  %v2529_v39 = vmul.f32 %v5538_v18, %v2528_v17  ;;  %3092 = vmatpush.lsf.msrb.mxu2 %v2866_v23 }
 0x7b3   :  { %v5629_v61 = vadd.f32 0.18741608, %v2551_v45  ;;  %v2628_v41 = vadd.f32 0.0036580483, %v2627_v56  ;;  %v2644_v0 = vmul.f32 %v2643_v55, %v5418_v31  ;;  %vm2532_vm13 = vweird.f32 %v5538_v18  ;;  %v2864_v55 = vld [vmem:[%s6071_s1 + $0x148] sm:$0xff] }
 0x7b4   :  { %v5636_v26 = vadd.f32 1.0, %v2564_v43  ;;  %v2706_v7 = vadd.f32 0.00028619796, %v2705_v25  ;;  %v2721_v40 = vadd.f32 0.112945676, %v2720_v8  ;;  %v2783_v2 = vmul.f32 %v5619_v21, %v5619_v21  ;;  %3093 = vmatpush.lsf.msrb.mxu2 %v2865_v1  ;;  %v2863_v1 = vld [vmem:[%s6071_s1 + $0x140] sm:$0xff] }
 0x7b5   :  { %3427 = vrcp.f32 %v5616_v57  ;;  %v2684_v17 = vmul.f32 %v2683_v52, %v5471_v19  ;;  %v2746_v45 = vadd.f32 0.00028619796, %v2745_v35  ;;  %v2756_v56 = vmul.f32 3.8918573e-05, %v5609_v14 }
 0x7b6   :  { %vm2531_vm14 = vweird.f32 %v5481_v11  ;;  %v2591_v43 = vmul.f32 %v2590_v62, %v5413_v24  ;;  %v5648_v25 = vadd.f32 1.0, %v2604_v3  ;;  %v2668_v23 = vadd.f32 0.0036580483, %v2667_v37  ;;  %3094 = vmatpush.lsf.msrb.mxu2 %v2864_v55 }
 0x7b7   :  { %v2722_v8 = vmul.f32 %v2721_v40, %v5547_v36  ;;  %v5651_v63 = vadd.f32 1.0, %v2644_v0  ;;  %v2747_v52 = vmul.f32 %v2746_v45, %v5609_v14  ;;  %v2757_v35 = vadd.f32 0.001143296, %v2756_v56  ;;  %vm5702_vm15 = vmor %vm2531_vm14, %vm2532_vm13 }
 0x7b8   :  { %v5654_v58 = vmin.f32 %v2783_v2, 16.0  ;;  %3429 = vrcp.f32 %v5636_v26  ;;  %v2629_v62 = vmul.f32 %v2628_v41, %v5418_v31  ;;  %v2707_v3 = vmul.f32 %v2706_v7, %v5547_v36  ;;  %3095 = vmatpush.lsf.msrb.mxu2 %v2863_v1  ;;  %v2862_v41 = vld [vmem:[%s6071_s1 + $0x138] sm:$0xff] }
 0x7b9   :  { %v2723_v37 = vadd.f32 0.4994258, %v2722_v8  ;;  %v5662_v40 = vadd.f32 1.0, %v2684_v17  ;;  %v2758_v0 = vmul.f32 %v2757_v35, %v5609_v14  ;;  %3431 = vrcp.f32 %v5648_v25 }
 0x7ba   :  { %v2785_v45 = vmul.f32 2.1237322e-06, %v5654_v58  ;;  %v2796_v2 = vmul.f32 3.8918573e-05, %v5654_v58  ;;  %v2669_v56 = vmul.f32 %v2668_v23, %v5471_v19  ;;  %v2748_v9 = vadd.f32 0.0036580483, %v2747_v52  ;;  %3096 = vmatpush.lsf.msrb.mxu2 %v2862_v41 }
 0x7bb   :  { %v2724_v55 = vmul.f32 %v2723_v37, %v5547_v36  ;;  %v5673_v7 = vpop.eup %3427  ;;  %3433 = vrcp.f32 %v5651_v63  ;;  %v2759_v17 = vadd.f32 0.014752088, %v2758_v0  ;;  %v5677_v1 = vadd.f32 %v5538_v18, %v2529_v39  ;;  %v2861_v52 = vld [vmem:[%s6071_s1 + $0x130] sm:$0xff]  ;;  %v2860_v39 = vld [vmem:[%s6071_s1 + $0x128] sm:$0xff] }
 0x7bc   :  { %v2786_v8 = vadd.f32 0.00028619796, %v2785_v45  ;;  %v2797_v35 = vadd.f32 0.001143296, %v2796_v2  ;;  %v2630_v27 = vadd.f32 0.05243302, %v2629_v62  ;;  %3435 = vrcp.f32 %v5662_v40  ;;  %3097 = vmatpush.lsf.msrb.mxu2 %v2861_v52 }
 0x7bd   :  { %v2708_v23 = vadd.f32 0.0036580483, %v2707_v3  ;;  %v5679_v38 = vadd.f32 1.0, %v2724_v55  ;;  %v2760_v37 = vmul.f32 %v2759_v17, %v5609_v14  ;;  %v5695_v3 = vmul.f32 %v5673_v7, %v5616_v57 }
 0x7be   :  { %v2787_v0 = vmul.f32 %v2786_v8, %v5654_v58  ;;  %v2798_v45 = vmul.f32 %v2797_v35, %v5654_v58  ;;  %v5691_v62 = vpop.eup %3429  ;;  %v2592_v2 = vadd.f32 0.18741608, %v2591_v43  ;;  %v2670_v55 = vadd.f32 0.05243302, %v2669_v56  ;;  %3098 = vmatpush.lsf.msrb.mxu2 %v2860_v39  ;;  %v2859_v35 = vld [vmem:[%s6071_s1 + $0x120] sm:$0xff] }
 0x7bf   :  { %3437 = vrcp.f32 %v5679_v38  ;;  %v5708_v17 = vmul.f32 %v5554_v46, %v5367_v4  ;;  %v2553_v8 = vmul.f32 %v5629_v61, %v5399_v54  ;;  %v2749_v43 = vmul.f32 %v2748_v9, %v5609_v14  ;;  %v5716_v52 = vpop.eup %3431  ;;  %v2858_v54 = vld [vmem:[%s6071_s1 + $0x118] sm:$0xff] }
 0x7c0   :  { %v2761_v56 = vadd.f32 0.112945676, %v2760_v37  ;;  %v6328_v6 = vsub.f32 1.0, %v5542_v10  ;;  %v2788_v4 = vadd.f32 0.0036580483, %v2787_v0  ;;  %v2567_v37 = vmul.f32 %v5691_v62, %v5636_v26  ;;  %3099 = vmatpush.lsf.msrb.mxu2 %v2859_v35 }
 0x7c1   :  { %6327 = vst [vmem:[#allocation45_spill] sm:$0xff] %v5708_v17  ;;  %v2799_v9 = vadd.f32 0.014752088, %v2798_v45  ;;  %v5730_v61 = vpop.eup %3433  ;;  %v2631_v10 = vmul.f32 %v2630_v27, %v5418_v31  ;;  %v2593_v0 = vmul.f32 %v2592_v2, %v5413_v24  ;;  %v2671_v45 = vmul.f32 %v2670_v55, %v5471_v19 }
 0x7c2   :  { %v5721_v22 = vmul.f32 %v5519_v16, %v6328_v6  ;;  %v2709_v6 = vmul.f32 %v2708_v23, %v5547_v36  ;;  %v2762_v39 = vmul.f32 %v2761_v56, %v5609_v14  ;;  %v5744_v44 = vpop.eup %3435  ;;  %v5746_v27 = vadd.f32 1.1283791, %v2553_v8  ;;  %3100 = vmatpush.lsf.msrb.mxu2 %v2858_v54  ;;  %v2856_v8 = vld [vmem:[%s6071_s1 + $0x108] sm:$0xff] }
 0x7c3   :  { %v2800_v5 = vmul.f32 %v2799_v9, %v5654_v58  ;;  %v2607_v23 = vmul.f32 %v5716_v52, %v5648_v25  ;;  %v2750_v56 = vadd.f32 0.05243302, %v2749_v43  ;;  %v2647_v2 = vmul.f32 %v5730_v61, %v5651_v63 }
 0x7c4   :  { %v2763_v35 = vadd.f32 0.4994258, %v2762_v39  ;;  %v2789_v55 = vmul.f32 %v2788_v4, %v5654_v58  ;;  %v2568_v34 = vsub.f32 1.0, %v2567_v37  ;;  %v2632_v49 = vadd.f32 0.18741608, %v2631_v10  ;;  %3101 = vmatpush.lsf.msrb.mxu2 %v2857_v30 }
 0x7c5   :  { %v5750_v46 = vpop.eup %3437  ;;  %v2801_v9 = vadd.f32 0.112945676, %v2800_v5  ;;  %v2710_v53 = vadd.f32 0.05243302, %v2709_v6  ;;  %v5760_v54 = vadd.f32 1.1283791, %v2593_v0  ;;  %v2687_v24 = vmul.f32 %v5744_v44, %v5662_v40 }
 0x7c6   :  { %v2764_v43 = vmul.f32 %v2763_v35, %v5609_v14  ;;  %v2672_v39 = vadd.f32 0.18741608, %v2671_v45  ;;  %v2855_v5 = vld [vmem:[%s6071_s1 + $0x100] sm:$0xff]  ;;  %v2608_v4 = vsub.f32 1.0, %v2607_v23  ;;  %v2727_v37 = vmul.f32 %v5750_v46, %v5679_v38  ;;  %3102 = vmatpush.lsf.msrb.mxu2 %v2856_v8 }
 0x7c7   :  { %v2802_v17 = vmul.f32 %v2801_v9, %v5654_v58  ;;  %v2751_v10 = vmul.f32 %v2750_v56, %v5609_v14  ;;  %v2648_v0 = vsub.f32 1.0, %v2647_v2  ;;  %v2790_v45 = vadd.f32 0.05243302, %v2789_v55 }
 0x7c8   :  { %v5771_v6 = vadd.f32 1.0, %v2764_v43  ;;  %v2569_v9 = vmul.f32 %v5691_v62, %v2568_v34  ;;  %v2633_v48 = vmul.f32 %v2632_v49, %v5418_v31  ;;  %v2711_v13 = vmul.f32 %v2710_v53, %v5547_v36  ;;  %3103 = vmatpush.lsf.msrb.mxu2 %v2855_v5 }
 0x7c9   :  { %v2803_v35 = vadd.f32 0.4994258, %v2802_v17  ;;  %v2615_v23 = vand.u32 2147483647, %v5648_v25  ;;  %v2657_v56 = vand.u32 2147483648, %v5651_v63  ;;  %v2688_v43 = vsub.f32 1.0, %v2687_v24  ;;  %3104 = vllmr.4.mxu2 }
 0x7ca   :  { %3439 = vrcp.f32 %v5771_v6  ;;  %v2609_v2 = vmul.f32 %v5716_v52, %v2608_v4  ;;  %v2673_v17 = vmul.f32 %v2672_v39, %v5471_v19  ;;  %v2728_v34 = vsub.f32 1.0, %v2727_v37 }
 0x7cb   :  { %v2804_v8 = vmul.f32 %v2803_v35, %v5654_v58  ;;  %v2752_v55 = vadd.f32 0.18741608, %v2751_v10  ;;  %v2649_v53 = vmul.f32 %v5730_v61, %v2648_v0  ;;  %v2791_v31 = vmul.f32 %v2790_v45, %v5654_v58 }
 0x7cc   :  { %v5789_v30 = vadd.f32 %v5691_v62, %v2569_v9  ;;  %v5791_v24 = vadd.f32 1.1283791, %v2633_v48  ;;  %v2655_v35 = vand.u32 2147483647, %v5651_v63  ;;  %v2712_v4 = vadd.f32 0.18741608, %v2711_v13 }
 0x7cd   :  { %v5786_v5 = vadd.f32 1.0, %v2804_v8  ;;  %vm2652_vm0 = vweird.f32 %v5730_v61  ;;  %v5795_v19 = vor.u32 1.1754944e-38, %v2657_v56  ;;  %v2689_v39 = vmul.f32 %v5744_v44, %v2688_v43 }
 0x7ce   :  { %v5800_v10 = vadd.f32 %v5716_v52, %v2609_v2  ;;  %v5802_v0 = vadd.f32 1.1283791, %v2673_v17  ;;  %v2729_v48 = vmul.f32 %v5750_v46, %v2728_v34  ;;  %v2753_v45 = vmul.f32 %v2752_v55, %v5609_v14 }
 0x7cf   :  { %3441 = vrcp.f32 %v5786_v5  ;;  %vm2612_vm1 = vweird.f32 %v5716_v52  ;;  %v5808_v13 = vadd.f32 %v5730_v61, %v2649_v53  ;;  %vm2651_vm2 = vweird.f32 %v5651_v63 }
 0x7d0   :  { %v3440_v37 = vpop.eup %3439  ;;  %vm2691_vm3 = vweird.f32 %v5662_v40  ;;  %v2792_v56 = vadd.f32 0.18741608, %v2791_v31  ;;  %v2695_v43 = vand.u32 2147483647, %v5662_v40  ;;  %v2697_v8 = vand.u32 2147483648, %v5662_v40 }
 0x7d1   :  { %v2767_v9 = vmul.f32 %v3440_v37, %v5771_v6  ;;  %v2713_v2 = vmul.f32 %v2712_v4, %v5547_v36  ;;  %v2735_v14 = vand.u32 2147483647, %v5679_v38  ;;  %v2690_v17 = vadd.f32 %v5744_v44, %v2689_v39 }
 0x7d2   :  { %vm2692_vm6 = vweird.f32 %v5744_v44  ;;  %v2737_v34 = vand.u32 2147483648, %v5679_v38  ;;  %v2730_v53 = vadd.f32 %v5750_v46, %v2729_v48  ;;  %vm2732_vm9 = vweird.f32 %v5750_v46 }
 0x7d3   :  { %v2768_v55 = vsub.f32 1.0, %v2767_v9  ;;  %v2754_v31 = vadd.f32 1.1283791, %v2753_v45  ;;  %v2777_v36 = vand.u32 2147483648, %v5771_v6  ;;  %vm2772_vm11 = vweird.f32 %v3440_v37  ;;  %vm5836_vm14 = vmor %vm2691_vm3, %vm2692_vm6 }
 0x7d4   :  { %v2775_v28 = vand.u32 2147483647, %v5771_v6  ;;  %v2793_v39 = vmul.f32 %v2792_v56, %v5654_v58  ;;  %vm5828_vm13 = vcmp.eq.f32.partialorder %v2655_v35, 8.507059e+37  ;;  %v2714_v45 = vadd.f32 1.1283791, %v2713_v2 }
 0x7d5   :  { %v3442_v4 = vpop.eup %3441  ;;  %v2769_v49 = vmul.f32 %v3440_v37, %v2768_v55  ;;  %vm2731_vm8 = vweird.f32 %v5679_v38  ;;  %vm5841_vm5 = vcmp.eq.f32.partialorder %v2735_v14, 8.507059e+37  ;;  %v2694_v35 = vsel %vm5836_vm14, %v5744_v44, %v2690_v17 }
 0x7d6   :  { %v2807_v58 = vmul.f32 %v3442_v4, %v5786_v5  ;;  %vm5851_vm12 = vmor %vm2731_vm8, %vm2732_vm9  ;;  %v2738_v56 = vor.u32 1.1754944e-38, %v2737_v34  ;;  %vm2771_vm3 = vweird.f32 %v5771_v6  ;;  %vm5856_vm6 = vcmp.eq.f32.partialorder %v2615_v23, 8.507059e+37 }
 0x7d7   :  { %v2770_v2 = vadd.f32 %v3440_v37, %v2769_v49  ;;  %v2734_v14 = vsel %vm5851_vm12, %v5750_v46, %v2730_v53  ;;  %v2755_v44 = vmul.f32 %v2754_v31, %v5589_v50  ;;  %vm2773_vm14 = vmor %vm2771_vm3, %vm2772_vm11  ;;  %v2778_v17 = vor.u32 1.1754944e-38, %v2777_v36  ;;  %v6356_v50 = vld [vmem:[#allocation9_spill] sm:$0xff] }
 0x7d8   :  { %v2808_v48 = vsub.f32 1.0, %v2807_v58  ;;  %vm2776_vm8 = vcmp.eq.f32.partialorder %v2775_v28, 8.507059e+37  ;;  %v2794_v34 = vadd.f32 1.1283791, %v2793_v39  ;;  %v2817_v49 = vand.u32 2147483648, %v5786_v5  ;;  %vm5876_vm12 = vmor %vm2651_vm2, %vm2652_vm0 }
 0x7d9   :  { %v2774_v29 = vsel %vm2773_vm14, %v3440_v37, %v2770_v2  ;;  %v6339_v6 = vand.u32 2147483647, %v5481_v11  ;;  %vm2812_vm11 = vweird.f32 %v3442_v4  ;;  %v2815_v28 = vand.u32 2147483647, %v5786_v5 }
 0x7da   :  { %v2779_v46 = vsel %vm2776_vm8, %v2778_v17, %v2774_v29  ;;  %v2809_v37 = vmul.f32 %v3442_v4, %v2808_v48  ;;  %v2654_v11 = vsel %vm5876_vm12, %v5730_v61, %v5808_v13  ;;  %vm2696_vm3 = vcmp.eq.f32.partialorder %v2695_v43, 8.507059e+37 }
 0x7db   :  { %vm5868_vm9 = vcmp.eq.f32.partialorder %v6339_v6, 8.507059e+37  ;;  %v2698_v53 = vor.u32 1.1754944e-38, %v2697_v8  ;;  %v2739_v31 = vsel %vm5841_vm5, %v2738_v56, %v2734_v14  ;;  %vm6344_vm0 = vweird.f32 %v5648_v25 }
 0x7dc   :  { %vm5891_vm2 = vmor %vm6344_vm0, %vm2612_vm1  ;;  %v2715_v63 = vmul.f32 %v2714_v45, %v5525_v42  ;;  %v2780_v36 = vmul.f32 %v2779_v46, %v2755_v44  ;;  %v2810_v39 = vadd.f32 %v3442_v4, %v2809_v37  ;;  %vm2811_vm14 = vweird.f32 %v5786_v5  ;;  %v6360_v37 = vld [vmem:[#allocation4_spill] sm:$0xff] }
 0x7dd   :  { %v2614_v61 = vsel %vm5891_vm2, %v5716_v52, %v5800_v10  ;;  %v2675_v13 = vmul.f32 %v5802_v0, %v5451_v59  ;;  %v2699_v43 = vsel %vm2696_vm3, %v2698_v53, %v2694_v35  ;;  %vm2813_vm5 = vmor %vm2811_vm14, %vm2812_vm11  ;;  %v2818_v8 = vor.u32 1.1754944e-38, %v2817_v49 }
 0x7de   :  { %v2740_v55 = vmul.f32 %v2739_v31, %v2715_v63  ;;  %v2795_v58 = vmul.f32 %v2794_v34, %v5619_v21  ;;  %v2814_v40 = vsel %vm2813_vm5, %v3442_v4, %v2810_v39  ;;  %vm2816_vm1 = vcmp.eq.f32.partialorder %v2815_v28, 8.507059e+37  ;;  %v6361_v31 = vld [vmem:[#allocation10_spill] sm:$0xff] }
 0x7df   :  { %vm2332_vm8 = vweird.f32 %v5519_v16  ;;  %vm6347_vm12 = vweird.f32 %v5691_v62  ;;  %vm6348_vm0 = vweird.f32 %v5636_v26  ;;  %v6351_v59 = vand.u32 2147483648, %v5648_v25 }
 0x7e0   :  { %vm5909_vm10 = vmor %vm6348_vm0, %vm6347_vm12  ;;  %v2635_v5 = vmul.f32 %v5791_v24, %v5364_v33  ;;  %v2659_v21 = vsel %vm5828_vm13, %v5795_v19, %v2654_v11  ;;  %v2819_v10 = vsel %vm2816_vm1, %v2818_v8, %v2814_v40  ;;  %v2700_v4 = vmul.f32 %v2699_v43, %v2675_v13  ;;  %v6367_v43 = vld [vmem:[#allocation22_spill] sm:$0xff] }
 0x7e1   :  { %v2618_v52 = vor.u32 1.1754944e-38, %v6351_v59  ;;  %v2574_v0 = vsel %vm5909_vm10, %v5691_v62, %v5789_v30  ;;  %v2820_v45 = vmul.f32 %v2819_v10, %v2795_v58  ;;  %v3078_v35 = vclamps-f32 %v2780_v36, 1.0  ;;  %v6363_v36 = vld [vmem:[#allocation45_spill] sm:$0xff]  ;;  %v6399_v58 = vld [vmem:[#allocation39_spill] sm:$0xff] }
 0x7e2   :  { %vm2331_vm11 = vweird.f32 %v5469_v15  ;;  %v6352_v25 = vsub.f32 1.0, %v5695_v3  ;;  %v6353_v33 = vand.u32 2147483647, %v5636_v26  ;;  %v6354_v24 = vand.u32 2147483648, %v5636_v26 }
 0x7e3   :  { %v2619_v9 = vsel %vm5856_vm6, %v2618_v52, %v2614_v61  ;;  %v2595_v62 = vmul.f32 %v5760_v54, %v5357_v60  ;;  %v2660_v30 = vmul.f32 %v2659_v21, %v2635_v5  ;;  %v3079_v2 = vclamps-f32 %v2820_v45, 1.0  ;;  %v6366_v61 = vld [vmem:[#allocation15_spill] sm:$0xff]  ;;  %vm5984_vm2 = vmor %vm2331_vm11, %vm2332_vm8 }
 0x7e4   :  { %v2369_v56 = vmul.f32 %v5673_v7, %v6352_v25  ;;  %vm2576_vm3 = vcmp.eq.f32.partialorder %v6353_v33, 8.507059e+37  ;;  %v2578_v19 = vor.u32 1.1754944e-38, %v6354_v24  ;;  %v3077_v14 = vclamps-f32 %v2740_v55, 1.0  ;;  %v6373_v5 = vld [vmem:[#allocation43_spill] sm:$0xff]  ;;  %v6410_v55 = vld [vmem:[#allocation14_spill] sm:$0xff] }
 0x7e5   :  { %v6355_v3 = vsel %vm5702_vm15, %v5538_v18, %v5677_v1  ;;  %v2555_v26 = vmul.f32 %v5746_v27, %v5346_v20  ;;  %v2166_v17 = vmul.f32 0.5, %v5594_v51  ;;  %v2620_v48 = vmul.f32 %v2619_v9, %v2595_v62 }
 0x7e6   :  { %v2539_v44 = vsel %vm5868_vm9, %v5562_v12, %v6355_v3  ;;  %v2579_v38 = vsel %vm2576_vm3, %v2578_v19, %v2574_v0  ;;  %v2838_v60 = vadd.f32 1.0, %v3079_v2  ;;  %v2837_v54 = vadd.f32 1.0, %v3078_v35  ;;  %v6375_v35 = vld [vmem:[#allocation38_spill] sm:$0xff] }
 0x7e7   :  { %v3076_v34 = vclamps-f32 %v2700_v4, 1.0  ;;  %v2330_v41 = vadd.f32 %v5519_v16, %v5721_v22  ;;  %v2370_v49 = vadd.f32 %v5673_v7, %v2369_v56  ;;  %vm2372_vm10 = vweird.f32 %v5673_v7  ;;  %v6374_v4 = vld [vmem:[#allocation41_spill] sm:$0xff]  ;;  %v6381_v2 = vld [vmem:[#allocation42_spill] sm:$0xff] }
 0x7e8   :  { %v2165_v18 = vmul.f32 0.5, %v5558_v32  ;;  %v2580_v12 = vmul.f32 %v2579_v38, %v2555_v26  ;;  %v2854_v1 = vmul.f32 %v2838_v60, %v2166_v17  ;;  %v2836_v6 = vadd.f32 1.0, %v3077_v14 }
 0x7e9   :  { %v3075_v20 = vclamps-f32 %v2660_v30, 1.0  ;;  %v2540_v27 = vmul.f32 %v2539_v44, %v5531_v47  ;;  %vm2371_vm15 = vweird.f32 %v5616_v57  ;;  %v2375_v51 = vand.u32 2147483647, %v5616_v57  ;;  %v6362_v47 = vld [vmem:[#allocation44_spill] sm:$0xff] }
 0x7ea   :  { %v2377_v23 = vand.u32 2147483648, %v5616_v57  ;;  %v6357_v22 = vand.u32 2147483647, %v6356_v50  ;;  %v2164_v32 = vmul.f32 0.5, %v6360_v37  ;;  %2927 = vmatpush.msra.mxu2 %v2854_v1  ;;  %v2853_v28 = vmul.f32 %v2837_v54, %v2165_v18  ;;  %vm5969_vm6 = vmor %vm2371_vm15, %vm2372_vm10  ;;  %v6391_v37 = vld [vmem:[#allocation11_spill] sm:$0xff] }
 0x7eb   :  { %v2835_v11 = vadd.f32 1.0, %v3076_v34  ;;  %v3074_v53 = vclamps-f32 %v2620_v48, 1.0  ;;  %v2500_v29 = vmul.f32 %v6362_v47, %v6361_v31  ;;  %v2337_v63 = vand.u32 2147483648, %v5469_v15  ;;  %v6383_v48 = vld [vmem:[#allocation21_spill] sm:$0xff]  ;;  %v6384_v34 = vld [vmem:[#allocation40_spill] sm:$0xff] }
 0x7ec   :  { %vm5958_vm13 = vcmp.eq.f32.partialorder %v6357_v22, 8.507059e+37  ;;  %v2354_v39 = vadd.f32 1.1283791, %v6363_v36  ;;  %v2163_v13 = vmul.f32 0.5, %v6366_v61  ;;  %v6368_v8 = vand.u32 2147483647, %v6367_v43  ;;  %2928 = vmatpush.msra.mxu2 %v2853_v28 }
 0x7ed   :  { %v2374_v40 = vsel %vm5969_vm6, %v5673_v7, %v2370_v49  ;;  %v2852_v42 = vmul.f32 %v2836_v6, %v2164_v32  ;;  %v2834_v59 = vadd.f32 1.0, %v3075_v20  ;;  %v3073_v52 = vclamps-f32 %v2580_v12, 1.0  ;;  %v6385_v12 = vld [vmem:[#allocation5_spill] sm:$0xff] }
 0x7ee   :  { %vm5976_vm9 = vcmp.eq.f32.partialorder %v6368_v8, 8.507059e+37  ;;  %v2314_v21 = vadd.f32 1.1283791, %v6373_v5  ;;  %v2334_v10 = vsel %vm5984_vm2, %v5519_v16, %v2330_v41  ;;  %v2378_v0 = vor.u32 1.1754944e-38, %v2377_v23  ;;  %v6380_v16 = vld [vmem:[#allocation7_spill] sm:$0xff]  ;;  %v6396_v61 = vld [vmem:[#allocation33_spill] sm:$0xff] }
 0x7ef   :  { %v2162_v45 = vmul.f32 0.5, %v6374_v4  ;;  %v6376_v25 = vand.u32 2147483647, %v6375_v35  ;;  %vm2376_vm5 = vcmp.eq.f32.partialorder %v2375_v51, 8.507059e+37  ;;  %2929 = vmatpush.msra.mxu2 %v2852_v42  ;;  %v2851_v7 = vmul.f32 %v2835_v11, %v2163_v13  ;;  %v6388_v51 = vld [vmem:[#allocation18_spill] sm:$0xff]  ;;  %v6393_v11 = vld [vmem:[#allocation20_spill] sm:$0xff] }
 0x7f0   :  { %v2833_v33 = vadd.f32 1.0, %v3074_v53  ;;  %v3072_v24 = vclamps-f32 %v2540_v27, 1.0  ;;  %v6379_v19 = vand.u32 2147483647, %v5469_v15  ;;  %v2338_v9 = vor.u32 1.1754944e-38, %v2337_v63  ;;  %v6387_v27 = vld [vmem:[#allocation28_spill] sm:$0xff] }
 0x7f1   :  { %vm5998_vm14 = vcmp.eq.f32.partialorder %v6376_v25, 8.507059e+37  ;;  %v2379_v62 = vsel %vm2376_vm5, %v2378_v0, %v2374_v40  ;;  %v2161_v30 = vmul.f32 0.5, %v6380_v16  ;;  %v2355_v14 = vmul.f32 %v2354_v39, %v6381_v2  ;;  %2930 = vmatpush.msra.mxu2 %v2851_v7  ;;  %v6394_v63 = vld [vmem:[#allocation6_spill] sm:$0xff]  ;;  %v6397_v13 = vld [vmem:[#allocation35_spill] sm:$0xff]  ;;  %v6400_v40 = vld [vmem:[#allocation16_spill] sm:$0xff] }
 0x7f2   :  { %vm2336_vm1 = vcmp.eq.f32.partialorder %v6379_v19, 8.507059e+37  ;;  %v2850_v3 = vmul.f32 %v2834_v59, %v2162_v45  ;;  %v2832_v44 = vadd.f32 1.0, %v3073_v52  ;;  %v3071_v26 = vclamps-f32 %v2500_v29, 1.0  ;;  %v6402_v59 = vld [vmem:[#allocation23_spill] sm:$0xff]  ;;  %v6403_v4 = vld [vmem:[#allocation29_spill] sm:$0xff]  ;;  %v6404_v45 = vld [vmem:[#allocation36_spill] sm:$0xff] }
 0x7f3   :  { %v6382_v38 = vand.u32 2147483648, %v6356_v50  ;;  %v2315_v60 = vmul.f32 %v2314_v21, %v6383_v48  ;;  %v2339_v54 = vsel %vm2336_vm1, %v2338_v9, %v2334_v10  ;;  %v2160_v41 = vmul.f32 0.5, %v6384_v34  ;;  %v6390_v50 = vld [vmem:[#allocation8_spill] sm:$0xff]  ;;  %v6405_v25 = vld [vmem:[#allocation30_spill] sm:$0xff]  ;;  %v6407_v7 = vld [vmem:[#allocation25_spill] sm:$0xff] }
 0x7f4   :  { %v2380_v15 = vmul.f32 %v2379_v62, %v2355_v14  ;;  %2931 = vmatpush.msra.mxu2 %v2850_v3  ;;  %v2849_v49 = vmul.f32 %v2833_v33, %v2161_v30  ;;  %v2831_v18 = vadd.f32 1.0, %v3072_v24  ;;  %v3070_v1 = vclamps-f32 %v6385_v12, 1.0  ;;  %v6408_v33 = vld [vmem:[#allocation24_spill] sm:$0xff]  ;;  %v6411_v14 = vld [vmem:[#allocation19_spill] sm:$0xff]  ;;  %v6412_v48 = vld [vmem:[#allocation37_spill] sm:$0xff] }
 0x7f5   :  { %v2298_v17 = vor.u32 1.1754944e-38, %v6382_v38  ;;  %v6386_v6 = vand.u32 2147483648, %v6367_v43  ;;  %v2275_v23 = vmul.f32 %v6388_v51, %v6387_v27  ;;  %v6392_v32 = vsel %vm5500_vm7, %v6390_v50, %v6391_v37  ;;  %v6415_v51 = vld [vmem:[#allocation17_spill] sm:$0xff] }
 0x7f6   :  { %v2159_v53 = vmul.f32 0.5, %v6393_v11  ;;  %v2340_v31 = vmul.f32 %v2339_v54, %v2315_v60  ;;  %2932 = vmatpush.msra.mxu2 %v2849_v49  ;;  %v2848_v47 = vmul.f32 %v2832_v44, %v2160_v41  ;;  %v2830_v29 = vadd.f32 1.0, %v3071_v26  ;;  %v6413_v41 = vld [vmem:[#allocation26_spill] sm:$0xff]  ;;  %v6416_v37 = vld [vmem:[#allocation13_spill] sm:$0xff] }
 0x7f7   :  { %v2258_v20 = vor.u32 1.1754944e-38, %v6386_v6  ;;  %v2299_v28 = vsel %vm5958_vm13, %v2298_v17, %v6392_v32  ;;  %v3069_v36 = vclamps-f32 %v6394_v63, 1.0  ;;  %v6395_v39 = vand.u32 2147483648, %v6375_v35 }
 0x7f8   :  { %v2235_v43 = vmul.f32 %v6397_v13, %v6396_v61  ;;  %v6401_v46 = vsel %vm5427_vm4, %v6399_v58, %v6400_v40  ;;  %v2158_v52 = vmul.f32 0.5, %v6402_v59  ;;  %v2300_v5 = vmul.f32 %v2299_v28, %v2275_v23  ;;  %2933 = vmatpush.msra.mxu2 %v2848_v47  ;;  %v6418_v61 = vld [vmem:[#allocation32_spill] sm:$0xff]  ;;  %v6419_v40 = vld [vmem:[#allocation27_spill] sm:$0xff] }
 0x7f9   :  { %v2218_v57 = vor.u32 1.1754944e-38, %v6395_v39  ;;  %v2259_v42 = vsel %vm5976_vm9, %v2258_v20, %v6401_v46  ;;  %v2847_v21 = vmul.f32 %v2831_v18, %v2159_v53  ;;  %v2829_v10 = vadd.f32 1.0, %v3070_v1  ;;  %v6414_v1 = vld [vmem:[#allocation31_spill] sm:$0xff]  ;;  %v2878_v53 = vpop.permute.xlu0 %2877 }
 0x7fa   :  { %v3068_v0 = vclamps-f32 %v2380_v15, 1.0  ;;  %v2195_v35 = vmul.f32 %v6404_v45, %v6403_v4  ;;  %vm6406_vm7 = vnez %v6405_v25  ;;  %v2157_v9 = vmul.f32 0.5, %v6410_v55 }
 0x7fb   :  { %v6409_v24 = vsel %vm6406_vm7, %v6407_v7, %v6408_v33  ;;  %v2260_v62 = vmul.f32 %v2259_v42, %v2235_v43  ;;  %2934 = vmatpush.msra.mxu2 %v2847_v21  ;;  %v2846_v16 = vmul.f32 %v2830_v29, %v2158_v52  ;;  %v2828_v30 = vadd.f32 1.0, %v3069_v36  ;;  %v6417_v29 = vld [vmem:[#allocation34_spill] sm:$0xff]  ;;  %v2883_v36 = vpop.permute.xlu1 %2882  ;;  %v2888_v43 = vpop.permute.xlu2 %2887 }
 0x7fc   :  { %v2219_v19 = vsel %vm5998_vm14, %v2218_v57, %v6409_v24  ;;  %v3067_v2 = vclamps-f32 %v2340_v31, 1.0  ;;  %v2156_v3 = vmul.f32 0.5, %v6411_v14  ;;  %v2845_v26 = vmul.f32 %v2829_v10, %v2157_v9 }
 0x7fd   :  { %v2220_v44 = vmul.f32 %v2219_v19, %v2195_v35  ;;  %2935 = vmatpush.msra.mxu2 %v2846_v16  ;;  %v2827_v38 = vadd.f32 1.0, %v3068_v0  ;;  %v3066_v17 = vclamps-f32 %v2300_v5, 1.0  ;;  %v2155_v60 = vmul.f32 0.5, %v6412_v48  ;;  %v6420_v5 = vld [vmem:[#allocation12_spill] sm:$0xff] }
 0x7fe   :  { %v2844_v54 = vmul.f32 %v2828_v30, %v2156_v3  ;;  %v2826_v56 = vadd.f32 1.0, %v3067_v2  ;;  %v3065_v34 = vclamps-f32 %v2260_v62, 1.0  ;;  %v2154_v15 = vmul.f32 0.5, %v6413_v41 }
 0x7ff   :  { %2936 = vmatpush.msra.mxu2 %v2845_v26  ;;  %v2843_v49 = vmul.f32 %v2827_v38, %v2155_v60  ;;  %v2825_v18 = vadd.f32 1.0, %v3066_v17  ;;  %v3064_v12 = vclamps-f32 %v2220_v44, 1.0  ;;  %v2153_v6 = vmul.f32 0.5, %v6414_v1 }
 0x800   :  { %v2842_v20 = vmul.f32 %v2826_v56, %v2154_v15  ;;  %v2824_v27 = vadd.f32 1.0, %v3065_v34  ;;  %v2152_v23 = vmul.f32 0.5, %v6415_v51  ;;  %v2151_v32 = vmul.f32 0.5, %v6416_v37 }
 0x801   :  { %2937 = vmatpush.msra.mxu2 %v2844_v54  ;;  %v2841_v22 = vmul.f32 %v2825_v18, %v2153_v6  ;;  %v2823_v50 = vadd.f32 1.0, %v3064_v12  ;;  %v2893_v42 = vpop.permute.xlu0 %2892 }
 0x802   :  { %v2840_v28 = vmul.f32 %v2824_v27, %v2152_v23 }
 0x803   :  { %2938 = vmatpush.msra.mxu2 %v2843_v49  ;;  %v2839_v11 = vmul.f32 %v2823_v50, %v2151_v32 }
 0x805   :  { %2939 = vmatpush.msra.mxu2 %v2842_v20 }
 0x807   :  { %2940 = vmatpush.msra.mxu2 %v2841_v22 }
 0x809   :  { %2941 = vmatpush.msra.mxu2 %v2840_v28 }
 0x80b   :  { %2942 = vmatpush.msra.mxu2 %v2839_v11 }
 0x80c   :  { %3105 = vmatmul.lmr.bf16.vlgmr.msra.gmra.4.mxu2 }
 0x814   :  { %3106 = vmatmul.lmr.bf16.gmra.4.mxu2 }
 0x81c   :  { %3107 = vmatmul.lmr.bf16.gmra.4.mxu2 }
 0x824   :  { %3108 = vmatmul.lmr.bf16.gmra.4.mxu2 }
 0x88f   :  { %v2944_v31 = vpop.f32.mrf.mxu2 }
 0x890   :  { %v2945_v47 = vadd.f32 %v2944_v31, %v2878_v53 }
 0x892   :  { %v2956_v63 = vadd.f32 %v2945_v47, %v6417_v29 }
 0x894   :  { %2960 = vst [vmem:[%s6072_s4] sm:$0xff] %v2956_v63 }
 0x897   :  { %v2947_v39 = vpop.f32.mrf.mxu2 }
 0x898   :  { %v2948_v57 = vadd.f32 %v2947_v39, %v2883_v36 }
 0x89a   :  { %v2957_v13 = vadd.f32 %v2948_v57, %v6418_v61 }
 0x89c   :  { %2961 = vst [vmem:[%s6072_s4 + $0x8] sm:$0xff] %v2957_v13 }
 0x89f   :  { %v2950_v8 = vpop.f32.mrf.mxu2 }
 0x8a0   :  { %v2951_v58 = vadd.f32 %v2950_v8, %v2888_v43 }
 0x8a2   :  { %v2958_v46 = vadd.f32 %v2951_v58, %v6419_v40 }
 0x8a4   :  { %2962 = vst [vmem:[%s6072_s4 + $0x10] sm:$0xff] %v2958_v46 }
 0x8a7   :  { %v2953_v59 = vpop.f32.mrf.mxu2 }
 0x8a8   :  { %v2954_v52 = vadd.f32 %v2953_v59, %v2893_v42 }
 0x8aa   :  { %v2959_v21 = vadd.f32 %v2954_v52, %v6420_v5 }
 0x8ac   :  { %2963 = vst [vmem:[%s6072_s4 + $0x18] sm:$0xff] %v2959_v21 }

</bundles_post_ra>
